<compile_context>
chip_gen: v7x
topology: tpu7x:2x2x1
jax: 0.10.0
libtpu: 0.0.40
codegen_flags: <defaults>
</compile_context>

<pallas_src>
import math

import jax
import jax.numpy as jnp
from jax.experimental import pallas as pl
from jax.experimental.pallas import tpu as pltpu

# ----------------------------- model config ---------------------------------
BATCH = 2
SEQ = 8
HIDDEN = 32
NUM_HEADS = 4
HEAD_DIM = HIDDEN // NUM_HEADS
NUM_TEMPORAL = 10
NUM_STATIC = 5
LSTM_LAYERS = 2
QUANTILES = (0.1, 0.5, 0.9)
NQ = len(QUANTILES)
H2 = HIDDEN // 2
OUTPUT_SIZE = 1
HEAD_LANES = 128                       # width of the lane-dense packed output slab
EMB_IN = NUM_TEMPORAL + NUM_STATIC + 1  # temporal + tiled static + static-indicator

# output-slab unpack offsets
GAP_OFF = HIDDEN
QUANT_OFF = HIDDEN + 3
ATTN_OFF = HIDDEN + 3 + NQ * OUTPUT_SIZE
PAD_LANES = HEAD_LANES - ATTN_OFF - SEQ * SEQ
assert PAD_LANES >= 0


# -------------------------- parameter slab layout ----------------------------
def _round8(n):
    return (n + 7) // 8 * 8


_PARAM_SPECS = (
    ("w_emb", EMB_IN, HIDDEN),
    ("b_emb", 1, HIDDEN),
    ("wih0", HIDDEN, 4 * HIDDEN),
    ("b0", 1, 4 * HIDDEN),
    ("b1", 1, 4 * HIDDEN),
    ("wqkv", HIDDEN, 3 * HIDDEN),
    ("bqkv", 1, 3 * HIDDEN),
    ("wo", HIDDEN, HIDDEN),
    ("bo", 1, HIDDEN),
    ("wgate", 2 * HIDDEN, 2 * HIDDEN),
    ("bgate", 1, 2 * HIDDEN),
    ("w1c", HIDDEN, (NQ + 1) * H2),
    ("b1c", 1, (NQ + 1) * H2),
    ("w2c", (NQ + 1) * H2, NQ * OUTPUT_SIZE + 3),
    ("b2c", 1, NQ * OUTPUT_SIZE + 3),
)


def _build_layout():
    layout, off = {}, 0
    for name, r, c in _PARAM_SPECS:
        layout[name] = (off, r, c)
        off += _round8(r)          # 8-row aligned so in-kernel slices are tile-aligned
    return layout, _round8(off)


PARAM_LAYOUT, PARAM_ROWS = _build_layout()
PARAM_LANES = 128


def _pget(p_ref, name):
    off, r, c = PARAM_LAYOUT[name]
    return p_ref[off:off + r, 0:c]


# ------------------------------ fused kernel ---------------------------------
def _tft_fused_kernel(t_ref, p_ref, r_ref, head_ref):
    f32 = jnp.float32
    B, S, H = BATCH, SEQ, HIDDEN
    BS = B * S
    H4 = 4 * H

    # -- unpack the single lane-dense parameter slab (static, tile-aligned slices)
    w_emb = _pget(p_ref, "w_emb")
    b_emb = _pget(p_ref, "b_emb")
    wih0 = _pget(p_ref, "wih0")
    b0 = _pget(p_ref, "b0")
    b1 = _pget(p_ref, "b1")
    wqkv = _pget(p_ref, "wqkv")
    bqkv = _pget(p_ref, "bqkv")
    wo = _pget(p_ref, "wo")
    bo = _pget(p_ref, "bo")
    wgate = _pget(p_ref, "wgate")
    bgate = _pget(p_ref, "bgate")
    w1c = _pget(p_ref, "w1c")
    b1c = _pget(p_ref, "b1c")
    w2c = _pget(p_ref, "w2c")
    b2c = _pget(p_ref, "b2c")

    # ---- embeddings: static already folded into the temporal projection ------
    t2d = t_ref[...].reshape(BS, EMB_IN)
    x = jnp.dot(t2d, w_emb, preferred_element_type=f32) + b_emb          # [BS, H]

    # ---- layer-0 input projection (+bias) hoisted off the recurrent chain ----
    xproj0 = (jnp.dot(x, wih0, preferred_element_type=f32) + b0).reshape(B, S, H4)

    r_bf16 = r_ref[...]                                                  # [2H, 8H]

    def cell(gates, c_prev):
        # full-vreg nonlinearities, then lane-slice (PyTorch gate order i,f,g,o)
        sg = jax.nn.sigmoid(gates)
        tg = jnp.tanh(gates)
        c_new = sg[:, H:2 * H] * c_prev + sg[:, 0:H] * tg[:, 2 * H:3 * H]
        h_new = sg[:, 3 * H:4 * H] * jnp.tanh(c_new)
        return h_new, c_new

    # ---- 2-layer LSTM as a wavefront: one bf16 matmul per step ---------------
    # R = [[Whh0, Wih1], [0, Whh1]]; LHS = [h1_{t-1} | h2_{t-2}]
    h1, c1 = cell(xproj0[:, 0, :], jnp.zeros((B, H), f32))   # layer-1, t=0
    h2 = jnp.zeros((B, H), f32)
    c2 = jnp.zeros((B, H), f32)
    hs2 = []
    for w in range(1, S + 1):                                # statically unrolled
        lhs = jnp.concatenate([h1, h2], axis=-1).astype(jnp.bfloat16)    # [B, 2H]
        comb = jnp.dot(lhs, r_bf16, preferred_element_type=f32)          # [B, 8H]
        # layer-2, timestep w-1 (uses layer-1 output h1_{w-1} via Wih1 block)
        h2, c2 = cell(comb[:, H4:2 * H4] + b1, c2)
        hs2.append(h2)
        if w < S:
            # layer-1, timestep w
            h1, c1 = cell(xproj0[:, w, :] + comb[:, 0:H4], c1)
    lstm2d = jnp.stack(hs2, axis=1).reshape(BS, H)                       # [BS, H]
    l_last = h2                                                          # [B, H]

    # ---- multi-head self-attention: single lane-dense QKV matmul -------------
    # 1/sqrt(head_dim) is folded into the q weight/bias block at init.
    qkv2d = jnp.dot(lstm2d, wqkv, preferred_element_type=f32) + bqkv     # [BS, 3H]
    ctx_heads = []
    attnw = None
    for hh in range(NUM_HEADS):
        lo = hh * HEAD_DIM
        qh = qkv2d[:, lo:lo + HEAD_DIM].reshape(B, S, HEAD_DIM)
        kh = qkv2d[:, H + lo:H + lo + HEAD_DIM].reshape(B, S, HEAD_DIM)
        vh = qkv2d[:, 2 * H + lo:2 * H + lo + HEAD_DIM].reshape(B, S, HEAD_DIM)
        s = jnp.einsum("bqd,bkd->bqk", qh, kh, preferred_element_type=f32)
        wsm = jax.nn.softmax(s, axis=-1)
        attnw = wsm if attnw is None else attnw + wsm
        ctx_heads.append(jnp.einsum("bqk,bkd->bqd", wsm, vh,
                                    preferred_element_type=f32))
    attnw = attnw * (1.0 / NUM_HEADS)                                    # [B, S, S]
    ctx2d = jnp.concatenate(ctx_heads, axis=-1).reshape(BS, H)           # [BS, H]
    attn2d = jnp.dot(ctx2d, wo, preferred_element_type=f32) + bo         # [BS, H]

    # ---- gated combination (only last timestep consumed downstream) ----------
    a_last = attn2d.reshape(B, S, H)[:, S - 1, :]                        # [B, H]
    gin = jnp.concatenate([l_last, a_last], axis=-1)                     # [B, 2H]
    g = jax.nn.sigmoid(jnp.dot(gin, wgate, preferred_element_type=f32) + bgate)
    hidden = g[:, 0:H] * l_last + g[:, H:2 * H] * a_last                 # [B, H]

    # ---- quantile heads + gap classifier as two fused block matmuls ----------
    mlp1 = jnp.maximum(jnp.dot(hidden, w1c, preferred_element_type=f32) + b1c, 0.0)
    out2 = jnp.dot(mlp1, w2c, preferred_element_type=f32) + b2c          # [B, 6]
    quant = out2[:, 0:NQ * OUTPUT_SIZE]
    gap = jax.nn.softmax(out2[:, NQ * OUTPUT_SIZE:NQ * OUTPUT_SIZE + 3], axis=-1)

    # ---- single lane-dense packed output slab (incl. attention weights) ------
    attnw_flat = attnw.reshape(B, S * S)
    pad = jnp.zeros((B, PAD_LANES), f32)
    head_ref[...] = jnp.concatenate([hidden, gap, quant, attnw_flat, pad], axis=-1)


# ------------------------------ pallas wrapper --------------------------------
def _full_spec(shape):
    nd = len(shape)
    return pl.BlockSpec(shape, lambda i, nd=nd: (0,) * nd)


def _fused_call(temporal_aug, pslab, r_bf16):
    fn = pl.pallas_call(
        _tft_fused_kernel,
        grid=(1,),
        in_specs=[_full_spec(tuple(temporal_aug.shape)),
                  _full_spec(tuple(pslab.shape)),
                  _full_spec(tuple(r_bf16.shape))],
        out_specs=_full_spec((BATCH, HEAD_LANES)),
        out_shape=jax.ShapeDtypeStruct((BATCH, HEAD_LANES), jnp.float32),
        compiler_params=pltpu.CompilerParams(dimension_semantics=("arbitrary",)),
    )
    return fn(temporal_aug, pslab, r_bf16)


# ------------------------- parameter construction ----------------------------
def _linear(key, fan_in, fan_out):
    kw, kb = jax.random.split(key)
    scale = 1.0 / math.sqrt(fan_in)
    w = jax.random.uniform(kw, (fan_in, fan_out), jnp.float32, -scale, scale)
    b = jax.random.uniform(kb, (1, fan_out), jnp.float32, -scale, scale)
    return w, b


def init_params(key):
    keys = jax.random.split(key, 32)
    p = {}
    p["wt"], p["bt"] = _linear(keys[0], NUM_TEMPORAL, HIDDEN)
    p["ws"], p["bs"] = _linear(keys[1], NUM_STATIC, HIDDEN)
    # LSTM: combined bias (b_ih + b_hh)
    p["wih0"], b_ih0 = _linear(keys[2], HIDDEN, 4 * HIDDEN)
    p["whh0"], b_hh0 = _linear(keys[3], HIDDEN, 4 * HIDDEN)
    p["b0"] = b_ih0 + b_hh0
    p["wih1"], b_ih1 = _linear(keys[4], HIDDEN, 4 * HIDDEN)
    p["whh1"], b_hh1 = _linear(keys[5], HIDDEN, 4 * HIDDEN)
    p["b1"] = b_ih1 + b_hh1
    # attention projections ([in, out] layout) and gates
    p["wq"], p["bq"] = _linear(keys[6], HIDDEN, HIDDEN)
    p["wk"], p["bk"] = _linear(keys[7], HIDDEN, HIDDEN)
    p["wv"], p["bv"] = _linear(keys[8], HIDDEN, HIDDEN)
    p["wo"], p["bo"] = _linear(keys[9], HIDDEN, HIDDEN)
    p["wgl"], p["bgl"] = _linear(keys[10], HIDDEN, HIDDEN)
    p["wga"], p["bga"] = _linear(keys[11], HIDDEN, HIDDEN)
    # quantile heads + gap classifier (original layout, used by the reference)
    qw1, qb1, qw2, qb2 = [], [], [], []
    for i in range(NQ):
        w1, b1_ = _linear(keys[12 + 2 * i], HIDDEN, H2)
        w2, b2_ = _linear(keys[13 + 2 * i], H2, OUTPUT_SIZE)
        qw1.append(w1); qb1.append(b1_); qw2.append(w2); qb2.append(b2_)
    p["qw1"], p["qb1"] = jnp.stack(qw1), jnp.stack(qb1)
    p["qw2"], p["qb2"] = jnp.stack(qw2), jnp.stack(qb2)
    p["cw1"], p["cb1"] = _linear(keys[20], HIDDEN, H2)
    p["cw2"], p["cb2"] = _linear(keys[21], H2, 3)

    # ---- kernel-side repacking (pure layout / weight-side rescale) -----------
    scale = 1.0 / math.sqrt(HEAD_DIM)

    # fused embedding: temporal(10) | static(5) | static-bias indicator(1)
    w_emb = jnp.zeros((EMB_IN, HIDDEN), jnp.float32)
    w_emb = w_emb.at[0:NUM_TEMPORAL, :].set(p["wt"])
    w_emb = w_emb.at[NUM_TEMPORAL:NUM_TEMPORAL + NUM_STATIC, :].set(p["ws"])
    w_emb = w_emb.at[EMB_IN - 1, :].set(p["bs"][0])
    b_emb = p["bt"]

    # single QKV matrix, 1/sqrt(head_dim) folded into the q block
    wqkv = jnp.concatenate([p["wq"] * scale, p["wk"], p["wv"]], axis=1)   # [H, 3H]
    bqkv = jnp.concatenate([p["bq"] * scale, p["bk"], p["bv"]], axis=1)   # [1, 3H]

    # block-diagonal lstm/attn gate projection
    wgate = jnp.zeros((2 * HIDDEN, 2 * HIDDEN), jnp.float32)
    wgate = wgate.at[0:HIDDEN, 0:HIDDEN].set(p["wgl"])
    wgate = wgate.at[HIDDEN:, HIDDEN:].set(p["wga"])
    bgate = jnp.concatenate([p["bgl"], p["bga"]], axis=1)                 # [1, 2H]

    # quantile heads + gap classifier fused into block matmuls
    w1c = jnp.concatenate(list(p["qw1"]) + [p["cw1"]], axis=1)            # [H,(NQ+1)*H2]
    b1c = jnp.concatenate(list(p["qb1"]) + [p["cb1"]], axis=1)            # [1,(NQ+1)*H2]
    w2c = jnp.zeros(((NQ + 1) * H2, NQ * OUTPUT_SIZE + 3), jnp.float32)
    for i in range(NQ):
        w2c = w2c.at[i * H2:(i + 1) * H2,
                     i * OUTPUT_SIZE:(i + 1) * OUTPUT_SIZE].set(p["qw2"][i])
    w2c = w2c.at[NQ * H2:, NQ * OUTPUT_SIZE:].set(p["cw2"])
    b2c = jnp.concatenate(list(p["qb2"]) + [p["cb2"]], axis=1)            # [1, NQ+3]

    packed = {
        "w_emb": w_emb, "b_emb": b_emb,
        "wih0": p["wih0"], "b0": p["b0"], "b1": p["b1"],
        "wqkv": wqkv, "bqkv": bqkv, "wo": p["wo"], "bo": p["bo"],
        "wgate": wgate, "bgate": bgate,
        "w1c": w1c, "b1c": b1c, "w2c": w2c, "b2c": b2c,
    }
    slab = jnp.zeros((PARAM_ROWS, PARAM_LANES), jnp.float32)
    for name, (off, r, c) in PARAM_LAYOUT.items():
        slab = slab.at[off:off + r, 0:c].set(packed[name].reshape(r, c))
    p["pslab"] = slab

    # wavefront recurrent weights: [[Whh0, Wih1], [0, Whh1]] in bf16
    rmat = jnp.zeros((2 * HIDDEN, 8 * HIDDEN), jnp.float32)
    rmat = rmat.at[0:HIDDEN, 0:4 * HIDDEN].set(p["whh0"])
    rmat = rmat.at[0:HIDDEN, 4 * HIDDEN:].set(p["wih1"])
    rmat = rmat.at[HIDDEN:, 4 * HIDDEN:].set(p["whh1"])
    p["r_bf16"] = rmat.astype(jnp.bfloat16)
    return p


# ------------------------------- forward --------------------------------------
def tft_forward(params, temporal_data, static_data=None):
    p = params
    temporal_data = temporal_data.astype(jnp.float32)
    assert temporal_data.ndim == 3
    b, s, f = temporal_data.shape
    assert b == BATCH and s == SEQ
    if f < NUM_TEMPORAL:
        temporal_data = jnp.concatenate(
            [temporal_data, jnp.zeros((b, s, NUM_TEMPORAL - f), jnp.float32)], axis=-1)
    elif f > NUM_TEMPORAL:
        temporal_data = temporal_data[:, :, :NUM_TEMPORAL]

    if static_data is None:
        # torch skips the static branch entirely -> zero features, indicator 0
        static_block = jnp.zeros((b, s, NUM_STATIC + 1), jnp.float32)
    else:
        static_arr = static_data.astype(jnp.float32)
        fs = static_arr.shape[-1]
        if fs < NUM_STATIC:
            static_arr = jnp.concatenate(
                [static_arr, jnp.zeros((b, NUM_STATIC - fs), jnp.float32)], axis=-1)
        elif fs > NUM_STATIC:
            static_arr = static_arr[:, :NUM_STATIC]
        static_block = jnp.concatenate(
            [jnp.broadcast_to(static_arr[:, None, :], (b, s, NUM_STATIC)),
             jnp.ones((b, s, 1), jnp.float32)], axis=-1)
    temporal_aug = jnp.concatenate([temporal_data, static_block], axis=-1)  # [B,S,16]

    head_slab = _fused_call(temporal_aug, p["pslab"], p["r_bf16"])

    # unpack the single lane-dense slab
    final_hidden = head_slab[:, :HIDDEN]
    gap_probs = head_slab[:, GAP_OFF:GAP_OFF + 3]
    quant = head_slab[:, QUANT_OFF:QUANT_OFF + NQ * OUTPUT_SIZE]
    attn_weights = head_slab[:, ATTN_OFF:ATTN_OFF + SEQ * SEQ].reshape(BATCH, SEQ, SEQ)
    quantile_outputs = {
        f"quantile_{q}": quant[:, i * OUTPUT_SIZE:(i + 1) * OUTPUT_SIZE]
        for i, q in enumerate(QUANTILES)
    }
    return {
        "quantile_predictions": quantile_outputs,
        "gap_classification": gap_probs,
        "attention_weights": attn_weights,
        "hidden_state": final_hidden,
    }


# ----------------------- pure-JAX reference (for checking) -------------------
def _reference_forward(p, temporal, static):
    temporal = temporal.astype(jnp.float32)
    static = static.astype(jnp.float32)
    x = temporal @ p["wt"] + p["bt"]
    x = x + (static @ p["ws"] + p["bs"])[:, None, :]
    for wih, whh, bias in ((p["wih0"], p["whh0"], p["b0"]),
                           (p["wih1"], p["whh1"], p["b1"])):
        h = jnp.zeros((BATCH, HIDDEN), jnp.float32)
        c = jnp.zeros((BATCH, HIDDEN), jnp.float32)
        outs = []
        for t in range(SEQ):
            g = x[:, t, :] @ wih + h @ whh + bias
            i_g = jax.nn.sigmoid(g[:, :HIDDEN])
            f_g = jax.nn.sigmoid(g[:, HIDDEN:2 * HIDDEN])
            g_g = jnp.tanh(g[:, 2 * HIDDEN:3 * HIDDEN])
            o_g = jax.nn.sigmoid(g[:, 3 * HIDDEN:])
            c = f_g * c + i_g * g_g
            h = o_g * jnp.tanh(c)
            outs.append(h)
        x = jnp.stack(outs, axis=1)
    lstm_out = x
    q = lstm_out @ p["wq"] + p["bq"]
    k = lstm_out @ p["wk"] + p["bk"]
    v = lstm_out @ p["wv"] + p["bv"]

    def split(z):
        return z.reshape(BATCH, SEQ, NUM_HEADS, HEAD_DIM).transpose(0, 2, 1, 3)

    qh, kh, vh = split(q), split(k), split(v)
    scores = (qh @ jnp.swapaxes(kh, -1, -2)) / math.sqrt(HEAD_DIM)
    w = jax.nn.softmax(scores, axis=-1)
    ctx = (w @ vh).transpose(0, 2, 1, 3).reshape(BATCH, SEQ, HIDDEN)
    attn = ctx @ p["wo"] + p["bo"]
    attnw = jnp.mean(w, axis=1)
    gl = jax.nn.sigmoid(lstm_out @ p["wgl"] + p["bgl"])
    ga = jax.nn.sigmoid(attn @ p["wga"] + p["bga"])
    hidden = (gl * lstm_out + ga * attn)[:, -1, :]
    quantile_outputs = {}
    for i, qv in enumerate(QUANTILES):
        h1 = jnp.maximum(hidden @ p["qw1"][i] + p["qb1"][i], 0.0)
        quantile_outputs[f"quantile_{qv}"] = h1 @ p["qw2"][i] + p["qb2"][i]
    c1 = jnp.maximum(hidden @ p["cw1"] + p["cb1"], 0.0)
    gap = jax.nn.softmax(c1 @ p["cw2"] + p["cb2"], axis=-1)
    return {
        "quantile_predictions": quantile_outputs,
        "gap_classification": gap,
        "attention_weights": attnw,
        "hidden_state": hidden,
    }


# -------------------------------- main ----------------------------------------
if __name__ == "__main__":
    key = jax.random.PRNGKey(0)
    k_param, k_temp, k_stat = jax.random.split(key, 3)

    params = init_params(k_param)
    temporal_data = jax.random.normal(k_temp, (BATCH, SEQ, NUM_TEMPORAL), jnp.float32)
    static_data = jax.random.normal(k_stat, (BATCH, NUM_STATIC), jnp.float32)

    out = tft_forward(params, temporal_data, static_data)
    out = jax.block_until_ready(out)

    # shape / sanity checks
    assert out["hidden_state"].shape == (BATCH, HIDDEN)
    assert out["gap_classification"].shape == (BATCH, 3)
    assert out["attention_weights"].shape == (BATCH, SEQ, SEQ)
    for q in QUANTILES:
        assert out["quantile_predictions"][f"quantile_{q}"].shape == (BATCH, OUTPUT_SIZE)
    assert bool(jnp.all(jnp.isfinite(out["hidden_state"])))
    assert bool(jnp.allclose(jnp.sum(out["gap_classification"], axis=-1), 1.0, atol=1e-5))
    assert bool(jnp.allclose(jnp.sum(out["attention_weights"], axis=-1), 1.0, atol=1e-4))

    # cross-check against a pure-JAX reference (loose tol: the recurrent matmul
    # runs with bf16 operands and XLA's default f32 matmul precision on TPU may
    # itself round through bf16 passes).
    ref = _reference_forward(params, temporal_data, static_data)
    tol = dict(rtol=3e-2, atol=3e-2)
    assert bool(jnp.allclose(out["hidden_state"], ref["hidden_state"], **tol))
    assert bool(jnp.allclose(out["gap_classification"], ref["gap_classification"], **tol))
    assert bool(jnp.allclose(out["attention_weights"], ref["attention_weights"], **tol))
    for q in QUANTILES:
        assert bool(jnp.allclose(out["quantile_predictions"][f"quantile_{q}"],
                                 ref["quantile_predictions"][f"quantile_{q}"], **tol))

    print("KERNEL_OK")
</pallas_src>

<mosaic_0001>
module attributes {stable_mosaic.version = 11 : i64} {
  func.func @_tft_fused_kernel(%arg0: i32, %arg1: memref<2x8x16xf32, #tpu.memory_space<vmem>>, %arg2: memref<336x128xf32, #tpu.memory_space<vmem>>, %arg3: memref<64x256xbf16, #tpu.memory_space<vmem>>, %arg4: memref<2x128xf32, #tpu.memory_space<vmem>>) attributes {dimension_semantics = [#tpu.dimension_semantics<arbitrary>], iteration_bounds = array<i64: 1>, scalar_prefetch = 0 : i64, scratch_operands = 0 : i64, tpu.core_type = #tpu.core_type<tc>, window_params = [{pipeline_mode = #tpu.pipeline_mode<synchronous>, transform_indices = @transform_0, window_bounds = array<i64: 2, 8, 16>}, {pipeline_mode = #tpu.pipeline_mode<synchronous>, transform_indices = @transform_1, window_bounds = array<i64: 336, 128>}, {pipeline_mode = #tpu.pipeline_mode<synchronous>, transform_indices = @transform_2, window_bounds = array<i64: 64, 256>}, {pipeline_mode = #tpu.pipeline_mode<synchronous>, transform_indices = @transform_3, window_bounds = array<i64: 2, 128>}]} {
    %c0 = arith.constant 0 : index
    %c0_0 = arith.constant 0 : index
    %0 = vector.load %arg2[%c0, %c0_0] : memref<336x128xf32, #tpu.memory_space<vmem>>, vector<16x32xf32>
    %c16 = arith.constant 16 : index
    %c0_1 = arith.constant 0 : index
    %1 = vector.load %arg2[%c16, %c0_1] : memref<336x128xf32, #tpu.memory_space<vmem>>, vector<1x32xf32>
    %c24 = arith.constant 24 : index
    %c0_2 = arith.constant 0 : index
    %2 = vector.load %arg2[%c24, %c0_2] : memref<336x128xf32, #tpu.memory_space<vmem>>, vector<32x128xf32>
    %c56 = arith.constant 56 : index
    %c0_3 = arith.constant 0 : index
    %3 = vector.load %arg2[%c56, %c0_3] : memref<336x128xf32, #tpu.memory_space<vmem>>, vector<1x128xf32>
    %c64 = arith.constant 64 : index
    %c0_4 = arith.constant 0 : index
    %4 = vector.load %arg2[%c64, %c0_4] : memref<336x128xf32, #tpu.memory_space<vmem>>, vector<1x128xf32>
    %c72 = arith.constant 72 : index
    %c0_5 = arith.constant 0 : index
    %5 = vector.load %arg2[%c72, %c0_5] : memref<336x128xf32, #tpu.memory_space<vmem>>, vector<32x96xf32>
    %c104 = arith.constant 104 : index
    %c0_6 = arith.constant 0 : index
    %6 = vector.load %arg2[%c104, %c0_6] : memref<336x128xf32, #tpu.memory_space<vmem>>, vector<1x96xf32>
    %c112 = arith.constant 112 : index
    %c0_7 = arith.constant 0 : index
    %7 = vector.load %arg2[%c112, %c0_7] : memref<336x128xf32, #tpu.memory_space<vmem>>, vector<32x32xf32>
    %c144 = arith.constant 144 : index
    %c0_8 = arith.constant 0 : index
    %8 = vector.load %arg2[%c144, %c0_8] : memref<336x128xf32, #tpu.memory_space<vmem>>, vector<1x32xf32>
    %c152 = arith.constant 152 : index
    %c0_9 = arith.constant 0 : index
    %9 = vector.load %arg2[%c152, %c0_9] : memref<336x128xf32, #tpu.memory_space<vmem>>, vector<64x64xf32>
    %c216 = arith.constant 216 : index
    %c0_10 = arith.constant 0 : index
    %10 = vector.load %arg2[%c216, %c0_10] : memref<336x128xf32, #tpu.memory_space<vmem>>, vector<1x64xf32>
    %c224 = arith.constant 224 : index
    %c0_11 = arith.constant 0 : index
    %11 = vector.load %arg2[%c224, %c0_11] : memref<336x128xf32, #tpu.memory_space<vmem>>, vector<32x64xf32>
    %c256 = arith.constant 256 : index
    %c0_12 = arith.constant 0 : index
    %12 = vector.load %arg2[%c256, %c0_12] : memref<336x128xf32, #tpu.memory_space<vmem>>, vector<1x64xf32>
    %c264 = arith.constant 264 : index
    %c0_13 = arith.constant 0 : index
    %13 = vector.load %arg2[%c264, %c0_13] : memref<336x128xf32, #tpu.memory_space<vmem>>, vector<64x6xf32>
    %c328 = arith.constant 328 : index
    %c0_14 = arith.constant 0 : index
    %14 = vector.load %arg2[%c328, %c0_14] : memref<336x128xf32, #tpu.memory_space<vmem>>, vector<1x6xf32>
    %c0_15 = arith.constant 0 : index
    %c0_16 = arith.constant 0 : index
    %c0_17 = arith.constant 0 : index
    %15 = vector.load %arg1[%c0_15, %c0_16, %c0_17] : memref<2x8x16xf32, #tpu.memory_space<vmem>>, vector<2x8x16xf32>
    %16 = vector.shape_cast %15 : vector<2x8x16xf32> to vector<16x16xf32>
    %cst = arith.constant dense<0.000000e+00> : vector<16x32xf32>
    %17 = tpu.matmul %16, %0, %cst {dimension_numbers = #tpu.dot_dimension_numbers<[1], [0], [0], [1], [0, 0, 1, 1], [], []>} : vector<16x16xf32>, vector<16x32xf32>, vector<16x32xf32> -> vector<16x32xf32>
    %18 = vector.broadcast %1 : vector<1x32xf32> to vector<16x32xf32>
    %19 = arith.addf %17, %18 : vector<16x32xf32>
    %cst_18 = arith.constant dense<0.000000e+00> : vector<16x128xf32>
    %20 = tpu.matmul %19, %2, %cst_18 {dimension_numbers = #tpu.dot_dimension_numbers<[1], [0], [0], [1], [0, 0, 1, 1], [], []>} : vector<16x32xf32>, vector<32x128xf32>, vector<16x128xf32> -> vector<16x128xf32>
    %21 = vector.broadcast %3 : vector<1x128xf32> to vector<16x128xf32>
    %22 = arith.addf %20, %21 : vector<16x128xf32>
    %23 = vector.shape_cast %22 : vector<16x128xf32> to vector<2x8x128xf32>
    %c0_19 = arith.constant 0 : index
    %c0_20 = arith.constant 0 : index
    %24 = vector.load %arg3[%c0_19, %c0_20] : memref<64x256xbf16, #tpu.memory_space<vmem>>, vector<64x256xbf16>
    %25 = vector.extract_strided_slice %23 {offsets = [0, 0, 0], sizes = [2, 1, 128], strides = [1, 1, 1]} : vector<2x8x128xf32> to vector<2x1x128xf32>
    %26 = vector.shape_cast %25 : vector<2x1x128xf32> to vector<2x128xf32>
    %cst_21 = arith.constant 0.000000e+00 : f32
    %27 = vector.broadcast %cst_21 : f32 to vector<2x32xf32>
    %28 = arith.negf %26 : vector<2x128xf32>
    %29 = math.exp %28 : vector<2x128xf32>
    %cst_22 = arith.constant 1.000000e+00 : f32
    %30 = vector.broadcast %cst_22 : f32 to vector<2x128xf32>
    %31 = arith.addf %30, %29 : vector<2x128xf32>
    %32 = arith.divf %30, %31 : vector<2x128xf32>
    %33 = math.tanh %26 : vector<2x128xf32>
    %34 = vector.extract_strided_slice %32 {offsets = [0, 32], sizes = [2, 32], strides = [1, 1]} : vector<2x128xf32> to vector<2x32xf32>
    %35 = arith.mulf %34, %27 : vector<2x32xf32>
    %36 = vector.extract_strided_slice %32 {offsets = [0, 0], sizes = [2, 32], strides = [1, 1]} : vector<2x128xf32> to vector<2x32xf32>
    %37 = vector.extract_strided_slice %33 {offsets = [0, 64], sizes = [2, 32], strides = [1, 1]} : vector<2x128xf32> to vector<2x32xf32>
    %38 = arith.mulf %36, %37 : vector<2x32xf32>
    %39 = arith.addf %35, %38 : vector<2x32xf32>
    %40 = vector.extract_strided_slice %32 {offsets = [0, 96], sizes = [2, 32], strides = [1, 1]} : vector<2x128xf32> to vector<2x32xf32>
    %41 = math.tanh %39 : vector<2x32xf32>
    %42 = arith.mulf %40, %41 : vector<2x32xf32>
    %cst_23 = arith.constant 0.000000e+00 : f32
    %43 = vector.broadcast %cst_23 : f32 to vector<2x32xf32>
    %cst_24 = arith.constant 0.000000e+00 : f32
    %44 = vector.broadcast %cst_24 : f32 to vector<2x32xf32>
    %45 = tpu.concatenate %42, %43 in 1 : vector<2x32xf32>, vector<2x32xf32> -> vector<2x64xf32>
    %46 = arith.truncf %45 : vector<2x64xf32> to vector<2x64xbf16>
    %cst_25 = arith.constant dense<0.000000e+00> : vector<2x256xf32>
    %47 = tpu.matmul %46, %24, %cst_25 {dimension_numbers = #tpu.dot_dimension_numbers<[1], [0], [0], [1], [0, 0, 1, 1], [], []>} : vector<2x64xbf16>, vector<64x256xbf16>, vector<2x256xf32> -> vector<2x256xf32>
    %48 = vector.extract_strided_slice %47 {offsets = [0, 128], sizes = [2, 128], strides = [1, 1]} : vector<2x256xf32> to vector<2x128xf32>
    %49 = vector.broadcast %4 : vector<1x128xf32> to vector<2x128xf32>
    %50 = arith.addf %48, %49 : vector<2x128xf32>
    %51 = arith.negf %50 : vector<2x128xf32>
    %52 = math.exp %51 : vector<2x128xf32>
    %cst_26 = arith.constant 1.000000e+00 : f32
    %53 = vector.broadcast %cst_26 : f32 to vector<2x128xf32>
    %54 = arith.addf %53, %52 : vector<2x128xf32>
    %55 = arith.divf %53, %54 : vector<2x128xf32>
    %56 = math.tanh %50 : vector<2x128xf32>
    %57 = vector.extract_strided_slice %55 {offsets = [0, 32], sizes = [2, 32], strides = [1, 1]} : vector<2x128xf32> to vector<2x32xf32>
    %58 = arith.mulf %57, %44 : vector<2x32xf32>
    %59 = vector.extract_strided_slice %55 {offsets = [0, 0], sizes = [2, 32], strides = [1, 1]} : vector<2x128xf32> to vector<2x32xf32>
    %60 = vector.extract_strided_slice %56 {offsets = [0, 64], sizes = [2, 32], strides = [1, 1]} : vector<2x128xf32> to vector<2x32xf32>
    %61 = arith.mulf %59, %60 : vector<2x32xf32>
    %62 = arith.addf %58, %61 : vector<2x32xf32>
    %63 = vector.extract_strided_slice %55 {offsets = [0, 96], sizes = [2, 32], strides = [1, 1]} : vector<2x128xf32> to vector<2x32xf32>
    %64 = math.tanh %62 : vector<2x32xf32>
    %65 = arith.mulf %63, %64 : vector<2x32xf32>
    %66 = vector.extract_strided_slice %23 {offsets = [0, 1, 0], sizes = [2, 1, 128], strides = [1, 1, 1]} : vector<2x8x128xf32> to vector<2x1x128xf32>
    %67 = vector.shape_cast %66 : vector<2x1x128xf32> to vector<2x128xf32>
    %68 = vector.extract_strided_slice %47 {offsets = [0, 0], sizes = [2, 128], strides = [1, 1]} : vector<2x256xf32> to vector<2x128xf32>
    %69 = arith.addf %67, %68 : vector<2x128xf32>
    %70 = arith.negf %69 : vector<2x128xf32>
    %71 = math.exp %70 : vector<2x128xf32>
    %cst_27 = arith.constant 1.000000e+00 : f32
    %72 = vector.broadcast %cst_27 : f32 to vector<2x128xf32>
    %73 = arith.addf %72, %71 : vector<2x128xf32>
    %74 = arith.divf %72, %73 : vector<2x128xf32>
    %75 = math.tanh %69 : vector<2x128xf32>
    %76 = vector.extract_strided_slice %74 {offsets = [0, 32], sizes = [2, 32], strides = [1, 1]} : vector<2x128xf32> to vector<2x32xf32>
    %77 = arith.mulf %76, %39 : vector<2x32xf32>
    %78 = vector.extract_strided_slice %74 {offsets = [0, 0], sizes = [2, 32], strides = [1, 1]} : vector<2x128xf32> to vector<2x32xf32>
    %79 = vector.extract_strided_slice %75 {offsets = [0, 64], sizes = [2, 32], strides = [1, 1]} : vector<2x128xf32> to vector<2x32xf32>
    %80 = arith.mulf %78, %79 : vector<2x32xf32>
    %81 = arith.addf %77, %80 : vector<2x32xf32>
    %82 = vector.extract_strided_slice %74 {offsets = [0, 96], sizes = [2, 32], strides = [1, 1]} : vector<2x128xf32> to vector<2x32xf32>
    %83 = math.tanh %81 : vector<2x32xf32>
    %84 = arith.mulf %82, %83 : vector<2x32xf32>
    %85 = tpu.concatenate %84, %65 in 1 : vector<2x32xf32>, vector<2x32xf32> -> vector<2x64xf32>
    %86 = arith.truncf %85 : vector<2x64xf32> to vector<2x64xbf16>
    %cst_28 = arith.constant dense<0.000000e+00> : vector<2x256xf32>
    %87 = tpu.matmul %86, %24, %cst_28 {dimension_numbers = #tpu.dot_dimension_numbers<[1], [0], [0], [1], [0, 0, 1, 1], [], []>} : vector<2x64xbf16>, vector<64x256xbf16>, vector<2x256xf32> -> vector<2x256xf32>
    %88 = vector.extract_strided_slice %87 {offsets = [0, 128], sizes = [2, 128], strides = [1, 1]} : vector<2x256xf32> to vector<2x128xf32>
    %89 = vector.broadcast %4 : vector<1x128xf32> to vector<2x128xf32>
    %90 = arith.addf %88, %89 : vector<2x128xf32>
    %91 = arith.negf %90 : vector<2x128xf32>
    %92 = math.exp %91 : vector<2x128xf32>
    %cst_29 = arith.constant 1.000000e+00 : f32
    %93 = vector.broadcast %cst_29 : f32 to vector<2x128xf32>
    %94 = arith.addf %93, %92 : vector<2x128xf32>
    %95 = arith.divf %93, %94 : vector<2x128xf32>
    %96 = math.tanh %90 : vector<2x128xf32>
    %97 = vector.extract_strided_slice %95 {offsets = [0, 32], sizes = [2, 32], strides = [1, 1]} : vector<2x128xf32> to vector<2x32xf32>
    %98 = arith.mulf %97, %62 : vector<2x32xf32>
    %99 = vector.extract_strided_slice %95 {offsets = [0, 0], sizes = [2, 32], strides = [1, 1]} : vector<2x128xf32> to vector<2x32xf32>
    %100 = vector.extract_strided_slice %96 {offsets = [0, 64], sizes = [2, 32], strides = [1, 1]} : vector<2x128xf32> to vector<2x32xf32>
    %101 = arith.mulf %99, %100 : vector<2x32xf32>
    %102 = arith.addf %98, %101 : vector<2x32xf32>
    %103 = vector.extract_strided_slice %95 {offsets = [0, 96], sizes = [2, 32], strides = [1, 1]} : vector<2x128xf32> to vector<2x32xf32>
    %104 = math.tanh %102 : vector<2x32xf32>
    %105 = arith.mulf %103, %104 : vector<2x32xf32>
    %106 = vector.extract_strided_slice %23 {offsets = [0, 2, 0], sizes = [2, 1, 128], strides = [1, 1, 1]} : vector<2x8x128xf32> to vector<2x1x128xf32>
    %107 = vector.shape_cast %106 : vector<2x1x128xf32> to vector<2x128xf32>
    %108 = vector.extract_strided_slice %87 {offsets = [0, 0], sizes = [2, 128], strides = [1, 1]} : vector<2x256xf32> to vector<2x128xf32>
    %109 = arith.addf %107, %108 : vector<2x128xf32>
    %110 = arith.negf %109 : vector<2x128xf32>
    %111 = math.exp %110 : vector<2x128xf32>
    %cst_30 = arith.constant 1.000000e+00 : f32
    %112 = vector.broadcast %cst_30 : f32 to vector<2x128xf32>
    %113 = arith.addf %112, %111 : vector<2x128xf32>
    %114 = arith.divf %112, %113 : vector<2x128xf32>
    %115 = math.tanh %109 : vector<2x128xf32>
    %116 = vector.extract_strided_slice %114 {offsets = [0, 32], sizes = [2, 32], strides = [1, 1]} : vector<2x128xf32> to vector<2x32xf32>
    %117 = arith.mulf %116, %81 : vector<2x32xf32>
    %118 = vector.extract_strided_slice %114 {offsets = [0, 0], sizes = [2, 32], strides = [1, 1]} : vector<2x128xf32> to vector<2x32xf32>
    %119 = vector.extract_strided_slice %115 {offsets = [0, 64], sizes = [2, 32], strides = [1, 1]} : vector<2x128xf32> to vector<2x32xf32>
    %120 = arith.mulf %118, %119 : vector<2x32xf32>
    %121 = arith.addf %117, %120 : vector<2x32xf32>
    %122 = vector.extract_strided_slice %114 {offsets = [0, 96], sizes = [2, 32], strides = [1, 1]} : vector<2x128xf32> to vector<2x32xf32>
    %123 = math.tanh %121 : vector<2x32xf32>
    %124 = arith.mulf %122, %123 : vector<2x32xf32>
    %125 = tpu.concatenate %124, %105 in 1 : vector<2x32xf32>, vector<2x32xf32> -> vector<2x64xf32>
    %126 = arith.truncf %125 : vector<2x64xf32> to vector<2x64xbf16>
    %cst_31 = arith.constant dense<0.000000e+00> : vector<2x256xf32>
    %127 = tpu.matmul %126, %24, %cst_31 {dimension_numbers = #tpu.dot_dimension_numbers<[1], [0], [0], [1], [0, 0, 1, 1], [], []>} : vector<2x64xbf16>, vector<64x256xbf16>, vector<2x256xf32> -> vector<2x256xf32>
    %128 = vector.extract_strided_slice %127 {offsets = [0, 128], sizes = [2, 128], strides = [1, 1]} : vector<2x256xf32> to vector<2x128xf32>
    %129 = vector.broadcast %4 : vector<1x128xf32> to vector<2x128xf32>
    %130 = arith.addf %128, %129 : vector<2x128xf32>
    %131 = arith.negf %130 : vector<2x128xf32>
    %132 = math.exp %131 : vector<2x128xf32>
    %cst_32 = arith.constant 1.000000e+00 : f32
    %133 = vector.broadcast %cst_32 : f32 to vector<2x128xf32>
    %134 = arith.addf %133, %132 : vector<2x128xf32>
    %135 = arith.divf %133, %134 : vector<2x128xf32>
    %136 = math.tanh %130 : vector<2x128xf32>
    %137 = vector.extract_strided_slice %135 {offsets = [0, 32], sizes = [2, 32], strides = [1, 1]} : vector<2x128xf32> to vector<2x32xf32>
    %138 = arith.mulf %137, %102 : vector<2x32xf32>
    %139 = vector.extract_strided_slice %135 {offsets = [0, 0], sizes = [2, 32], strides = [1, 1]} : vector<2x128xf32> to vector<2x32xf32>
    %140 = vector.extract_strided_slice %136 {offsets = [0, 64], sizes = [2, 32], strides = [1, 1]} : vector<2x128xf32> to vector<2x32xf32>
    %141 = arith.mulf %139, %140 : vector<2x32xf32>
    %142 = arith.addf %138, %141 : vector<2x32xf32>
    %143 = vector.extract_strided_slice %135 {offsets = [0, 96], sizes = [2, 32], strides = [1, 1]} : vector<2x128xf32> to vector<2x32xf32>
    %144 = math.tanh %142 : vector<2x32xf32>
    %145 = arith.mulf %143, %144 : vector<2x32xf32>
    %146 = vector.extract_strided_slice %23 {offsets = [0, 3, 0], sizes = [2, 1, 128], strides = [1, 1, 1]} : vector<2x8x128xf32> to vector<2x1x128xf32>
    %147 = vector.shape_cast %146 : vector<2x1x128xf32> to vector<2x128xf32>
    %148 = vector.extract_strided_slice %127 {offsets = [0, 0], sizes = [2, 128], strides = [1, 1]} : vector<2x256xf32> to vector<2x128xf32>
    %149 = arith.addf %147, %148 : vector<2x128xf32>
    %150 = arith.negf %149 : vector<2x128xf32>
    %151 = math.exp %150 : vector<2x128xf32>
    %cst_33 = arith.constant 1.000000e+00 : f32
    %152 = vector.broadcast %cst_33 : f32 to vector<2x128xf32>
    %153 = arith.addf %152, %151 : vector<2x128xf32>
    %154 = arith.divf %152, %153 : vector<2x128xf32>
    %155 = math.tanh %149 : vector<2x128xf32>
    %156 = vector.extract_strided_slice %154 {offsets = [0, 32], sizes = [2, 32], strides = [1, 1]} : vector<2x128xf32> to vector<2x32xf32>
    %157 = arith.mulf %156, %121 : vector<2x32xf32>
    %158 = vector.extract_strided_slice %154 {offsets = [0, 0], sizes = [2, 32], strides = [1, 1]} : vector<2x128xf32> to vector<2x32xf32>
    %159 = vector.extract_strided_slice %155 {offsets = [0, 64], sizes = [2, 32], strides = [1, 1]} : vector<2x128xf32> to vector<2x32xf32>
    %160 = arith.mulf %158, %159 : vector<2x32xf32>
    %161 = arith.addf %157, %160 : vector<2x32xf32>
    %162 = vector.extract_strided_slice %154 {offsets = [0, 96], sizes = [2, 32], strides = [1, 1]} : vector<2x128xf32> to vector<2x32xf32>
    %163 = math.tanh %161 : vector<2x32xf32>
    %164 = arith.mulf %162, %163 : vector<2x32xf32>
    %165 = tpu.concatenate %164, %145 in 1 : vector<2x32xf32>, vector<2x32xf32> -> vector<2x64xf32>
    %166 = arith.truncf %165 : vector<2x64xf32> to vector<2x64xbf16>
    %cst_34 = arith.constant dense<0.000000e+00> : vector<2x256xf32>
    %167 = tpu.matmul %166, %24, %cst_34 {dimension_numbers = #tpu.dot_dimension_numbers<[1], [0], [0], [1], [0, 0, 1, 1], [], []>} : vector<2x64xbf16>, vector<64x256xbf16>, vector<2x256xf32> -> vector<2x256xf32>
    %168 = vector.extract_strided_slice %167 {offsets = [0, 128], sizes = [2, 128], strides = [1, 1]} : vector<2x256xf32> to vector<2x128xf32>
    %169 = vector.broadcast %4 : vector<1x128xf32> to vector<2x128xf32>
    %170 = arith.addf %168, %169 : vector<2x128xf32>
    %171 = arith.negf %170 : vector<2x128xf32>
    %172 = math.exp %171 : vector<2x128xf32>
    %cst_35 = arith.constant 1.000000e+00 : f32
    %173 = vector.broadcast %cst_35 : f32 to vector<2x128xf32>
    %174 = arith.addf %173, %172 : vector<2x128xf32>
    %175 = arith.divf %173, %174 : vector<2x128xf32>
    %176 = math.tanh %170 : vector<2x128xf32>
    %177 = vector.extract_strided_slice %175 {offsets = [0, 32], sizes = [2, 32], strides = [1, 1]} : vector<2x128xf32> to vector<2x32xf32>
    %178 = arith.mulf %177, %142 : vector<2x32xf32>
    %179 = vector.extract_strided_slice %175 {offsets = [0, 0], sizes = [2, 32], strides = [1, 1]} : vector<2x128xf32> to vector<2x32xf32>
    %180 = vector.extract_strided_slice %176 {offsets = [0, 64], sizes = [2, 32], strides = [1, 1]} : vector<2x128xf32> to vector<2x32xf32>
    %181 = arith.mulf %179, %180 : vector<2x32xf32>
    %182 = arith.addf %178, %181 : vector<2x32xf32>
    %183 = vector.extract_strided_slice %175 {offsets = [0, 96], sizes = [2, 32], strides = [1, 1]} : vector<2x128xf32> to vector<2x32xf32>
    %184 = math.tanh %182 : vector<2x32xf32>
    %185 = arith.mulf %183, %184 : vector<2x32xf32>
    %186 = vector.extract_strided_slice %23 {offsets = [0, 4, 0], sizes = [2, 1, 128], strides = [1, 1, 1]} : vector<2x8x128xf32> to vector<2x1x128xf32>
    %187 = vector.shape_cast %186 : vector<2x1x128xf32> to vector<2x128xf32>
    %188 = vector.extract_strided_slice %167 {offsets = [0, 0], sizes = [2, 128], strides = [1, 1]} : vector<2x256xf32> to vector<2x128xf32>
    %189 = arith.addf %187, %188 : vector<2x128xf32>
    %190 = arith.negf %189 : vector<2x128xf32>
    %191 = math.exp %190 : vector<2x128xf32>
    %cst_36 = arith.constant 1.000000e+00 : f32
    %192 = vector.broadcast %cst_36 : f32 to vector<2x128xf32>
    %193 = arith.addf %192, %191 : vector<2x128xf32>
    %194 = arith.divf %192, %193 : vector<2x128xf32>
    %195 = math.tanh %189 : vector<2x128xf32>
    %196 = vector.extract_strided_slice %194 {offsets = [0, 32], sizes = [2, 32], strides = [1, 1]} : vector<2x128xf32> to vector<2x32xf32>
    %197 = arith.mulf %196, %161 : vector<2x32xf32>
    %198 = vector.extract_strided_slice %194 {offsets = [0, 0], sizes = [2, 32], strides = [1, 1]} : vector<2x128xf32> to vector<2x32xf32>
    %199 = vector.extract_strided_slice %195 {offsets = [0, 64], sizes = [2, 32], strides = [1, 1]} : vector<2x128xf32> to vector<2x32xf32>
    %200 = arith.mulf %198, %199 : vector<2x32xf32>
    %201 = arith.addf %197, %200 : vector<2x32xf32>
    %202 = vector.extract_strided_slice %194 {offsets = [0, 96], sizes = [2, 32], strides = [1, 1]} : vector<2x128xf32> to vector<2x32xf32>
    %203 = math.tanh %201 : vector<2x32xf32>
    %204 = arith.mulf %202, %203 : vector<2x32xf32>
    %205 = tpu.concatenate %204, %185 in 1 : vector<2x32xf32>, vector<2x32xf32> -> vector<2x64xf32>
    %206 = arith.truncf %205 : vector<2x64xf32> to vector<2x64xbf16>
    %cst_37 = arith.constant dense<0.000000e+00> : vector<2x256xf32>
    %207 = tpu.matmul %206, %24, %cst_37 {dimension_numbers = #tpu.dot_dimension_numbers<[1], [0], [0], [1], [0, 0, 1, 1], [], []>} : vector<2x64xbf16>, vector<64x256xbf16>, vector<2x256xf32> -> vector<2x256xf32>
    %208 = vector.extract_strided_slice %207 {offsets = [0, 128], sizes = [2, 128], strides = [1, 1]} : vector<2x256xf32> to vector<2x128xf32>
    %209 = vector.broadcast %4 : vector<1x128xf32> to vector<2x128xf32>
    %210 = arith.addf %208, %209 : vector<2x128xf32>
    %211 = arith.negf %210 : vector<2x128xf32>
    %212 = math.exp %211 : vector<2x128xf32>
    %cst_38 = arith.constant 1.000000e+00 : f32
    %213 = vector.broadcast %cst_38 : f32 to vector<2x128xf32>
    %214 = arith.addf %213, %212 : vector<2x128xf32>
    %215 = arith.divf %213, %214 : vector<2x128xf32>
    %216 = math.tanh %210 : vector<2x128xf32>
    %217 = vector.extract_strided_slice %215 {offsets = [0, 32], sizes = [2, 32], strides = [1, 1]} : vector<2x128xf32> to vector<2x32xf32>
    %218 = arith.mulf %217, %182 : vector<2x32xf32>
    %219 = vector.extract_strided_slice %215 {offsets = [0, 0], sizes = [2, 32], strides = [1, 1]} : vector<2x128xf32> to vector<2x32xf32>
    %220 = vector.extract_strided_slice %216 {offsets = [0, 64], sizes = [2, 32], strides = [1, 1]} : vector<2x128xf32> to vector<2x32xf32>
    %221 = arith.mulf %219, %220 : vector<2x32xf32>
    %222 = arith.addf %218, %221 : vector<2x32xf32>
    %223 = vector.extract_strided_slice %215 {offsets = [0, 96], sizes = [2, 32], strides = [1, 1]} : vector<2x128xf32> to vector<2x32xf32>
    %224 = math.tanh %222 : vector<2x32xf32>
    %225 = arith.mulf %223, %224 : vector<2x32xf32>
    %226 = vector.extract_strided_slice %23 {offsets = [0, 5, 0], sizes = [2, 1, 128], strides = [1, 1, 1]} : vector<2x8x128xf32> to vector<2x1x128xf32>
    %227 = vector.shape_cast %226 : vector<2x1x128xf32> to vector<2x128xf32>
    %228 = vector.extract_strided_slice %207 {offsets = [0, 0], sizes = [2, 128], strides = [1, 1]} : vector<2x256xf32> to vector<2x128xf32>
    %229 = arith.addf %227, %228 : vector<2x128xf32>
    %230 = arith.negf %229 : vector<2x128xf32>
    %231 = math.exp %230 : vector<2x128xf32>
    %cst_39 = arith.constant 1.000000e+00 : f32
    %232 = vector.broadcast %cst_39 : f32 to vector<2x128xf32>
    %233 = arith.addf %232, %231 : vector<2x128xf32>
    %234 = arith.divf %232, %233 : vector<2x128xf32>
    %235 = math.tanh %229 : vector<2x128xf32>
    %236 = vector.extract_strided_slice %234 {offsets = [0, 32], sizes = [2, 32], strides = [1, 1]} : vector<2x128xf32> to vector<2x32xf32>
    %237 = arith.mulf %236, %201 : vector<2x32xf32>
    %238 = vector.extract_strided_slice %234 {offsets = [0, 0], sizes = [2, 32], strides = [1, 1]} : vector<2x128xf32> to vector<2x32xf32>
    %239 = vector.extract_strided_slice %235 {offsets = [0, 64], sizes = [2, 32], strides = [1, 1]} : vector<2x128xf32> to vector<2x32xf32>
    %240 = arith.mulf %238, %239 : vector<2x32xf32>
    %241 = arith.addf %237, %240 : vector<2x32xf32>
    %242 = vector.extract_strided_slice %234 {offsets = [0, 96], sizes = [2, 32], strides = [1, 1]} : vector<2x128xf32> to vector<2x32xf32>
    %243 = math.tanh %241 : vector<2x32xf32>
    %244 = arith.mulf %242, %243 : vector<2x32xf32>
    %245 = tpu.concatenate %244, %225 in 1 : vector<2x32xf32>, vector<2x32xf32> -> vector<2x64xf32>
    %246 = arith.truncf %245 : vector<2x64xf32> to vector<2x64xbf16>
    %cst_40 = arith.constant dense<0.000000e+00> : vector<2x256xf32>
    %247 = tpu.matmul %246, %24, %cst_40 {dimension_numbers = #tpu.dot_dimension_numbers<[1], [0], [0], [1], [0, 0, 1, 1], [], []>} : vector<2x64xbf16>, vector<64x256xbf16>, vector<2x256xf32> -> vector<2x256xf32>
    %248 = vector.extract_strided_slice %247 {offsets = [0, 128], sizes = [2, 128], strides = [1, 1]} : vector<2x256xf32> to vector<2x128xf32>
    %249 = vector.broadcast %4 : vector<1x128xf32> to vector<2x128xf32>
    %250 = arith.addf %248, %249 : vector<2x128xf32>
    %251 = arith.negf %250 : vector<2x128xf32>
    %252 = math.exp %251 : vector<2x128xf32>
    %cst_41 = arith.constant 1.000000e+00 : f32
    %253 = vector.broadcast %cst_41 : f32 to vector<2x128xf32>
    %254 = arith.addf %253, %252 : vector<2x128xf32>
    %255 = arith.divf %253, %254 : vector<2x128xf32>
    %256 = math.tanh %250 : vector<2x128xf32>
    %257 = vector.extract_strided_slice %255 {offsets = [0, 32], sizes = [2, 32], strides = [1, 1]} : vector<2x128xf32> to vector<2x32xf32>
    %258 = arith.mulf %257, %222 : vector<2x32xf32>
    %259 = vector.extract_strided_slice %255 {offsets = [0, 0], sizes = [2, 32], strides = [1, 1]} : vector<2x128xf32> to vector<2x32xf32>
    %260 = vector.extract_strided_slice %256 {offsets = [0, 64], sizes = [2, 32], strides = [1, 1]} : vector<2x128xf32> to vector<2x32xf32>
    %261 = arith.mulf %259, %260 : vector<2x32xf32>
    %262 = arith.addf %258, %261 : vector<2x32xf32>
    %263 = vector.extract_strided_slice %255 {offsets = [0, 96], sizes = [2, 32], strides = [1, 1]} : vector<2x128xf32> to vector<2x32xf32>
    %264 = math.tanh %262 : vector<2x32xf32>
    %265 = arith.mulf %263, %264 : vector<2x32xf32>
    %266 = vector.extract_strided_slice %23 {offsets = [0, 6, 0], sizes = [2, 1, 128], strides = [1, 1, 1]} : vector<2x8x128xf32> to vector<2x1x128xf32>
    %267 = vector.shape_cast %266 : vector<2x1x128xf32> to vector<2x128xf32>
    %268 = vector.extract_strided_slice %247 {offsets = [0, 0], sizes = [2, 128], strides = [1, 1]} : vector<2x256xf32> to vector<2x128xf32>
    %269 = arith.addf %267, %268 : vector<2x128xf32>
    %270 = arith.negf %269 : vector<2x128xf32>
    %271 = math.exp %270 : vector<2x128xf32>
    %cst_42 = arith.constant 1.000000e+00 : f32
    %272 = vector.broadcast %cst_42 : f32 to vector<2x128xf32>
    %273 = arith.addf %272, %271 : vector<2x128xf32>
    %274 = arith.divf %272, %273 : vector<2x128xf32>
    %275 = math.tanh %269 : vector<2x128xf32>
    %276 = vector.extract_strided_slice %274 {offsets = [0, 32], sizes = [2, 32], strides = [1, 1]} : vector<2x128xf32> to vector<2x32xf32>
    %277 = arith.mulf %276, %241 : vector<2x32xf32>
    %278 = vector.extract_strided_slice %274 {offsets = [0, 0], sizes = [2, 32], strides = [1, 1]} : vector<2x128xf32> to vector<2x32xf32>
    %279 = vector.extract_strided_slice %275 {offsets = [0, 64], sizes = [2, 32], strides = [1, 1]} : vector<2x128xf32> to vector<2x32xf32>
    %280 = arith.mulf %278, %279 : vector<2x32xf32>
    %281 = arith.addf %277, %280 : vector<2x32xf32>
    %282 = vector.extract_strided_slice %274 {offsets = [0, 96], sizes = [2, 32], strides = [1, 1]} : vector<2x128xf32> to vector<2x32xf32>
    %283 = math.tanh %281 : vector<2x32xf32>
    %284 = arith.mulf %282, %283 : vector<2x32xf32>
    %285 = tpu.concatenate %284, %265 in 1 : vector<2x32xf32>, vector<2x32xf32> -> vector<2x64xf32>
    %286 = arith.truncf %285 : vector<2x64xf32> to vector<2x64xbf16>
    %cst_43 = arith.constant dense<0.000000e+00> : vector<2x256xf32>
    %287 = tpu.matmul %286, %24, %cst_43 {dimension_numbers = #tpu.dot_dimension_numbers<[1], [0], [0], [1], [0, 0, 1, 1], [], []>} : vector<2x64xbf16>, vector<64x256xbf16>, vector<2x256xf32> -> vector<2x256xf32>
    %288 = vector.extract_strided_slice %287 {offsets = [0, 128], sizes = [2, 128], strides = [1, 1]} : vector<2x256xf32> to vector<2x128xf32>
    %289 = vector.broadcast %4 : vector<1x128xf32> to vector<2x128xf32>
    %290 = arith.addf %288, %289 : vector<2x128xf32>
    %291 = arith.negf %290 : vector<2x128xf32>
    %292 = math.exp %291 : vector<2x128xf32>
    %cst_44 = arith.constant 1.000000e+00 : f32
    %293 = vector.broadcast %cst_44 : f32 to vector<2x128xf32>
    %294 = arith.addf %293, %292 : vector<2x128xf32>
    %295 = arith.divf %293, %294 : vector<2x128xf32>
    %296 = math.tanh %290 : vector<2x128xf32>
    %297 = vector.extract_strided_slice %295 {offsets = [0, 32], sizes = [2, 32], strides = [1, 1]} : vector<2x128xf32> to vector<2x32xf32>
    %298 = arith.mulf %297, %262 : vector<2x32xf32>
    %299 = vector.extract_strided_slice %295 {offsets = [0, 0], sizes = [2, 32], strides = [1, 1]} : vector<2x128xf32> to vector<2x32xf32>
    %300 = vector.extract_strided_slice %296 {offsets = [0, 64], sizes = [2, 32], strides = [1, 1]} : vector<2x128xf32> to vector<2x32xf32>
    %301 = arith.mulf %299, %300 : vector<2x32xf32>
    %302 = arith.addf %298, %301 : vector<2x32xf32>
    %303 = vector.extract_strided_slice %295 {offsets = [0, 96], sizes = [2, 32], strides = [1, 1]} : vector<2x128xf32> to vector<2x32xf32>
    %304 = math.tanh %302 : vector<2x32xf32>
    %305 = arith.mulf %303, %304 : vector<2x32xf32>
    %306 = vector.extract_strided_slice %23 {offsets = [0, 7, 0], sizes = [2, 1, 128], strides = [1, 1, 1]} : vector<2x8x128xf32> to vector<2x1x128xf32>
    %307 = vector.shape_cast %306 : vector<2x1x128xf32> to vector<2x128xf32>
    %308 = vector.extract_strided_slice %287 {offsets = [0, 0], sizes = [2, 128], strides = [1, 1]} : vector<2x256xf32> to vector<2x128xf32>
    %309 = arith.addf %307, %308 : vector<2x128xf32>
    %310 = arith.negf %309 : vector<2x128xf32>
    %311 = math.exp %310 : vector<2x128xf32>
    %cst_45 = arith.constant 1.000000e+00 : f32
    %312 = vector.broadcast %cst_45 : f32 to vector<2x128xf32>
    %313 = arith.addf %312, %311 : vector<2x128xf32>
    %314 = arith.divf %312, %313 : vector<2x128xf32>
    %315 = math.tanh %309 : vector<2x128xf32>
    %316 = vector.extract_strided_slice %314 {offsets = [0, 32], sizes = [2, 32], strides = [1, 1]} : vector<2x128xf32> to vector<2x32xf32>
    %317 = arith.mulf %316, %281 : vector<2x32xf32>
    %318 = vector.extract_strided_slice %314 {offsets = [0, 0], sizes = [2, 32], strides = [1, 1]} : vector<2x128xf32> to vector<2x32xf32>
    %319 = vector.extract_strided_slice %315 {offsets = [0, 64], sizes = [2, 32], strides = [1, 1]} : vector<2x128xf32> to vector<2x32xf32>
    %320 = arith.mulf %318, %319 : vector<2x32xf32>
    %321 = arith.addf %317, %320 : vector<2x32xf32>
    %322 = vector.extract_strided_slice %314 {offsets = [0, 96], sizes = [2, 32], strides = [1, 1]} : vector<2x128xf32> to vector<2x32xf32>
    %323 = math.tanh %321 : vector<2x32xf32>
    %324 = arith.mulf %322, %323 : vector<2x32xf32>
    %325 = tpu.concatenate %324, %305 in 1 : vector<2x32xf32>, vector<2x32xf32> -> vector<2x64xf32>
    %326 = arith.truncf %325 : vector<2x64xf32> to vector<2x64xbf16>
    %cst_46 = arith.constant dense<0.000000e+00> : vector<2x256xf32>
    %327 = tpu.matmul %326, %24, %cst_46 {dimension_numbers = #tpu.dot_dimension_numbers<[1], [0], [0], [1], [0, 0, 1, 1], [], []>} : vector<2x64xbf16>, vector<64x256xbf16>, vector<2x256xf32> -> vector<2x256xf32>
    %328 = vector.extract_strided_slice %327 {offsets = [0, 128], sizes = [2, 128], strides = [1, 1]} : vector<2x256xf32> to vector<2x128xf32>
    %329 = vector.broadcast %4 : vector<1x128xf32> to vector<2x128xf32>
    %330 = arith.addf %328, %329 : vector<2x128xf32>
    %331 = arith.negf %330 : vector<2x128xf32>
    %332 = math.exp %331 : vector<2x128xf32>
    %cst_47 = arith.constant 1.000000e+00 : f32
    %333 = vector.broadcast %cst_47 : f32 to vector<2x128xf32>
    %334 = arith.addf %333, %332 : vector<2x128xf32>
    %335 = arith.divf %333, %334 : vector<2x128xf32>
    %336 = math.tanh %330 : vector<2x128xf32>
    %337 = vector.extract_strided_slice %335 {offsets = [0, 32], sizes = [2, 32], strides = [1, 1]} : vector<2x128xf32> to vector<2x32xf32>
    %338 = arith.mulf %337, %302 : vector<2x32xf32>
    %339 = vector.extract_strided_slice %335 {offsets = [0, 0], sizes = [2, 32], strides = [1, 1]} : vector<2x128xf32> to vector<2x32xf32>
    %340 = vector.extract_strided_slice %336 {offsets = [0, 64], sizes = [2, 32], strides = [1, 1]} : vector<2x128xf32> to vector<2x32xf32>
    %341 = arith.mulf %339, %340 : vector<2x32xf32>
    %342 = arith.addf %338, %341 : vector<2x32xf32>
    %343 = vector.extract_strided_slice %335 {offsets = [0, 96], sizes = [2, 32], strides = [1, 1]} : vector<2x128xf32> to vector<2x32xf32>
    %344 = math.tanh %342 : vector<2x32xf32>
    %345 = arith.mulf %343, %344 : vector<2x32xf32>
    %346 = vector.shape_cast %65 : vector<2x32xf32> to vector<2x1x32xf32>
    %347 = vector.shape_cast %105 : vector<2x32xf32> to vector<2x1x32xf32>
    %348 = vector.shape_cast %145 : vector<2x32xf32> to vector<2x1x32xf32>
    %349 = vector.shape_cast %185 : vector<2x32xf32> to vector<2x1x32xf32>
    %350 = vector.shape_cast %225 : vector<2x32xf32> to vector<2x1x32xf32>
    %351 = vector.shape_cast %265 : vector<2x32xf32> to vector<2x1x32xf32>
    %352 = vector.shape_cast %305 : vector<2x32xf32> to vector<2x1x32xf32>
    %353 = vector.shape_cast %345 : vector<2x32xf32> to vector<2x1x32xf32>
    %354 = tpu.concatenate %346, %347, %348, %349, %350, %351, %352, %353 in 1 : vector<2x1x32xf32>, vector<2x1x32xf32>, vector<2x1x32xf32>, vector<2x1x32xf32>, vector<2x1x32xf32>, vector<2x1x32xf32>, vector<2x1x32xf32>, vector<2x1x32xf32> -> vector<2x8x32xf32>
    %355 = vector.shape_cast %354 : vector<2x8x32xf32> to vector<16x32xf32>
    %cst_48 = arith.constant dense<0.000000e+00> : vector<16x96xf32>
    %356 = tpu.matmul %355, %5, %cst_48 {dimension_numbers = #tpu.dot_dimension_numbers<[1], [0], [0], [1], [0, 0, 1, 1], [], []>} : vector<16x32xf32>, vector<32x96xf32>, vector<16x96xf32> -> vector<16x96xf32>
    %357 = vector.broadcast %6 : vector<1x96xf32> to vector<16x96xf32>
    %358 = arith.addf %356, %357 : vector<16x96xf32>
    %359 = vector.extract_strided_slice %358 {offsets = [0, 0], sizes = [16, 8], strides = [1, 1]} : vector<16x96xf32> to vector<16x8xf32>
    %360 = vector.shape_cast %359 : vector<16x8xf32> to vector<2x8x8xf32>
    %361 = vector.extract_strided_slice %358 {offsets = [0, 32], sizes = [16, 8], strides = [1, 1]} : vector<16x96xf32> to vector<16x8xf32>
    %362 = vector.shape_cast %361 : vector<16x8xf32> to vector<2x8x8xf32>
    %363 = vector.extract_strided_slice %358 {offsets = [0, 64], sizes = [16, 8], strides = [1, 1]} : vector<16x96xf32> to vector<16x8xf32>
    %364 = vector.shape_cast %363 : vector<16x8xf32> to vector<2x8x8xf32>
    "tpu.trace_start"() <{level = 10 : i32, message = "bqd,bkd->bqk"}> : () -> ()
    %cst_49 = arith.constant dense<0.000000e+00> : vector<2x8x8xf32>
    %365 = tpu.matmul %360, %362, %cst_49 {dimension_numbers = #tpu.dot_dimension_numbers<[2], [2], [1], [1], [0, 0, 0, 1, 1, 1], [0], [0]>} : vector<2x8x8xf32>, vector<2x8x8xf32>, vector<2x8x8xf32> -> vector<2x8x8xf32>
    "tpu.trace_stop"() : () -> ()
    %cst_50 = arith.constant dense<0xFF800000> : vector<2x8xf32>
    %366 = vector.multi_reduction <maximumf>, %365, %cst_50 [2] : vector<2x8x8xf32> to vector<2x8xf32>
    %cst_51 = arith.constant 0xFF800000 : f32
    %367 = vector.broadcast %cst_51 : f32 to vector<2x8xf32>
    %368 = arith.maximumf %367, %366 : vector<2x8xf32>
    %369 = vector.shape_cast %368 : vector<2x8xf32> to vector<2x8x1xf32>
    %370 = vector.broadcast %369 : vector<2x8x1xf32> to vector<2x8x8xf32>
    %371 = arith.subf %365, %370 : vector<2x8x8xf32>
    %372 = math.exp %371 : vector<2x8x8xf32>
    %cst_52 = arith.constant dense<0.000000e+00> : vector<2x8xf32>
    %373 = vector.multi_reduction <add>, %372, %cst_52 [2] : vector<2x8x8xf32> to vector<2x8xf32>
    %374 = vector.shape_cast %373 : vector<2x8xf32> to vector<2x8x1xf32>
    %375 = vector.broadcast %374 : vector<2x8x1xf32> to vector<2x8x8xf32>
    %376 = arith.divf %372, %375 : vector<2x8x8xf32>
    "tpu.trace_start"() <{level = 10 : i32, message = "bqk,bkd->bqd"}> : () -> ()
    %cst_53 = arith.constant dense<0.000000e+00> : vector<2x8x8xf32>
    %377 = tpu.matmul %376, %364, %cst_53 {dimension_numbers = #tpu.dot_dimension_numbers<[2], [1], [1], [2], [0, 0, 0, 1, 1, 2], [0], [0]>} : vector<2x8x8xf32>, vector<2x8x8xf32>, vector<2x8x8xf32> -> vector<2x8x8xf32>
    "tpu.trace_stop"() : () -> ()
    %378 = vector.extract_strided_slice %358 {offsets = [0, 8], sizes = [16, 8], strides = [1, 1]} : vector<16x96xf32> to vector<16x8xf32>
    %379 = vector.shape_cast %378 : vector<16x8xf32> to vector<2x8x8xf32>
    %380 = vector.extract_strided_slice %358 {offsets = [0, 40], sizes = [16, 8], strides = [1, 1]} : vector<16x96xf32> to vector<16x8xf32>
    %381 = vector.shape_cast %380 : vector<16x8xf32> to vector<2x8x8xf32>
    %382 = vector.extract_strided_slice %358 {offsets = [0, 72], sizes = [16, 8], strides = [1, 1]} : vector<16x96xf32> to vector<16x8xf32>
    %383 = vector.shape_cast %382 : vector<16x8xf32> to vector<2x8x8xf32>
    "tpu.trace_start"() <{level = 10 : i32, message = "bqd,bkd->bqk"}> : () -> ()
    %cst_54 = arith.constant dense<0.000000e+00> : vector<2x8x8xf32>
    %384 = tpu.matmul %379, %381, %cst_54 {dimension_numbers = #tpu.dot_dimension_numbers<[2], [2], [1], [1], [0, 0, 0, 1, 1, 1], [0], [0]>} : vector<2x8x8xf32>, vector<2x8x8xf32>, vector<2x8x8xf32> -> vector<2x8x8xf32>
    "tpu.trace_stop"() : () -> ()
    %cst_55 = arith.constant dense<0xFF800000> : vector<2x8xf32>
    %385 = vector.multi_reduction <maximumf>, %384, %cst_55 [2] : vector<2x8x8xf32> to vector<2x8xf32>
    %cst_56 = arith.constant 0xFF800000 : f32
    %386 = vector.broadcast %cst_56 : f32 to vector<2x8xf32>
    %387 = arith.maximumf %386, %385 : vector<2x8xf32>
    %388 = vector.shape_cast %387 : vector<2x8xf32> to vector<2x8x1xf32>
    %389 = vector.broadcast %388 : vector<2x8x1xf32> to vector<2x8x8xf32>
    %390 = arith.subf %384, %389 : vector<2x8x8xf32>
    %391 = math.exp %390 : vector<2x8x8xf32>
    %cst_57 = arith.constant dense<0.000000e+00> : vector<2x8xf32>
    %392 = vector.multi_reduction <add>, %391, %cst_57 [2] : vector<2x8x8xf32> to vector<2x8xf32>
    %393 = vector.shape_cast %392 : vector<2x8xf32> to vector<2x8x1xf32>
    %394 = vector.broadcast %393 : vector<2x8x1xf32> to vector<2x8x8xf32>
    %395 = arith.divf %391, %394 : vector<2x8x8xf32>
    %396 = arith.addf %376, %395 : vector<2x8x8xf32>
    "tpu.trace_start"() <{level = 10 : i32, message = "bqk,bkd->bqd"}> : () -> ()
    %cst_58 = arith.constant dense<0.000000e+00> : vector<2x8x8xf32>
    %397 = tpu.matmul %395, %383, %cst_58 {dimension_numbers = #tpu.dot_dimension_numbers<[2], [1], [1], [2], [0, 0, 0, 1, 1, 2], [0], [0]>} : vector<2x8x8xf32>, vector<2x8x8xf32>, vector<2x8x8xf32> -> vector<2x8x8xf32>
    "tpu.trace_stop"() : () -> ()
    %398 = vector.extract_strided_slice %358 {offsets = [0, 16], sizes = [16, 8], strides = [1, 1]} : vector<16x96xf32> to vector<16x8xf32>
    %399 = vector.shape_cast %398 : vector<16x8xf32> to vector<2x8x8xf32>
    %400 = vector.extract_strided_slice %358 {offsets = [0, 48], sizes = [16, 8], strides = [1, 1]} : vector<16x96xf32> to vector<16x8xf32>
    %401 = vector.shape_cast %400 : vector<16x8xf32> to vector<2x8x8xf32>
    %402 = vector.extract_strided_slice %358 {offsets = [0, 80], sizes = [16, 8], strides = [1, 1]} : vector<16x96xf32> to vector<16x8xf32>
    %403 = vector.shape_cast %402 : vector<16x8xf32> to vector<2x8x8xf32>
    "tpu.trace_start"() <{level = 10 : i32, message = "bqd,bkd->bqk"}> : () -> ()
    %cst_59 = arith.constant dense<0.000000e+00> : vector<2x8x8xf32>
    %404 = tpu.matmul %399, %401, %cst_59 {dimension_numbers = #tpu.dot_dimension_numbers<[2], [2], [1], [1], [0, 0, 0, 1, 1, 1], [0], [0]>} : vector<2x8x8xf32>, vector<2x8x8xf32>, vector<2x8x8xf32> -> vector<2x8x8xf32>
    "tpu.trace_stop"() : () -> ()
    %cst_60 = arith.constant dense<0xFF800000> : vector<2x8xf32>
    %405 = vector.multi_reduction <maximumf>, %404, %cst_60 [2] : vector<2x8x8xf32> to vector<2x8xf32>
    %cst_61 = arith.constant 0xFF800000 : f32
    %406 = vector.broadcast %cst_61 : f32 to vector<2x8xf32>
    %407 = arith.maximumf %406, %405 : vector<2x8xf32>
    %408 = vector.shape_cast %407 : vector<2x8xf32> to vector<2x8x1xf32>
    %409 = vector.broadcast %408 : vector<2x8x1xf32> to vector<2x8x8xf32>
    %410 = arith.subf %404, %409 : vector<2x8x8xf32>
    %411 = math.exp %410 : vector<2x8x8xf32>
    %cst_62 = arith.constant dense<0.000000e+00> : vector<2x8xf32>
    %412 = vector.multi_reduction <add>, %411, %cst_62 [2] : vector<2x8x8xf32> to vector<2x8xf32>
    %413 = vector.shape_cast %412 : vector<2x8xf32> to vector<2x8x1xf32>
    %414 = vector.broadcast %413 : vector<2x8x1xf32> to vector<2x8x8xf32>
    %415 = arith.divf %411, %414 : vector<2x8x8xf32>
    %416 = arith.addf %396, %415 : vector<2x8x8xf32>
    "tpu.trace_start"() <{level = 10 : i32, message = "bqk,bkd->bqd"}> : () -> ()
    %cst_63 = arith.constant dense<0.000000e+00> : vector<2x8x8xf32>
    %417 = tpu.matmul %415, %403, %cst_63 {dimension_numbers = #tpu.dot_dimension_numbers<[2], [1], [1], [2], [0, 0, 0, 1, 1, 2], [0], [0]>} : vector<2x8x8xf32>, vector<2x8x8xf32>, vector<2x8x8xf32> -> vector<2x8x8xf32>
    "tpu.trace_stop"() : () -> ()
    %418 = vector.extract_strided_slice %358 {offsets = [0, 24], sizes = [16, 8], strides = [1, 1]} : vector<16x96xf32> to vector<16x8xf32>
    %419 = vector.shape_cast %418 : vector<16x8xf32> to vector<2x8x8xf32>
    %420 = vector.extract_strided_slice %358 {offsets = [0, 56], sizes = [16, 8], strides = [1, 1]} : vector<16x96xf32> to vector<16x8xf32>
    %421 = vector.shape_cast %420 : vector<16x8xf32> to vector<2x8x8xf32>
    %422 = vector.extract_strided_slice %358 {offsets = [0, 88], sizes = [16, 8], strides = [1, 1]} : vector<16x96xf32> to vector<16x8xf32>
    %423 = vector.shape_cast %422 : vector<16x8xf32> to vector<2x8x8xf32>
    "tpu.trace_start"() <{level = 10 : i32, message = "bqd,bkd->bqk"}> : () -> ()
    %cst_64 = arith.constant dense<0.000000e+00> : vector<2x8x8xf32>
    %424 = tpu.matmul %419, %421, %cst_64 {dimension_numbers = #tpu.dot_dimension_numbers<[2], [2], [1], [1], [0, 0, 0, 1, 1, 1], [0], [0]>} : vector<2x8x8xf32>, vector<2x8x8xf32>, vector<2x8x8xf32> -> vector<2x8x8xf32>
    "tpu.trace_stop"() : () -> ()
    %cst_65 = arith.constant dense<0xFF800000> : vector<2x8xf32>
    %425 = vector.multi_reduction <maximumf>, %424, %cst_65 [2] : vector<2x8x8xf32> to vector<2x8xf32>
    %cst_66 = arith.constant 0xFF800000 : f32
    %426 = vector.broadcast %cst_66 : f32 to vector<2x8xf32>
    %427 = arith.maximumf %426, %425 : vector<2x8xf32>
    %428 = vector.shape_cast %427 : vector<2x8xf32> to vector<2x8x1xf32>
    %429 = vector.broadcast %428 : vector<2x8x1xf32> to vector<2x8x8xf32>
    %430 = arith.subf %424, %429 : vector<2x8x8xf32>
    %431 = math.exp %430 : vector<2x8x8xf32>
    %cst_67 = arith.constant dense<0.000000e+00> : vector<2x8xf32>
    %432 = vector.multi_reduction <add>, %431, %cst_67 [2] : vector<2x8x8xf32> to vector<2x8xf32>
    %433 = vector.shape_cast %432 : vector<2x8xf32> to vector<2x8x1xf32>
    %434 = vector.broadcast %433 : vector<2x8x1xf32> to vector<2x8x8xf32>
    %435 = arith.divf %431, %434 : vector<2x8x8xf32>
    %436 = arith.addf %416, %435 : vector<2x8x8xf32>
    "tpu.trace_start"() <{level = 10 : i32, message = "bqk,bkd->bqd"}> : () -> ()
    %cst_68 = arith.constant dense<0.000000e+00> : vector<2x8x8xf32>
    %437 = tpu.matmul %435, %423, %cst_68 {dimension_numbers = #tpu.dot_dimension_numbers<[2], [1], [1], [2], [0, 0, 0, 1, 1, 2], [0], [0]>} : vector<2x8x8xf32>, vector<2x8x8xf32>, vector<2x8x8xf32> -> vector<2x8x8xf32>
    "tpu.trace_stop"() : () -> ()
    %cst_69 = arith.constant 2.500000e-01 : f32
    %438 = vector.broadcast %cst_69 : f32 to vector<2x8x8xf32>
    %439 = arith.mulf %436, %438 : vector<2x8x8xf32>
    %440 = tpu.concatenate %377, %397, %417, %437 in 2 : vector<2x8x8xf32>, vector<2x8x8xf32>, vector<2x8x8xf32>, vector<2x8x8xf32> -> vector<2x8x32xf32>
    %441 = vector.shape_cast %440 : vector<2x8x32xf32> to vector<16x32xf32>
    %cst_70 = arith.constant dense<0.000000e+00> : vector<16x32xf32>
    %442 = tpu.matmul %441, %7, %cst_70 {dimension_numbers = #tpu.dot_dimension_numbers<[1], [0], [0], [1], [0, 0, 1, 1], [], []>} : vector<16x32xf32>, vector<32x32xf32>, vector<16x32xf32> -> vector<16x32xf32>
    %443 = vector.broadcast %8 : vector<1x32xf32> to vector<16x32xf32>
    %444 = arith.addf %442, %443 : vector<16x32xf32>
    %445 = vector.shape_cast %444 : vector<16x32xf32> to vector<2x8x32xf32>
    %446 = vector.extract_strided_slice %445 {offsets = [0, 7, 0], sizes = [2, 1, 32], strides = [1, 1, 1]} : vector<2x8x32xf32> to vector<2x1x32xf32>
    %447 = vector.shape_cast %446 : vector<2x1x32xf32> to vector<2x32xf32>
    %448 = tpu.concatenate %345, %447 in 1 : vector<2x32xf32>, vector<2x32xf32> -> vector<2x64xf32>
    %cst_71 = arith.constant dense<0.000000e+00> : vector<2x64xf32>
    %449 = tpu.matmul %448, %9, %cst_71 {dimension_numbers = #tpu.dot_dimension_numbers<[1], [0], [0], [1], [0, 0, 1, 1], [], []>} : vector<2x64xf32>, vector<64x64xf32>, vector<2x64xf32> -> vector<2x64xf32>
    %450 = vector.broadcast %10 : vector<1x64xf32> to vector<2x64xf32>
    %451 = arith.addf %449, %450 : vector<2x64xf32>
    %452 = arith.negf %451 : vector<2x64xf32>
    %453 = math.exp %452 : vector<2x64xf32>
    %cst_72 = arith.constant 1.000000e+00 : f32
    %454 = vector.broadcast %cst_72 : f32 to vector<2x64xf32>
    %455 = arith.addf %454, %453 : vector<2x64xf32>
    %456 = arith.divf %454, %455 : vector<2x64xf32>
    %457 = vector.extract_strided_slice %456 {offsets = [0, 0], sizes = [2, 32], strides = [1, 1]} : vector<2x64xf32> to vector<2x32xf32>
    %458 = arith.mulf %457, %345 : vector<2x32xf32>
    %459 = vector.extract_strided_slice %456 {offsets = [0, 32], sizes = [2, 32], strides = [1, 1]} : vector<2x64xf32> to vector<2x32xf32>
    %460 = arith.mulf %459, %447 : vector<2x32xf32>
    %461 = arith.addf %458, %460 : vector<2x32xf32>
    %cst_73 = arith.constant dense<0.000000e+00> : vector<2x64xf32>
    %462 = tpu.matmul %461, %11, %cst_73 {dimension_numbers = #tpu.dot_dimension_numbers<[1], [0], [0], [1], [0, 0, 1, 1], [], []>} : vector<2x32xf32>, vector<32x64xf32>, vector<2x64xf32> -> vector<2x64xf32>
    %463 = vector.broadcast %12 : vector<1x64xf32> to vector<2x64xf32>
    %464 = arith.addf %462, %463 : vector<2x64xf32>
    %cst_74 = arith.constant 0.000000e+00 : f32
    %465 = vector.broadcast %cst_74 : f32 to vector<2x64xf32>
    %466 = arith.maximumf %464, %465 : vector<2x64xf32>
    %cst_75 = arith.constant dense<0.000000e+00> : vector<2x6xf32>
    %467 = tpu.matmul %466, %13, %cst_75 {dimension_numbers = #tpu.dot_dimension_numbers<[1], [0], [0], [1], [0, 0, 1, 1], [], []>} : vector<2x64xf32>, vector<64x6xf32>, vector<2x6xf32> -> vector<2x6xf32>
    %468 = vector.broadcast %14 : vector<1x6xf32> to vector<2x6xf32>
    %469 = arith.addf %467, %468 : vector<2x6xf32>
    %470 = vector.extract_strided_slice %469 {offsets = [0, 0], sizes = [2, 3], strides = [1, 1]} : vector<2x6xf32> to vector<2x3xf32>
    %471 = vector.extract_strided_slice %469 {offsets = [0, 3], sizes = [2, 3], strides = [1, 1]} : vector<2x6xf32> to vector<2x3xf32>
    %cst_76 = arith.constant dense<0xFF800000> : vector<2xf32>
    %472 = vector.multi_reduction <maximumf>, %471, %cst_76 [1] : vector<2x3xf32> to vector<2xf32>
    %cst_77 = arith.constant 0xFF800000 : f32
    %473 = vector.broadcast %cst_77 : f32 to vector<2xf32>
    %474 = arith.maximumf %473, %472 : vector<2xf32>
    %475 = vector.shape_cast %474 : vector<2xf32> to vector<2x1xf32>
    %476 = vector.broadcast %475 : vector<2x1xf32> to vector<2x3xf32>
    %477 = arith.subf %471, %476 : vector<2x3xf32>
    %478 = math.exp %477 : vector<2x3xf32>
    %cst_78 = arith.constant dense<0.000000e+00> : vector<2xf32>
    %479 = vector.multi_reduction <add>, %478, %cst_78 [1] : vector<2x3xf32> to vector<2xf32>
    %480 = vector.shape_cast %479 : vector<2xf32> to vector<2x1xf32>
    %481 = vector.broadcast %480 : vector<2x1xf32> to vector<2x3xf32>
    %482 = arith.divf %478, %481 : vector<2x3xf32>
    %483 = vector.shape_cast %439 : vector<2x8x8xf32> to vector<2x64xf32>
    %cst_79 = arith.constant 0.000000e+00 : f32
    %484 = vector.broadcast %cst_79 : f32 to vector<2x26xf32>
    %485 = tpu.concatenate %461, %482, %470, %483, %484 in 1 : vector<2x32xf32>, vector<2x3xf32>, vector<2x3xf32>, vector<2x64xf32>, vector<2x26xf32> -> vector<2x128xf32>
    %c0_80 = arith.constant 0 : index
    %c0_81 = arith.constant 0 : index
    %486 = vector.load %arg4[%c0_80, %c0_81] : memref<2x128xf32, #tpu.memory_space<vmem>>, vector<2x128xf32>
    tpu.vector_store %arg4[%c0_80, %c0_81], %485 {strides = array<i32>} : memref<2x128xf32, #tpu.memory_space<vmem>>, vector<2x128xf32>,
    return
  }
  func.func @transform_0(%arg0: i32) -> (i32, i32, i32) {
    %c0_i32 = arith.constant 0 : i32
    %c0_i32_0 = arith.constant 0 : i32
    %c0_i32_1 = arith.constant 0 : i32
    %c0_i32_2 = arith.constant 0 : i32
    return %c0_i32, %c0_i32_0, %c0_i32_1 : i32, i32, i32
  }
  func.func @transform_1(%arg0: i32) -> (i32, i32) {
    %c0_i32 = arith.constant 0 : i32
    %c0_i32_0 = arith.constant 0 : i32
    %c0_i32_1 = arith.constant 0 : i32
    return %c0_i32, %c0_i32_0 : i32, i32
  }
  func.func @transform_2(%arg0: i32) -> (i32, i32) {
    %c0_i32 = arith.constant 0 : i32
    %c0_i32_0 = arith.constant 0 : i32
    %c0_i32_1 = arith.constant 0 : i32
    return %c0_i32, %c0_i32_0 : i32, i32
  }
  func.func @transform_3(%arg0: i32) -> (i32, i32) {
    %c0_i32 = arith.constant 0 : i32
    %c0_i32_0 = arith.constant 0 : i32
    %c0_i32_1 = arith.constant 0 : i32
    return %c0_i32, %c0_i32_0 : i32, i32
  }
}

</mosaic_0001>

<bundles_post_ra>
// kernel: tpu_custom_call.1
= control target key start
LH: loop header
LB: loop body
LE: loop exit
PB: predicated region body
PF: predicated region fallthrough
CT: control target
= control target key end

     0   :  { %8 = vsyncpa [#allocation3], 0  ;;  %s5252_s0 = inlined_call_operand.hbm [shape: f32[2,8,16], index: 0, kind: input, shape index: {}]   ;;  %s5253_s1 = inlined_call_operand.hbm [shape: f32[336,128], index: 1, kind: input, shape index: {}]   ;;  %s5254_s2 = inlined_call_operand.hbm [shape: bf16[64,256], index: 2, kind: input, shape index: {}]   ;;  %s5255_s3 = inlined_call_operand.hbm [shape: f32[2,128], index: 3, kind: output, shape index: {}]  }
   0x1   :  { %9 = vsyncpa [#allocation6], 0 }
   0x2   :  { %10 = vsyncpa [#allocation4], 0  ;;  %s4491_s12 = smov [#allocation5]   ;;  %s4492_s14 = smov [#allocation2]  }
   0x3   :  { %s28_s13 = sshll.u32 %s4491_s12, 4  ;;  %s16_s15 = sshll.u32 %s4492_s14, 4  ;;  %s29_s13 = int_to_ptr.vmem [resolvable:$true] %s28_s13  ;;  %s4542_s15 = int_to_ptr.vmem [resolvable:$true] %s16_s15 }
   0x4   :  { %s4397_s18 = scalar_lea.hbm %s5253_s1, 5376 }
   0x5   :  { %p4398_p0 = scmp.ne.s32.totalorder %s5253_s1, %s4397_s18  ;;  %p4401_p1 = scmp.lt.u32.totalorder %s4397_s18, %s5253_s1 }
   0x7   :  { %p4403_p2 = pnand %p4401_p1, %p4398_p0 }
   0x9   :  { %4406 = shalt.err (!%p4403_p2)
}
   0xa   :  { %s4407_s23 = scalar_lea.vmem %s29_s13, 5376  ;;  %p4412_p4 = scmp.lt.s32.totalorder %s29_s13, %s29_s13 }
   0xb   :  { %p4408_p3 = scmp.ne.s32.totalorder %s29_s13, %s4407_s23  ;;  %p4413_p5 = scmp.lt.s32.totalorder %s4407_s23, %s4407_s23 }
   0xd   :  { %p4414_p6 = por %p4413_p5, %p4412_p4 }
   0xf   :  { %p4415_p7 = pnand %p4414_p6, %p4408_p3 }
  0x11   :  { %4418 = shalt.err (!%p4415_p7)
}
  0x12   :  { %s4493_s24 = smov 128   ;;  %s4494_s25 = smov 8  }
  0x13   :  { %34 = dma.hbm_to_vmem [thread:$0]  %s5253_s1, 5376, %s29_s13, [#allocation6], %s4493_s24, %s4493_s24, %s4494_s25  }
  0x14   :  { %s4419_s30 = scalar_lea.hbm %s5252_s0, 256 }
  0x15   :  { %p4420_p8 = scmp.ne.s32.totalorder %s5252_s0, %s4419_s30  ;;  %p4423_p9 = scmp.lt.u32.totalorder %s4419_s30, %s5252_s0 }
  0x17   :  { %p4425_p10 = pnand %p4423_p9, %p4420_p8 }
  0x19   :  { %4428 = shalt.err (!%p4425_p10)
}
  0x1a   :  { %s4429_s8 = scalar_lea.vmem %s4542_s15, 256  ;;  %p4434_p12 = scmp.lt.s32.totalorder %s4542_s15, %s4542_s15 }
  0x1b   :  { %p4430_p11 = scmp.ne.s32.totalorder %s4542_s15, %s4429_s8  ;;  %p4435_p13 = scmp.lt.s32.totalorder %s4429_s8, %s4429_s8 }
  0x1d   :  { %p4436_p0 = por %p4435_p13, %p4434_p12 }
  0x1f   :  { %p4437_p1 = pnand %p4436_p0, %p4430_p11 }
  0x21   :  { %4440 = shalt.err (!%p4437_p1)
}
  0x22   :  { %22 = dma.hbm_to_vmem [thread:$0]  %s5252_s0, 256, %s4542_s15, [#allocation3], %s4493_s24, %s4493_s24, %s4494_s25  }
  0x23   :  { %s4495_s10 = smov [#allocation7]   ;;  %s4441_s14 = scalar_lea.hbm %s5254_s2, 1024 }
  0x24   :  { %s40_s11 = sshll.u32 %s4495_s10, 4  ;;  %p4442_p2 = scmp.ne.s32.totalorder %s5254_s2, %s4441_s14  ;;  %s41_s11 = int_to_ptr.vmem [resolvable:$true] %s40_s11 }
  0x25   :  { %p4445_p3 = scmp.lt.u32.totalorder %s4441_s14, %s5254_s2 }
  0x27   :  { %p4447_p4 = pnand %p4445_p3, %p4442_p2 }
  0x29   :  { %4450 = shalt.err (!%p4447_p4)
}
  0x2a   :  { %s4451_s20 = scalar_lea.vmem %s41_s11, 1024  ;;  %p4456_p6 = scmp.lt.s32.totalorder %s41_s11, %s41_s11 }
  0x2b   :  { %p4452_p5 = scmp.ne.s32.totalorder %s41_s11, %s4451_s20  ;;  %p4457_p7 = scmp.lt.s32.totalorder %s4451_s20, %s4451_s20 }
  0x2d   :  { %p4458_p8 = por %p4457_p7, %p4456_p6 }
  0x2f   :  { %p4459_p9 = pnand %p4458_p8, %p4452_p5 }
  0x31   :  { %4462 = shalt.err (!%p4459_p9)
}
  0x32   :  { %46 = dma.hbm_to_vmem [thread:$0]  %s5254_s2, 1024, %s41_s11, [#allocation6], %s4493_s24, %s4493_s24, %s4494_s25  }
  0x33   :  { %4485 = dma.done.wait [#allocation3], 256  }
  0x34   :  { %4486 = vsyncadd [#allocation3], 4294967040 }
  0x35   :  { %4487 = dma.done.wait [#allocation6], 6400  }
  0x36   :  { %4488 = vsyncadd [#allocation6], 4294960896  ;;  %vm105_vm0 = vcmask 130048   ;;  %v57_v0 = vld [vmem:[#allocation5] sm:$0xff]  ;;  %v58_v1 = vld [vmem:[#allocation5 + $0x8] sm:$0xff]  ;;  %vm191_vm1 = vcmask 261120  }
  0x37   :  { %v99_v2 = vld [vmem:[#allocation2] sm:$0xff]  ;;  %v4051_v3 = vpack.c.bf16 %v58_v1, %v57_v0  ;;  %v60_v4 = vld [vmem:[#allocation5 + $0x18] sm:$0xff]  ;;  %v61_v5 = vld [vmem:[#allocation5 + $0x20] sm:$0xff]  ;;  %s4496_s2 = smov 64   ;;  %s4497_s21 = smov 32   ;;  %v4498_v51 = vmov 0  }
  0x38   :  { %3886 = vmatprep.mubr.msk.f32.mxu0 %vm105_vm0, %v99_v2  ;;  %v4055_v6 = vpack.c.bf16 %v61_v5, %v60_v4  ;;  %v100_v7 = vld [vmem:[#allocation2 + $0x8] sm:$0xff]  ;;  %v62_v8 = vld [vmem:[#allocation5 + $0x28] sm:$0xff]  ;;  %v63_v9 = vld [vmem:[#allocation5 + $0x30] sm:$0xff]  ;;  %vm332_vm2 = vcmask 1041409   ;;  %vm379_vm3 = vcmask 523264   ;;  %vm516_vm4 = vcmask 1042434  }
  0x39   :  { %4052 = vmatprep.subr.bf16.mxu0 %v4051_v3  ;;  %v4059_v10 = vpack.c.bf16 %v63_v9, %v62_v8  ;;  %v3721_v11 = vld [vmem:[#allocation5 + $0x10] ss:$0 sm:$0xff]  ;;  %v3724_v16 = vld [vmem:[#allocation5 + $0x38] ss:$0 sm:$0xff]  ;;  %v4616_v41 = vld [vmem:[#allocation7 + $0x4] ss:$8 sps:$4 sm:$0xff]  }
  0x3a   :  { %4054 = vmatpush3.bf16.msra.mxu0 %v4051_v3  ;;  %4056 = vmatprep.subr.bf16.mxu1 %v4055_v6  ;;  %v4618_v42 = vld [vmem:[#allocation7] ss:$8 sps:$4 sm:$0xff]   ;;  %v4620_v43 = vld [vmem:[#allocation7 + $0x14] ss:$8 sps:$4 sm:$0xff]   ;;  %v4625_v44 = vld [vmem:[#allocation7 + $0x10] ss:$8 sps:$4 sm:$0xff]  }
  0x3b   :  { %4058 = vmatpush3.bf16.msra.mxu1 %v4055_v6  ;;  %383 = vmatprep.subr.bf16.mxu0 %v4616_v41  ;;  %v4629_v45 = vld [vmem:[#allocation7 + $0x24] ss:$8 sps:$4 sm:$0xff]   ;;  %v4634_v47 = vld [vmem:[#allocation7 + $0x20] ss:$8 sps:$4 sm:$0xff]   ;;  %v4638_v48 = vld [vmem:[#allocation7 + $0x34] ss:$8 sps:$4 sm:$0xff]  }
  0x3c   :  { %4060 = vmatprep.subr.bf16.mxu1 %v4059_v10  ;;  %v4646_v50 = vld [vmem:[#allocation7 + $0x30] ss:$8 sps:$4 sm:$0xff]   ;;  %vm1754_vm5 = vcmask 1040384   ;;  %vm668_vm6 = vcmask 1043459   ;;  %vm1757_vm7 = vcmask 1041408   ;;  %vm815_vm8 = vcmask 1044484  }
  0x3d   :  { %3887 = vmatmul.mubr.msk.f32.vlgmr.msra.gmra.mrb[0].mxu0 %vm105_vm0, %v100_v7  ;;  %v4667_v61 = vld [vmem:[#allocation5 + $0x40] ss:$0 sm:$0xff]  ;;  %vm968_vm9 = vcmask 1045509   ;;  %vm1760_vm10 = vcmask 1042432   ;;  %vm1115_vm11 = vcmask 1046534   ;;  %vm1763_vm12 = vcmask 1043456  }
  0x3e   :  { %384 = vmatpush1.bf16.msra.mxu0 %v4618_v42  ;;  %415 = vmatprep.mubr.bf16.mxu0 %v4498_v51  ;;  %vm1268_vm13 = vcmask 1047559   ;;  %vm1766_vm14 = vcmask 1044480   ;;  %vm1769_vm15 = vcmask 1045504   ;;  %s4502_s22 = smov 96   ;;  %s4503_s23 = smov 88  }
  0x3f   :  { %4062 = vmatpush3.bf16.msra.mxu1 %v4059_v10  ;;  %385 = vmatprep.subr.bf16.mxu0 %v4620_v43  ;;  %s4504_s24 = smov 120   ;;  %s4505_s26 = smov 56  }
  0x40   :  { %538 = vmatprep.subr.bf16.mxu1 %v4616_v41  ;;  %s4506_s27 = smov 80   ;;  %s4507_s28 = smov 112  }
  0x41   :  { %s4508_s29 = smov 48   ;;  %s4509_s30 = smov 72  }
  0x42   :  { %386 = vmatpush1.bf16.msra.mxu0 %v4625_v44  ;;  %s4510_s4 = smov 104   ;;  %s4511_s5 = smov 40  }
  0x43   :  { %387 = vmatprep.subr.bf16.mxu0 %v4629_v45  ;;  %s4512_s6 = smov 16   ;;  %s4514_s7 = smov 24  }
  0x44   :  { %s4518_s8 = smov 35   ;;  %s4519_s1 = smov 29  }
  0x45   :  { %s4520_s9 = smov 38   ;;  %s4521_s10 = smov [#allocation8]  }
  0x46   :  { %388 = vmatpush1.bf16.msra.mxu0 %v4634_v47  ;;  %s3711_s11 = sshll.u32 %s4521_s10, 4  ;;  %s3712_s11 = int_to_ptr.vmem [resolvable:$true] %s3711_s11 }
  0x47   :  { %389 = vmatprep.subr.bf16.mxu0 %v4638_v48  ;;  %s4463_s12 = scalar_lea.vmem %s3712_s11, 32  ;;  %p4468_p11 = scmp.lt.s32.totalorder %s3712_s11, %s3712_s11 }
  0x48   :  { %p4464_p10 = scmp.ne.s32.totalorder %s3712_s11, %s4463_s12  ;;  %p4469_p12 = scmp.lt.s32.totalorder %s4463_s12, %s4463_s12 }
  0x4a   :  { %390 = vmatpush1.bf16.msra.mxu0 %v4646_v50  ;;  %p4470_p13 = por %p4469_p12, %p4468_p11 }
  0x4b   :  { %685 = vmatprep.subr.bf16.mxu0 %v4616_v41 }
  0x4c   :  { %p4471_p0 = pnand %p4470_p13, %p4464_p10 }
 0x110   :  { %v3888_v12 = vpop.f32.mrb[0].mxu0 }
 0x111   :  { %v178_v13 = vpop.f32.mrb[1].mxu0  ;;  %v184_v15 = vadd.f32 %v3888_v12, %v3721_v11 }
 0x112   :  { %v179_v14 = vadd.f32 %v3721_v11, %v178_v13 }
 0x114   :  { %3897 = vmatprep.mubr.msk.f32.mxu1 %vm191_vm1, %v179_v14 }
 0x115   :  { %3898 = vmatmul.mubr.msk.f32.vlgmr.msra.gmra.mrb[0].mxu1 %vm191_vm1, %v184_v15 }
 0x116   :  { %539 = vmatpush1.bf16.msra.mxu1 %v4618_v42  ;;  %570 = vmatprep.mubr.bf16.mxu1 %v4498_v51 }
 0x117   :  { %540 = vmatprep.subr.bf16.mxu1 %v4620_v43 }
 0x11a   :  { %541 = vmatpush1.bf16.msra.mxu1 %v4625_v44 }
 0x11b   :  { %542 = vmatprep.subr.bf16.mxu1 %v4629_v45 }
 0x11e   :  { %543 = vmatpush1.bf16.msra.mxu1 %v4634_v47 }
 0x11f   :  { %544 = vmatprep.subr.bf16.mxu1 %v4638_v48 }
 0x122   :  { %545 = vmatpush1.bf16.msra.mxu1 %v4646_v50 }
 0x123   :  { %838 = vmatprep.subr.bf16.mxu1 %v4616_v41 }
 0x1e8   :  { %v3899_v17 = vpop.f32.mrb[0].mxu1 }
 0x1e9   :  { %v4598_v18 = vadd.f32 %v3899_v17, %v3724_v16  ;;  %v264_v19 = vpop.f32.mrb[1].mxu1 }
 0x1ea   :  { %v4600_v20 = vadd.f32 %v3724_v16, %v264_v19 }
 0x1eb   :  { %4157 = vtanh.f32 %v4598_v18  ;;  %v3728_v23 = vmul.f32 -1.442695, %v4598_v18 }
 0x1ec   :  { %4159 = vtanh.f32 %v4600_v20  ;;  %v3727_v24 = vmul.f32 -1.442695, %v4600_v20 }
 0x1ed   :  { %4161 = vpow2.f32 %v3728_v23 }
 0x1ee   :  { %4163 = vpow2.f32 %v3727_v24 }
 0x1f5   :  { %v4158_v21 = vpop.eup %4157 }
 0x1f6   :  { %301 = vrot.lane.b32.xlu0 %v4158_v21, %s4496_s2  ;;  %v4160_v22 = vpop.eup %4159 }
 0x1f7   :  { %v4162_v25 = vpop.eup %4161 }
 0x1f8   :  { %v288_v26 = vadd.f32 1.0, %v4162_v25  ;;  %v4164_v27 = vpop.eup %4163 }
 0x1f9   :  { %v287_v28 = vadd.f32 1.0, %v4164_v27 }
 0x1fa   :  { %299 = vrot.lane.b32.xlu0 %v4160_v22, %s4496_s2  ;;  %4165 = vrcp.f32 %v288_v26 }
 0x1fb   :  { %4167 = vrcp.f32 %v287_v28 }
 0x204   :  { %v4166_v29 = vpop.eup %4165 }
 0x205   :  { %v4168_v32 = vpop.eup %4167  ;;  %v296_v35 = vmul.f32 0.0, %v4166_v29 }
 0x206   :  { %v295_v38 = vmul.f32 0.0, %v4168_v32 }
 0x268   :  { %v302_v30 = vpop.permute.xlu0 %301 }
 0x269   :  { %v306_v31 = vmul.f32 %v4166_v29, %v302_v30 }
 0x26b   :  { %311 = vrot.lane.b32.xlu1 %v306_v31, %s4497_s21 }
 0x26c   :  { %v300_v33 = vpop.permute.xlu0 %299 }
 0x26d   :  { %v305_v34 = vmul.f32 %v4168_v32, %v300_v33 }
 0x26f   :  { %309 = vrot.lane.b32.xlu1 %v305_v34, %s4497_s21 }
 0x2dd   :  { %v312_v36 = vpop.permute.xlu1 %311 }
 0x2de   :  { %v4610_v37 = vadd.f32 %v312_v36, %v296_v35 }
 0x2e0   :  { %4169 = vtanh.f32 %v4610_v37 }
 0x2e1   :  { %v310_v39 = vpop.permute.xlu1 %309 }
 0x2e2   :  { %v4613_v40 = vadd.f32 %v310_v39, %v295_v38 }
 0x2e4   :  { %4171 = vtanh.f32 %v4613_v40  ;;  %v475_v33 = vrot.slane %v4613_v40, 7 }
 0x2ea   :  { %v4170_v46 = vpop.eup %4169 }
 0x2eb   :  { %323 = vrot.lane.b32.xlu0 %v4170_v46, %s4496_s2 }
 0x2ee   :  { %v4172_v49 = vpop.eup %4171 }
 0x2ef   :  { %321 = vrot.lane.b32.xlu1 %v4172_v49, %s4496_s2 }
 0x35d   :  { %v324_v52 = vpop.permute.xlu0 %323 }
 0x35e   :  { %v328_v53 = vmul.f32 %v4166_v29, %v324_v52  ;;  %v476_v29 = vrot.slane %v4610_v37, 7 }
 0x360   :  { %v331_v55 = vrot.slane %v328_v53, 7 }
 0x361   :  { %v322_v54 = vpop.permute.xlu1 %321 }
 0x362   :  { %v327_v56 = vmul.f32 %v4168_v32, %v322_v54 }
 0x364   :  { %v333_v57 = vsel %vm332_vm2, %v331_v55, %v327_v56 }
 0x365   :  { %334 = vrot.lane.b32.xlu0 %v333_v57, %s4497_s21 }
 0x3d7   :  { %v335_v58 = vpop.permute.xlu0 %334 }
 0x3d8   :  { %v337_v59 = vsel %vm191_vm1, %v335_v58, 0.0 }
 0x3d9   :  { %v338_v60 = vpack.c.bf16 %v337_v59, %v337_v59 }
 0x3db   :  { %3737 = vmatmul.mubr.msk.bf16.vlgmr.msra.gmra.mrb[4].mxu0 %vm379_vm3, %v338_v60 }
 0x3dc   :  { %686 = vmatpush1.bf16.msra.mxu0 %v4618_v42  ;;  %717 = vmatprep.mubr.bf16.mxu0 %v4498_v51 }
 0x3dd   :  { %687 = vmatprep.subr.bf16.mxu0 %v4620_v43 }
 0x3e0   :  { %688 = vmatpush1.bf16.msra.mxu0 %v4625_v44 }
 0x3e1   :  { %689 = vmatprep.subr.bf16.mxu0 %v4629_v45 }
 0x3e4   :  { %690 = vmatpush1.bf16.msra.mxu0 %v4634_v47 }
 0x3e5   :  { %691 = vmatprep.subr.bf16.mxu0 %v4638_v48 }
 0x3e8   :  { %692 = vmatpush1.bf16.msra.mxu0 %v4646_v50 }
 0x3e9   :  { %985 = vmatprep.subr.bf16.mxu0 %v4616_v41 }
 0x4ae   :  { %v417_v62 = vpop.f32.mrb[4].mxu0 }
 0x4af   :  { %v454_v63 = vrot.slane %v417_v62, 7  ;;  %v458_v0 = vadd.f32 %v417_v62, %v4598_v18  ;;  %v419_v1 = vpop.f32.mrb[5].mxu0 }
 0x4b0   :  { %v428_v2 = vadd.f32 %v4667_v61, %v419_v1  ;;  %v421_v3 = vpop.f32.mrb[6].mxu0 }
 0x4b1   :  { %v457_v4 = vadd.f32 %v454_v63, %v4600_v20  ;;  %4173 = vtanh.f32 %v458_v0  ;;  %v422_v5 = vpop.f32.mrb[7].mxu0  ;;  %v3741_v9 = vmul.f32 -1.442695, %v458_v0 }
 0x4b2   :  { %4175 = vtanh.f32 %v428_v2  ;;  %v3739_v10 = vmul.f32 -1.442695, %v428_v2 }
 0x4b3   :  { %4177 = vtanh.f32 %v457_v4  ;;  %v3740_v11 = vmul.f32 -1.442695, %v457_v4 }
 0x4b4   :  { %4179 = vpow2.f32 %v3741_v9 }
 0x4b5   :  { %4181 = vpow2.f32 %v3739_v10 }
 0x4b6   :  { %4183 = vpow2.f32 %v3740_v11 }
 0x4bb   :  { %v4174_v6 = vpop.eup %4173 }
 0x4bc   :  { %v4176_v7 = vpop.eup %4175  ;;  %485 = vrot.lane.b32.xlu1 %v4174_v6, %s4496_s2 }
 0x4bd   :  { %438 = vrot.lane.b32.xlu0 %v4176_v7, %s4496_s2  ;;  %v4178_v8 = vpop.eup %4177 }
 0x4be   :  { %v4180_v12 = vpop.eup %4179 }
 0x4bf   :  { %v4182_v13 = vpop.eup %4181  ;;  %v466_v14 = vadd.f32 1.0, %v4180_v12 }
 0x4c0   :  { %483 = vrot.lane.b32.xlu1 %v4178_v8, %s4496_s2  ;;  %v4184_v15 = vpop.eup %4183  ;;  %v432_v16 = vadd.f32 1.0, %v4182_v13 }
 0x4c1   :  { %v465_v17 = vadd.f32 1.0, %v4184_v15  ;;  %4185 = vrcp.f32 %v466_v14 }
 0x4c2   :  { %4187 = vrcp.f32 %v432_v16 }
 0x4c3   :  { %4189 = vrcp.f32 %v465_v17 }
 0x4cb   :  { %v4186_v19 = vpop.eup %4185 }
 0x4cc   :  { %v4188_v22 = vpop.eup %4187  ;;  %v480_v30 = vmul.f32 %v4186_v19, %v476_v29 }
 0x4cd   :  { %v4190_v26 = vpop.eup %4189  ;;  %v436_v32 = vmul.f32 0.0, %v4188_v22 }
 0x4ce   :  { %v479_v38 = vmul.f32 %v4190_v26, %v475_v33 }
 0x52e   :  { %v486_v21 = vpop.permute.xlu1 %485 }
 0x52f   :  { %v490_v23 = vmul.f32 %v4186_v19, %v486_v21  ;;  %v439_v24 = vpop.permute.xlu0 %438 }
 0x530   :  { %v441_v25 = vmul.f32 %v4188_v22, %v439_v24 }
 0x531   :  { %495 = vrot.lane.b32.xlu0 %v490_v23, %s4497_s21 }
 0x532   :  { %v484_v27 = vpop.permute.xlu1 %483  ;;  %443 = vrot.lane.b32.xlu1 %v441_v25, %s4497_s21 }
 0x533   :  { %v489_v28 = vmul.f32 %v4190_v26, %v484_v27 }
 0x535   :  { %493 = vrot.lane.b32.xlu0 %v489_v28, %s4497_s21 }
 0x5a3   :  { %v496_v31 = vpop.permute.xlu0 %495 }
 0x5a4   :  { %v4680_v34 = vadd.f32 %v496_v31, %v480_v30  ;;  %v444_v35 = vpop.permute.xlu1 %443 }
 0x5a5   :  { %v4682_v36 = vadd.f32 %v444_v35, %v436_v32 }
 0x5a6   :  { %4191 = vtanh.f32 %v4680_v34 }
 0x5a7   :  { %4193 = vtanh.f32 %v4682_v36  ;;  %v494_v39 = vpop.permute.xlu0 %493 }
 0x5a8   :  { %v4686_v46 = vadd.f32 %v494_v39, %v479_v38 }
 0x5aa   :  { %4195 = vtanh.f32 %v4686_v46 }
 0x5b0   :  { %v4192_v37 = vpop.eup %4191 }
 0x5b1   :  { %v4194_v49 = vpop.eup %4193  ;;  %507 = vrot.lane.b32.xlu1 %v4192_v37, %s4496_s2 }
 0x5b2   :  { %449 = vrot.lane.b32.xlu0 %v4194_v49, %s4496_s2  ;;  %v628_v49 = vrot.slane %v4680_v34, 7 }
 0x5b4   :  { %v4196_v40 = vpop.eup %4195 }
 0x5b5   :  { %505 = vrot.lane.b32.xlu1 %v4196_v40, %s4496_s2 }
 0x623   :  { %v508_v52 = vpop.permute.xlu1 %507 }
 0x624   :  { %v512_v53 = vmul.f32 %v4186_v19, %v508_v52  ;;  %v450_v54 = vpop.permute.xlu0 %449 }
 0x625   :  { %v4692_v55 = vmul.f32 %v4188_v22, %v450_v54 }
 0x626   :  { %v515_v58 = vrot.slane %v512_v53, 7 }
 0x627   :  { %v522_v56 = vrot.slane %v4692_v55, 7  ;;  %v506_v57 = vpop.permute.xlu1 %505 }
 0x628   :  { %v511_v59 = vmul.f32 %v4190_v26, %v506_v57  ;;  %v627_v57 = vrot.slane %v4686_v46, 7  ;;  %v4499_v46 = vmov 1966171168  }
 0x629   :  { %523 = vrot.lane.b32.xlu1 %v522_v56, %s4496_s2 }
 0x62a   :  { %v517_v60 = vsel %vm516_vm4, %v515_v58, %v511_v59  ;;  %vm1772_vm4 = vcmask 1046528  }
 0x62b   :  { %518 = vrot.lane.b32.xlu0 %v517_v60, %s4497_s21 }
 0x69b   :  { %v524_v62 = vpop.permute.xlu1 %523 }
 0x69d   :  { %v519_v63 = vpop.permute.xlu0 %518 }
 0x69e   :  { %v526_v0 = vsel %vm191_vm1, %v519_v63, %v524_v62 }
 0x69f   :  { %v527_v1 = vpack.c.bf16 %v526_v0, %v526_v0  ;;  %v1506_v0 = vunpack.c.l.s4 %v4499_v46 }
 0x6a1   :  { %v531_v2 = vshll.u32 %v527_v1, 16  ;;  %v529_v3 = vshrl.u32 %v527_v1, 16  ;;  %v1508_v1 = vlaneseq }
 0x6a3   :  { %v533_v4 = vrot.slane %v531_v2, 1  ;;  %v1507_v2 = vunpack.c.0.s8 %v1506_v0 }
 0x6a5   :  { %v534_v5 = vor.u32 %v533_v4, %v529_v3  ;;  %v4732_v3 = vshrl.u32 %v1508_v1, 7 }
 0x6a7   :  { %3742 = vmatmul.mubr.msk.bf16.vlgmr.msra.gmra.mrb[4].mxu1 %vm379_vm3, %v534_v5  ;;  %v4735_v4 = vsub.s32 %v1507_v2, %v4732_v3 }
 0x6a8   :  { %839 = vmatpush1.bf16.msra.mxu1 %v4618_v42  ;;  %870 = vmatprep.mubr.bf16.mxu1 %v4498_v51 }
 0x6a9   :  { %840 = vmatprep.subr.bf16.mxu1 %v4620_v43 }
 0x6ac   :  { %841 = vmatpush1.bf16.msra.mxu1 %v4625_v44 }
 0x6ad   :  { %842 = vmatprep.subr.bf16.mxu1 %v4629_v45 }
 0x6b0   :  { %843 = vmatpush1.bf16.msra.mxu1 %v4634_v47 }
 0x6b1   :  { %844 = vmatprep.subr.bf16.mxu1 %v4638_v48 }
 0x6b4   :  { %845 = vmatpush1.bf16.msra.mxu1 %v4646_v50 }
 0x6b5   :  { %1138 = vmatprep.subr.bf16.mxu1 %v4616_v41 }
 0x77a   :  { %v572_v6 = vpop.f32.mrb[4].mxu1 }
 0x77b   :  { %v606_v7 = vrot.slane %v572_v6, 7  ;;  %v574_v8 = vpop.f32.mrb[5].mxu1  ;;  %v605_v9 = vrot.slane %v572_v6, 6  ;;  %v1511_v6 = vrot.slane %v4692_v55, %v4735_v4 }
 0x77c   :  { %v579_v10 = vadd.f32 %v4667_v61, %v574_v8  ;;  %v576_v11 = vpop.f32.mrb[6].mxu1 }
 0x77d   :  { %v610_v12 = vadd.f32 %v606_v7, %v4598_v18  ;;  %v577_v13 = vpop.f32.mrb[7].mxu1  ;;  %v609_v14 = vadd.f32 %v605_v9, %v4600_v20  ;;  %v4740_v9 = vsub.s32 0, %v4732_v3 }
 0x77e   :  { %4197 = vtanh.f32 %v579_v10  ;;  %v3743_v19 = vmul.f32 -1.442695, %v579_v10  ;;  %v1512_v13 = vcombine.high %v1511_v6, %v1511_v6 }
 0x77f   :  { %4199 = vtanh.f32 %v610_v12  ;;  %v3745_v21 = vmul.f32 -1.442695, %v610_v12  ;;  %v3744_v22 = vmul.f32 -1.442695, %v609_v14 }
 0x780   :  { %4201 = vtanh.f32 %v609_v14 }
 0x781   :  { %4203 = vpow2.f32 %v3743_v19 }
 0x782   :  { %4205 = vpow2.f32 %v3745_v21 }
 0x783   :  { %4207 = vpow2.f32 %v3744_v22 }
 0x788   :  { %v4198_v15 = vpop.eup %4197 }
 0x789   :  { %589 = vrot.lane.b32.xlu1 %v4198_v15, %s4496_s2  ;;  %v4200_v16 = vpop.eup %4199 }
 0x78a   :  { %637 = vrot.lane.b32.xlu0 %v4200_v16, %s4496_s2  ;;  %v4202_v17 = vpop.eup %4201  ;;  %v1519_v16 = vrot.slane %v1511_v6, %v4735_v4 }
 0x78b   :  { %v4204_v23 = vpop.eup %4203 }
 0x78c   :  { %v4206_v24 = vpop.eup %4205  ;;  %v583_v25 = vadd.f32 1.0, %v4204_v23  ;;  %v1526_v23 = vrot.slane %v1512_v13, %v4735_v4 }
 0x78d   :  { %v618_v26 = vadd.f32 1.0, %v4206_v24  ;;  %v4208_v27 = vpop.eup %4207 }
 0x78e   :  { %635 = vrot.lane.b32.xlu0 %v4202_v17, %s4496_s2  ;;  %4209 = vrcp.f32 %v583_v25  ;;  %v617_v28 = vadd.f32 1.0, %v4208_v27 }
 0x78f   :  { %4211 = vrcp.f32 %v618_v26 }
 0x790   :  { %4213 = vrcp.f32 %v617_v28 }
 0x798   :  { %v4210_v29 = vpop.eup %4209 }
 0x799   :  { %v4212_v32 = vpop.eup %4211  ;;  %v587_v40 = vmul.f32 %v4210_v29, %v4682_v36 }
 0x79a   :  { %v4214_v38 = vpop.eup %4213  ;;  %v632_v54 = vmul.f32 %v4212_v32, %v628_v49 }
 0x79b   :  { %v631_v59 = vmul.f32 %v4214_v38, %v627_v57 }
 0x7fb   :  { %v590_v30 = vpop.permute.xlu1 %589 }
 0x7fc   :  { %v592_v31 = vmul.f32 %v4210_v29, %v590_v30  ;;  %v638_v33 = vpop.permute.xlu0 %637 }
 0x7fd   :  { %v642_v35 = vmul.f32 %v4212_v32, %v638_v33 }
 0x7fe   :  { %594 = vrot.lane.b32.xlu0 %v592_v31, %s4497_s21 }
 0x7ff   :  { %647 = vrot.lane.b32.xlu1 %v642_v35, %s4497_s21 }
 0x800   :  { %v636_v39 = vpop.permute.xlu0 %635 }
 0x801   :  { %v641_v37 = vmul.f32 %v4214_v38, %v636_v39 }
 0x803   :  { %645 = vrot.lane.b32.xlu1 %v641_v37, %s4497_s21 }
 0x870   :  { %v595_v52 = vpop.permute.xlu0 %594 }
 0x871   :  { %v4719_v53 = vadd.f32 %v595_v52, %v587_v40  ;;  %v648_v56 = vpop.permute.xlu1 %647 }
 0x872   :  { %v4723_v58 = vadd.f32 %v648_v56, %v632_v54 }
 0x873   :  { %4215 = vtanh.f32 %v4719_v53 }
 0x874   :  { %4217 = vtanh.f32 %v4723_v58 }
 0x875   :  { %v646_v60 = vpop.permute.xlu1 %645 }
 0x876   :  { %v4726_v62 = vadd.f32 %v646_v60, %v631_v59 }
 0x878   :  { %4219 = vtanh.f32 %v4726_v62 }
 0x87d   :  { %v4216_v34 = vpop.eup %4215 }
 0x87e   :  { %600 = vrot.lane.b32.xlu1 %v4216_v34, %s4496_s2  ;;  %v4218_v36 = vpop.eup %4217 }
 0x87f   :  { %659 = vrot.lane.b32.xlu0 %v4218_v36, %s4496_s2 }
 0x882   :  { %v4220_v63 = vpop.eup %4219 }
 0x883   :  { %657 = vrot.lane.b32.xlu0 %v4220_v63, %s4496_s2 }
 0x8f0   :  { %v601_v5 = vpop.permute.xlu1 %600 }
 0x8f1   :  { %v603_v7 = vmul.f32 %v4210_v29, %v601_v5  ;;  %v660_v8 = vpop.permute.xlu0 %659 }
 0x8f2   :  { %v664_v12 = vmul.f32 %v4212_v32, %v660_v8 }
 0x8f3   :  { %v674_v10 = vrot.slane %v603_v7, 6  ;;  %v1535_v11 = vrot.slane %v603_v7, %v4735_v4 }
 0x8f4   :  { %v667_v21 = vrot.slane %v664_v12, 7 }
 0x8f5   :  { %v1536_v14 = vcombine.high %v1535_v11, %v1535_v11  ;;  %v1543_v15 = vrot.slane %v1535_v11, %v4735_v4  ;;  %675 = vrot.lane.b32.xlu0 %v674_v10, %s4496_s2  ;;  %v658_v17 = vpop.permute.xlu0 %657 }
 0x8f6   :  { %v663_v22 = vmul.f32 %v4214_v38, %v658_v17 }
 0x8f7   :  { %v1550_v55 = vrot.slane %v1536_v14, %v4735_v4  ;;  %v1687_v19 = vrot.slane %v1543_v15, %v4740_v9 }
 0x8f8   :  { %v669_v26 = vsel %vm668_vm6, %v667_v21, %v663_v22  ;;  %vm1867_vm6 = vcmask 64512  }
 0x8f9   :  { %v1691_v24 = vrot.slane %v1550_v55, %v4740_v9  ;;  %v4750_v25 = vsel %vm1754_vm5, %v1519_v16, %v1687_v19  ;;  %670 = vrot.lane.b32.xlu1 %v669_v26, %s4497_s21  ;;  %v775_v16 = vrot.slane %v4723_v58, 7 }
 0x8fb   :  { %v4753_v27 = vsel %vm1754_vm5, %v1526_v23, %v1691_v24  ;;  %v774_v23 = vrot.slane %v4726_v62, 7  ;;  %vm4501_vm5 = vmmov 0  }
 0x967   :  { %v676_v28 = vpop.permute.xlu0 %675 }
 0x96b   :  { %v671_v29 = vpop.permute.xlu1 %670 }
 0x96c   :  { %v678_v30 = vsel %vm191_vm1, %v671_v29, %v676_v28 }
 0x96d   :  { %v679_v31 = vpack.c.bf16 %v678_v30, %v678_v30 }
 0x96f   :  { %v681_v32 = vrot.slane %v679_v31, 1 }
 0x971   :  { %3746 = vmatmul.mubr.msk.bf16.vlgmr.msra.gmra.mrb[8].mxu0 %vm379_vm3, %v681_v32 }
 0x972   :  { %986 = vmatpush1.bf16.msra.mxu0 %v4618_v42  ;;  %1017 = vmatprep.mubr.bf16.mxu0 %v4498_v51 }
 0x973   :  { %987 = vmatprep.subr.bf16.mxu0 %v4620_v43 }
 0x976   :  { %988 = vmatpush1.bf16.msra.mxu0 %v4625_v44 }
 0x977   :  { %989 = vmatprep.subr.bf16.mxu0 %v4629_v45 }
 0x97a   :  { %990 = vmatpush1.bf16.msra.mxu0 %v4634_v47 }
 0x97b   :  { %991 = vmatprep.subr.bf16.mxu0 %v4638_v48 }
 0x97e   :  { %992 = vmatpush1.bf16.msra.mxu0 %v4646_v50 }
 0x97f   :  { %1285 = vmatprep.subr.bf16.mxu0 %v4616_v41 }
 0xa44   :  { %v719_v33 = vpop.f32.mrb[8].mxu0 }
 0xa45   :  { %v753_v35 = vrot.slane %v719_v33, 6  ;;  %v721_v38 = vpop.f32.mrb[9].mxu0  ;;  %v752_v39 = vrot.slane %v719_v33, 5 }
 0xa46   :  { %v726_v37 = vadd.f32 %v4667_v61, %v721_v38  ;;  %v723_v49 = vpop.f32.mrb[10].mxu0 }
 0xa47   :  { %v757_v40 = vadd.f32 %v753_v35, %v4598_v18  ;;  %v724_v52 = vpop.f32.mrb[11].mxu0  ;;  %v756_v54 = vadd.f32 %v752_v39, %v4600_v20 }
 0xa48   :  { %4221 = vtanh.f32 %v726_v37  ;;  %v3747_v60 = vmul.f32 -1.442695, %v726_v37 }
 0xa49   :  { %4223 = vtanh.f32 %v757_v40  ;;  %v3749_v34 = vmul.f32 -1.442695, %v757_v40  ;;  %v3748_v36 = vmul.f32 -1.442695, %v756_v54 }
 0xa4a   :  { %4225 = vtanh.f32 %v756_v54 }
 0xa4b   :  { %4227 = vpow2.f32 %v3747_v60 }
 0xa4c   :  { %4229 = vpow2.f32 %v3749_v34 }
 0xa4d   :  { %4231 = vpow2.f32 %v3748_v36 }
 0xa52   :  { %v4222_v56 = vpop.eup %4221 }
 0xa53   :  { %736 = vrot.lane.b32.xlu0 %v4222_v56, %s4496_s2  ;;  %v4224_v57 = vpop.eup %4223 }
 0xa54   :  { %784 = vrot.lane.b32.xlu1 %v4224_v57, %s4496_s2  ;;  %v4226_v59 = vpop.eup %4225 }
 0xa55   :  { %v4228_v63 = vpop.eup %4227 }
 0xa56   :  { %v4230_v46 = vpop.eup %4229  ;;  %v730_v0 = vadd.f32 1.0, %v4228_v63 }
 0xa57   :  { %v765_v1 = vadd.f32 1.0, %v4230_v46  ;;  %v4232_v2 = vpop.eup %4231 }
 0xa58   :  { %782 = vrot.lane.b32.xlu1 %v4226_v59, %s4496_s2  ;;  %4233 = vrcp.f32 %v730_v0  ;;  %v764_v5 = vadd.f32 1.0, %v4232_v2 }
 0xa59   :  { %4235 = vrcp.f32 %v765_v1 }
 0xa5a   :  { %4237 = vrcp.f32 %v764_v5 }
 0xa62   :  { %v4234_v6 = vpop.eup %4233 }
 0xa63   :  { %v4236_v10 = vpop.eup %4235  ;;  %v734_v17 = vmul.f32 %v4234_v6, %v4719_v53 }
 0xa64   :  { %v4238_v13 = vpop.eup %4237  ;;  %v779_v21 = vmul.f32 %v4236_v10, %v775_v16 }
 0xa65   :  { %v778_v26 = vmul.f32 %v4238_v13, %v774_v23 }
 0xac5   :  { %v737_v7 = vpop.permute.xlu0 %736 }
 0xac6   :  { %v739_v8 = vmul.f32 %v4234_v6, %v737_v7  ;;  %v785_v11 = vpop.permute.xlu1 %784 }
 0xac7   :  { %v789_v12 = vmul.f32 %v4236_v10, %v785_v11 }
 0xac8   :  { %741 = vrot.lane.b32.xlu1 %v739_v8, %s4497_s21 }
 0xac9   :  { %794 = vrot.lane.b32.xlu0 %v789_v12, %s4497_s21 }
 0xaca   :  { %v783_v14 = vpop.permute.xlu1 %782 }
 0xacb   :  { %v788_v15 = vmul.f32 %v4238_v13, %v783_v14 }
 0xacd   :  { %792 = vrot.lane.b32.xlu0 %v788_v15, %s4497_s21 }
 0xb3a   :  { %v742_v55 = vpop.permute.xlu1 %741 }
 0xb3b   :  { %v4777_v19 = vadd.f32 %v742_v55, %v734_v17  ;;  %v795_v22 = vpop.permute.xlu0 %794 }
 0xb3c   :  { %v4781_v24 = vadd.f32 %v795_v22, %v779_v21 }
 0xb3d   :  { %4239 = vtanh.f32 %v4777_v19 }
 0xb3e   :  { %4241 = vtanh.f32 %v4781_v24 }
 0xb3f   :  { %v793_v28 = vpop.permute.xlu0 %792 }
 0xb40   :  { %v4784_v29 = vadd.f32 %v793_v28, %v778_v26 }
 0xb42   :  { %4243 = vtanh.f32 %v4784_v29 }
 0xb47   :  { %v4240_v53 = vpop.eup %4239 }
 0xb48   :  { %747 = vrot.lane.b32.xlu0 %v4240_v53, %s4496_s2  ;;  %v4242_v58 = vpop.eup %4241 }
 0xb49   :  { %806 = vrot.lane.b32.xlu1 %v4242_v58, %s4496_s2 }
 0xb4c   :  { %v4244_v30 = vpop.eup %4243 }
 0xb4d   :  { %804 = vrot.lane.b32.xlu1 %v4244_v30, %s4496_s2 }
 0xbba   :  { %v748_v62 = vpop.permute.xlu0 %747 }
 0xbbb   :  { %v750_v31 = vmul.f32 %v4234_v6, %v748_v62  ;;  %v807_v32 = vpop.permute.xlu1 %806 }
 0xbbc   :  { %v811_v38 = vmul.f32 %v4236_v10, %v807_v32 }
 0xbbd   :  { %v821_v33 = vrot.slane %v750_v31, 5  ;;  %v1557_v35 = vrot.slane %v750_v31, %v4735_v4 }
 0xbbe   :  { %v814_v54 = vrot.slane %v811_v38, 7 }
 0xbbf   :  { %v1558_v39 = vcombine.high %v1557_v35, %v1557_v35  ;;  %v1565_v37 = vrot.slane %v1557_v35, %v4735_v4  ;;  %822 = vrot.lane.b32.xlu1 %v821_v33, %s4496_s2  ;;  %v805_v49 = vpop.permute.xlu1 %804 }
 0xbc0   :  { %v810_v56 = vmul.f32 %v4238_v13, %v805_v49 }
 0xbc1   :  { %v1572_v40 = vrot.slane %v1558_v39, %v4735_v4  ;;  %v1697_v52 = vrot.slane %v1565_v37, %v4740_v9 }
 0xbc2   :  { %v816_v60 = vsel %vm815_vm8, %v814_v54, %v810_v56  ;;  %vm3679_vm8 = vcmask 326656  }
 0xbc3   :  { %v1701_v57 = vrot.slane %v1572_v40, %v4740_v9  ;;  %v4797_v59 = vsel %vm1757_vm7, %v4750_v25, %v1697_v52  ;;  %817 = vrot.lane.b32.xlu0 %v816_v60, %s4497_s21  ;;  %v928_v40 = vrot.slane %v4781_v24, 7 }
 0xbc5   :  { %v4801_v34 = vsel %vm1757_vm7, %v4753_v27, %v1701_v57  ;;  %vm3219_vm7 = vcmask 195584  }
 0xc31   :  { %v823_v36 = vpop.permute.xlu1 %822 }
 0xc35   :  { %v818_v63 = vpop.permute.xlu0 %817 }
 0xc36   :  { %v825_v46 = vsel %vm191_vm1, %v818_v63, %v823_v36  ;;  %v927_v36 = vrot.slane %v4784_v29, 7 }
 0xc37   :  { %v826_v0 = vpack.c.bf16 %v825_v46, %v825_v46 }
 0xc39   :  { %v828_v1 = vshrl.u32 %v826_v0, 16  ;;  %v831_v2 = vshll.u32 %v826_v0, 16 }
 0xc3b   :  { %v830_v5 = vrot.slane %v828_v1, 1  ;;  %v833_v6 = vrot.slane %v831_v2, 2 }
 0xc3d   :  { %v834_v7 = vor.u32 %v833_v6, %v830_v5 }
 0xc3f   :  { %3750 = vmatmul.mubr.msk.bf16.vlgmr.msra.gmra.mrb[8].mxu1 %vm379_vm3, %v834_v7 }
 0xc40   :  { %1139 = vmatpush1.bf16.msra.mxu1 %v4618_v42  ;;  %1170 = vmatprep.mubr.bf16.mxu1 %v4498_v51 }
 0xc41   :  { %1140 = vmatprep.subr.bf16.mxu1 %v4620_v43 }
 0xc44   :  { %1141 = vmatpush1.bf16.msra.mxu1 %v4625_v44 }
 0xc45   :  { %1142 = vmatprep.subr.bf16.mxu1 %v4629_v45 }
 0xc48   :  { %1143 = vmatpush1.bf16.msra.mxu1 %v4634_v47 }
 0xc49   :  { %1144 = vmatprep.subr.bf16.mxu1 %v4638_v48 }
 0xc4c   :  { %1145 = vmatpush1.bf16.msra.mxu1 %v4646_v50 }
 0xc4d   :  { %1440 = vmatprep.subr.bf16.mxu1 %v4616_v41 }
 0xd12   :  { %v872_v25 = vpop.f32.mrb[8].mxu1 }
 0xd13   :  { %v906_v27 = vrot.slane %v872_v25, 5  ;;  %v874_v8 = vpop.f32.mrb[9].mxu1  ;;  %v905_v10 = vrot.slane %v872_v25, 4 }
 0xd14   :  { %v879_v11 = vadd.f32 %v4667_v61, %v874_v8  ;;  %v876_v12 = vpop.f32.mrb[10].mxu1 }
 0xd15   :  { %v910_v13 = vadd.f32 %v906_v27, %v4598_v18  ;;  %v877_v14 = vpop.f32.mrb[11].mxu1  ;;  %v909_v15 = vadd.f32 %v905_v10, %v4600_v20 }
 0xd16   :  { %4245 = vtanh.f32 %v879_v11  ;;  %v3751_v55 = vmul.f32 -1.442695, %v879_v11 }
 0xd17   :  { %4247 = vtanh.f32 %v910_v13  ;;  %v3753_v21 = vmul.f32 -1.442695, %v910_v13  ;;  %v3752_v22 = vmul.f32 -1.442695, %v909_v15 }
 0xd18   :  { %4249 = vtanh.f32 %v909_v15 }
 0xd19   :  { %4251 = vpow2.f32 %v3751_v55 }
 0xd1a   :  { %4253 = vpow2.f32 %v3753_v21 }
 0xd1b   :  { %4255 = vpow2.f32 %v3752_v22 }
 0xd20   :  { %v4246_v16 = vpop.eup %4245 }
 0xd21   :  { %889 = vrot.lane.b32.xlu1 %v4246_v16, %s4496_s2  ;;  %v4248_v17 = vpop.eup %4247 }
 0xd22   :  { %937 = vrot.lane.b32.xlu0 %v4248_v17, %s4496_s2  ;;  %v4250_v41 = vpop.eup %4249 }
 0xd23   :  { %v4252_v23 = vpop.eup %4251 }
 0xd24   :  { %v4254_v26 = vpop.eup %4253  ;;  %v883_v28 = vadd.f32 1.0, %v4252_v23 }
 0xd25   :  { %v918_v53 = vadd.f32 1.0, %v4254_v26  ;;  %v4256_v58 = vpop.eup %4255 }
 0xd26   :  { %935 = vrot.lane.b32.xlu0 %v4250_v41, %s4496_s2  ;;  %4257 = vrcp.f32 %v883_v28  ;;  %v917_v30 = vadd.f32 1.0, %v4256_v58 }
 0xd27   :  { %4259 = vrcp.f32 %v918_v53 }
 0xd28   :  { %4261 = vrcp.f32 %v917_v30 }
 0xd30   :  { %v4258_v62 = vpop.eup %4257 }
 0xd31   :  { %v4260_v33 = vpop.eup %4259  ;;  %v887_v52 = vmul.f32 %v4258_v62, %v4777_v19 }
 0xd32   :  { %v4262_v39 = vpop.eup %4261  ;;  %v932_v57 = vmul.f32 %v4260_v33, %v928_v40 }
 0xd33   :  { %v931_v46 = vmul.f32 %v4262_v39, %v927_v36 }
 0xd93   :  { %v890_v31 = vpop.permute.xlu1 %889 }
 0xd94   :  { %v892_v32 = vmul.f32 %v4258_v62, %v890_v31  ;;  %v938_v35 = vpop.permute.xlu0 %937 }
 0xd95   :  { %v942_v38 = vmul.f32 %v4260_v33, %v938_v35 }
 0xd96   :  { %894 = vrot.lane.b32.xlu0 %v892_v32, %s4497_s21 }
 0xd97   :  { %947 = vrot.lane.b32.xlu1 %v942_v38, %s4497_s21 }
 0xd98   :  { %v936_v37 = vpop.permute.xlu0 %935 }
 0xd99   :  { %v941_v49 = vmul.f32 %v4262_v39, %v936_v37 }
 0xd9b   :  { %945 = vrot.lane.b32.xlu1 %v941_v49, %s4497_s21 }
 0xe08   :  { %v895_v54 = vpop.permute.xlu0 %894 }
 0xe09   :  { %v4825_v56 = vadd.f32 %v895_v54, %v887_v52  ;;  %v948_v60 = vpop.permute.xlu1 %947 }
 0xe0a   :  { %v4829_v63 = vadd.f32 %v948_v60, %v932_v57 }
 0xe0b   :  { %4263 = vtanh.f32 %v4825_v56 }
 0xe0c   :  { %4265 = vtanh.f32 %v4829_v63 }
 0xe0d   :  { %v946_v0 = vpop.permute.xlu1 %945 }
 0xe0e   :  { %v4832_v1 = vadd.f32 %v946_v0, %v931_v46 }
 0xe10   :  { %4267 = vtanh.f32 %v4832_v1 }
 0xe15   :  { %v4264_v19 = vpop.eup %4263 }
 0xe16   :  { %900 = vrot.lane.b32.xlu1 %v4264_v19, %s4496_s2  ;;  %v4266_v24 = vpop.eup %4265  ;;  %v1075_v19 = vrot.slane %v4829_v63, 7 }
 0xe17   :  { %959 = vrot.lane.b32.xlu0 %v4266_v24, %s4496_s2 }
 0xe1a   :  { %v4268_v2 = vpop.eup %4267 }
 0xe1b   :  { %957 = vrot.lane.b32.xlu0 %v4268_v2, %s4496_s2 }
 0xe88   :  { %v901_v29 = vpop.permute.xlu1 %900 }
 0xe89   :  { %v903_v5 = vmul.f32 %v4258_v62, %v901_v29  ;;  %v960_v6 = vpop.permute.xlu0 %959 }
 0xe8a   :  { %v964_v27 = vmul.f32 %v4260_v33, %v960_v6 }
 0xe8b   :  { %v974_v7 = vrot.slane %v903_v5, 4  ;;  %v1579_v25 = vrot.slane %v903_v5, %v4735_v4 }
 0xe8c   :  { %v967_v14 = vrot.slane %v964_v27, 7 }
 0xe8d   :  { %v1580_v8 = vcombine.high %v1579_v25, %v1579_v25  ;;  %v1587_v10 = vrot.slane %v1579_v25, %v4735_v4  ;;  %975 = vrot.lane.b32.xlu0 %v974_v7, %s4496_s2  ;;  %v958_v11 = vpop.permute.xlu0 %957  ;;  %v1074_v7 = vrot.slane %v4832_v1, 7 }
 0xe8e   :  { %v963_v15 = vmul.f32 %v4262_v39, %v958_v11 }
 0xe8f   :  { %v1594_v12 = vrot.slane %v1580_v8, %v4735_v4  ;;  %v1707_v13 = vrot.slane %v1587_v10, %v4740_v9 }
 0xe90   :  { %v969_v17 = vsel %vm968_vm9, %v967_v14, %v963_v15  ;;  %vm3681_vm9 = vcmask 392192  }
 0xe91   :  { %v1711_v16 = vrot.slane %v1594_v12, %v4740_v9  ;;  %v4845_v41 = vsel %vm1760_vm10, %v4797_v59, %v1707_v13  ;;  %970 = vrot.lane.b32.xlu1 %v969_v17, %s4497_s21 }
 0xe93   :  { %v4849_v55 = vsel %vm1760_vm10, %v4801_v34, %v1711_v16  ;;  %vm3683_vm10 = vcmask 457728  }
 0xeff   :  { %v976_v21 = vpop.permute.xlu0 %975 }
 0xf03   :  { %v971_v22 = vpop.permute.xlu1 %970 }
 0xf04   :  { %v978_v23 = vsel %vm191_vm1, %v971_v22, %v976_v21 }
 0xf05   :  { %v979_v26 = vpack.c.bf16 %v978_v23, %v978_v23 }
 0xf07   :  { %v981_v28 = vrot.slane %v979_v26, 2 }
 0xf09   :  { %3754 = vmatmul.mubr.msk.bf16.vlgmr.msra.gmra.mrb[12].mxu0 %vm379_vm3, %v981_v28 }
 0xf0a   :  { %1286 = vmatpush1.bf16.msra.mxu0 %v4618_v42  ;;  %1317 = vmatprep.mubr.bf16.mxu0 %v4498_v51 }
 0xf0b   :  { %1287 = vmatprep.subr.bf16.mxu0 %v4620_v43 }
 0xf0e   :  { %1288 = vmatpush1.bf16.msra.mxu0 %v4625_v44 }
 0xf0f   :  { %1289 = vmatprep.subr.bf16.mxu0 %v4629_v45 }
 0xf12   :  { %1290 = vmatpush1.bf16.msra.mxu0 %v4634_v47 }
 0xf13   :  { %1291 = vmatprep.subr.bf16.mxu0 %v4638_v48 }
 0xf16   :  { %1292 = vmatpush1.bf16.msra.mxu0 %v4646_v50 }
 0xfdc   :  { %v1019_v59 = vpop.f32.mrb[12].mxu0 }
 0xfdd   :  { %v1053_v34 = vrot.slane %v1019_v59, 4  ;;  %v1021_v53 = vpop.f32.mrb[13].mxu0  ;;  %v1052_v58 = vrot.slane %v1019_v59, 3 }
 0xfde   :  { %v1026_v42 = vadd.f32 %v4667_v61, %v1021_v53  ;;  %v1023_v30 = vpop.f32.mrb[14].mxu0 }
 0xfdf   :  { %v1057_v62 = vadd.f32 %v1053_v34, %v4598_v18  ;;  %v1024_v43 = vpop.f32.mrb[15].mxu0  ;;  %v1056_v44 = vadd.f32 %v1052_v58, %v4600_v20 }
 0xfe0   :  { %4269 = vtanh.f32 %v1026_v42  ;;  %v3755_v50 = vmul.f32 -1.442695, %v1026_v42 }
 0xfe1   :  { %4271 = vtanh.f32 %v1057_v62  ;;  %v3757_v61 = vmul.f32 -1.442695, %v1057_v62  ;;  %v3756_v31 = vmul.f32 -1.442695, %v1056_v44 }
 0xfe2   :  { %4273 = vtanh.f32 %v1056_v44 }
 0xfe3   :  { %4275 = vpow2.f32 %v3755_v50 }
 0xfe4   :  { %4277 = vpow2.f32 %v3757_v61 }
 0xfe5   :  { %4279 = vpow2.f32 %v3756_v31  ;;  %v4389_v31 = vld [vmem:[#allocation7] ss:$8 sps:$4 sm:$0xff]  }
 0xfea   :  { %v4270_v45 = vpop.eup %4269 }
 0xfeb   :  { %1036 = vrot.lane.b32.xlu0 %v4270_v45, %s4496_s2  ;;  %v4272_v47 = vpop.eup %4271 }
 0xfec   :  { %1084 = vrot.lane.b32.xlu1 %v4272_v47, %s4496_s2  ;;  %v4274_v48 = vpop.eup %4273 }
 0xfed   :  { %v4276_v32 = vpop.eup %4275 }
 0xfee   :  { %v4278_v33 = vpop.eup %4277  ;;  %v1030_v35 = vadd.f32 1.0, %v4276_v32  ;;  %v4392_v32 = vld [vmem:[#allocation7 + $0x24] ss:$8 sps:$4 sm:$0xff]  }
 0xfef   :  { %v1065_v38 = vadd.f32 1.0, %v4278_v33  ;;  %v4280_v39 = vpop.eup %4279  ;;  %v4393_v33 = vld [vmem:[#allocation7 + $0x20] ss:$8 sps:$4 sm:$0xff]  }
 0xff0   :  { %1082 = vrot.lane.b32.xlu1 %v4274_v48, %s4496_s2  ;;  %4281 = vrcp.f32 %v1030_v35  ;;  %v1064_v37 = vadd.f32 1.0, %v4280_v39  ;;  %v4394_v35 = vld [vmem:[#allocation7 + $0x34] ss:$8 sps:$4 sm:$0xff]  }
 0xff1   :  { %4283 = vrcp.f32 %v1065_v38  ;;  %v4395_v38 = vld [vmem:[#allocation7 + $0x30] ss:$8 sps:$4 sm:$0xff]  }
 0xff2   :  { %4285 = vrcp.f32 %v1064_v37 }
 0xffa   :  { %v4282_v49 = vpop.eup %4281 }
 0xffb   :  { %v4284_v54 = vpop.eup %4283  ;;  %v1034_v24 = vmul.f32 %v4282_v49, %v4825_v56 }
 0xffc   :  { %v4286_v36 = vpop.eup %4285  ;;  %v1079_v5 = vmul.f32 %v4284_v54, %v1075_v19 }
 0xffd   :  { %v1078_v27 = vmul.f32 %v4286_v36, %v1074_v7 }
0x105d   :  { %v1037_v40 = vpop.permute.xlu0 %1036 }
0x105e   :  { %v1039_v52 = vmul.f32 %v4282_v49, %v1037_v40  ;;  %v1085_v57 = vpop.permute.xlu1 %1084 }
0x105f   :  { %v1089_v60 = vmul.f32 %v4284_v54, %v1085_v57 }
0x1060   :  { %1041 = vrot.lane.b32.xlu1 %v1039_v52, %s4497_s21  ;;  %v4901_v52 = vld [vmem:[#allocation5 + $0x40] ss:$0 sm:$0xff] }
0x1061   :  { %1094 = vrot.lane.b32.xlu0 %v1089_v60, %s4497_s21 }
0x1062   :  { %v1083_v46 = vpop.permute.xlu1 %1082 }
0x1063   :  { %v1088_v0 = vmul.f32 %v4286_v36, %v1083_v46 }
0x1065   :  { %1092 = vrot.lane.b32.xlu0 %v1088_v0, %s4497_s21 }
0x10d2   :  { %v1042_v2 = vpop.permute.xlu1 %1041 }
0x10d3   :  { %v4872_v29 = vadd.f32 %v1042_v2, %v1034_v24  ;;  %v1095_v6 = vpop.permute.xlu0 %1094 }
0x10d4   :  { %v4876_v25 = vadd.f32 %v1095_v6, %v1079_v5 }
0x10d5   :  { %4287 = vtanh.f32 %v4872_v29 }
0x10d6   :  { %4289 = vtanh.f32 %v4876_v25 }
0x10d7   :  { %v1093_v8 = vpop.permute.xlu0 %1092 }
0x10d8   :  { %v4879_v10 = vadd.f32 %v1093_v8, %v1078_v27 }
0x10da   :  { %4291 = vtanh.f32 %v4879_v10 }
0x10df   :  { %v4288_v56 = vpop.eup %4287 }
0x10e0   :  { %1047 = vrot.lane.b32.xlu0 %v4288_v56, %s4496_s2  ;;  %v4290_v63 = vpop.eup %4289 }
0x10e1   :  { %1106 = vrot.lane.b32.xlu1 %v4290_v63, %s4496_s2 }
0x10e4   :  { %v4292_v11 = vpop.eup %4291 }
0x10e5   :  { %1104 = vrot.lane.b32.xlu1 %v4292_v11, %s4496_s2 }
0x1152   :  { %v1048_v1 = vpop.permute.xlu0 %1047 }
0x1153   :  { %v1050_v12 = vmul.f32 %v4282_v49, %v1048_v1  ;;  %v1107_v13 = vpop.permute.xlu1 %1106 }
0x1154   :  { %v1111_v16 = vmul.f32 %v4284_v54, %v1107_v13 }
0x1155   :  { %v1121_v14 = vrot.slane %v1050_v12, 3  ;;  %v1601_v15 = vrot.slane %v1050_v12, %v4735_v4 }
0x1156   :  { %v1114_v28 = vrot.slane %v1111_v16, 7 }
0x1157   :  { %v1602_v17 = vcombine.high %v1601_v15, %v1601_v15  ;;  %v1609_v21 = vrot.slane %v1601_v15, %v4735_v4  ;;  %1122 = vrot.lane.b32.xlu1 %v1121_v14, %s4496_s2  ;;  %v1105_v22 = vpop.permute.xlu1 %1104 }
0x1158   :  { %v1110_v59 = vmul.f32 %v4286_v36, %v1105_v22  ;;  %v1228_v22 = vrot.slane %v4876_v25, 7 }
0x1159   :  { %v1616_v23 = vrot.slane %v1602_v17, %v4735_v4  ;;  %v1717_v26 = vrot.slane %v1609_v21, %v4740_v9 }
0x115a   :  { %v1116_v53 = vsel %vm1115_vm11, %v1114_v28, %v1110_v59  ;;  %vm3700_vm11 = vcmask 310272  }
0x115b   :  { %v1721_v34 = vrot.slane %v1616_v23, %v4740_v9  ;;  %v4892_v58 = vsel %vm1763_vm12, %v4845_v41, %v1717_v26  ;;  %1117 = vrot.lane.b32.xlu0 %v1116_v53, %s4497_s21  ;;  %v4390_v41 = vld [vmem:[#allocation7 + $0x14] ss:$8 sps:$4 sm:$0xff]   ;;  %v1227_v53 = vrot.slane %v4879_v10, 7 }
0x115d   :  { %v4896_v42 = vsel %vm1763_vm12, %v4849_v55, %v1721_v34  ;;  %v4391_v55 = vld [vmem:[#allocation7 + $0x10] ss:$8 sps:$4 sm:$0xff]   ;;  %vm3702_vm12 = vcmask 834560  }
0x11c9   :  { %v1123_v30 = vpop.permute.xlu1 %1122 }
0x11cd   :  { %v1118_v62 = vpop.permute.xlu0 %1117 }
0x11ce   :  { %v1125_v43 = vsel %vm191_vm1, %v1118_v62, %v1123_v30 }
0x11cf   :  { %v1126_v44 = vpack.c.bf16 %v1125_v43, %v1125_v43 }
0x11d1   :  { %v1128_v45 = vshrl.u32 %v1126_v44, 16  ;;  %v1131_v47 = vshll.u32 %v1126_v44, 16 }
0x11d3   :  { %v1130_v48 = vrot.slane %v1128_v45, 2  ;;  %v1133_v50 = vrot.slane %v1131_v47, 3 }
0x11d5   :  { %v1134_v61 = vor.u32 %v1133_v50, %v1130_v48 }
0x11d7   :  { %3758 = vmatmul.mubr.msk.bf16.vlgmr.msra.gmra.mrb[12].mxu1 %vm379_vm3, %v1134_v61 }
0x11d8   :  { %1441 = vmatpush1.bf16.msra.mxu1 %v4389_v31  ;;  %1472 = vmatprep.mubr.bf16.mxu1 %v4498_v51 }
0x11d9   :  { %1442 = vmatprep.subr.bf16.mxu1 %v4390_v41 }
0x11dc   :  { %1443 = vmatpush1.bf16.msra.mxu1 %v4391_v55 }
0x11dd   :  { %1444 = vmatprep.subr.bf16.mxu1 %v4392_v32 }
0x11e0   :  { %1445 = vmatpush1.bf16.msra.mxu1 %v4393_v33 }
0x11e1   :  { %1446 = vmatprep.subr.bf16.mxu1 %v4394_v35 }
0x11e4   :  { %1447 = vmatpush1.bf16.msra.mxu1 %v4395_v38 }
0x12aa   :  { %v1172_v39 = vpop.f32.mrb[12].mxu1 }
0x12ab   :  { %v1206_v37 = vrot.slane %v1172_v39, 3  ;;  %v1174_v49 = vpop.f32.mrb[13].mxu1  ;;  %v1205_v40 = vrot.slane %v1172_v39, 2 }
0x12ac   :  { %v1179_v51 = vadd.f32 %v4901_v52, %v1174_v49  ;;  %v1176_v54 = vpop.f32.mrb[14].mxu1 }
0x12ad   :  { %v1210_v57 = vadd.f32 %v1206_v37, %v4598_v18  ;;  %v1177_v60 = vpop.f32.mrb[15].mxu1  ;;  %v1209_v36 = vadd.f32 %v1205_v40, %v4600_v20 }
0x12ae   :  { %4293 = vtanh.f32 %v1179_v51  ;;  %v3759_v24 = vmul.f32 -1.442695, %v1179_v51 }
0x12af   :  { %4295 = vtanh.f32 %v1210_v57  ;;  %v3761_v2 = vmul.f32 -1.442695, %v1210_v57  ;;  %v3760_v5 = vmul.f32 -1.442695, %v1209_v36 }
0x12b0   :  { %4297 = vtanh.f32 %v1209_v36 }
0x12b1   :  { %4299 = vpow2.f32 %v3759_v24 }
0x12b2   :  { %4301 = vpow2.f32 %v3761_v2 }
0x12b3   :  { %4303 = vpow2.f32 %v3760_v5 }
0x12b8   :  { %v4294_v46 = vpop.eup %4293 }
0x12b9   :  { %1189 = vrot.lane.b32.xlu1 %v4294_v46, %s4496_s2  ;;  %v4296_v0 = vpop.eup %4295 }
0x12ba   :  { %1237 = vrot.lane.b32.xlu0 %v4296_v0, %s4496_s2  ;;  %v4298_v19 = vpop.eup %4297 }
0x12bb   :  { %v4300_v6 = vpop.eup %4299 }
0x12bc   :  { %v4302_v7 = vpop.eup %4301  ;;  %v1183_v27 = vadd.f32 1.0, %v4300_v6 }
0x12bd   :  { %v1218_v8 = vadd.f32 1.0, %v4302_v7  ;;  %v4304_v56 = vpop.eup %4303 }
0x12be   :  { %1235 = vrot.lane.b32.xlu0 %v4298_v19, %s4496_s2  ;;  %4305 = vrcp.f32 %v1183_v27  ;;  %v1217_v63 = vadd.f32 1.0, %v4304_v56 }
0x12bf   :  { %4307 = vrcp.f32 %v1218_v8 }
0x12c0   :  { %4309 = vrcp.f32 %v1217_v63 }
0x12c8   :  { %v4306_v11 = vpop.eup %4305 }
0x12c9   :  { %v4308_v13 = vpop.eup %4307  ;;  %v1187_v23 = vmul.f32 %v4306_v11, %v4872_v29 }
0x12ca   :  { %v4310_v16 = vpop.eup %4309  ;;  %v1232_v59 = vmul.f32 %v4308_v13, %v1228_v22 }
0x12cb   :  { %v1231_v62 = vmul.f32 %v4310_v16, %v1227_v53 }
0x132b   :  { %v1190_v1 = vpop.permute.xlu1 %1189 }
0x132c   :  { %v1192_v12 = vmul.f32 %v4306_v11, %v1190_v1  ;;  %v1238_v14 = vpop.permute.xlu0 %1237 }
0x132d   :  { %v1242_v15 = vmul.f32 %v4308_v13, %v1238_v14 }
0x132e   :  { %1194 = vrot.lane.b32.xlu0 %v1192_v12, %s4497_s21 }
0x132f   :  { %1247 = vrot.lane.b32.xlu1 %v1242_v15, %s4497_s21 }
0x1330   :  { %v1236_v17 = vpop.permute.xlu0 %1235 }
0x1331   :  { %v1241_v21 = vmul.f32 %v4310_v16, %v1236_v17 }
0x1333   :  { %1245 = vrot.lane.b32.xlu1 %v1241_v21, %s4497_s21 }
0x13a0   :  { %v1195_v26 = vpop.permute.xlu0 %1194 }
0x13a1   :  { %v4914_v28 = vadd.f32 %v1195_v26, %v1187_v23  ;;  %v1248_v34 = vpop.permute.xlu1 %1247 }
0x13a2   :  { %v4918_v30 = vadd.f32 %v1248_v34, %v1232_v59 }
0x13a3   :  { %4311 = vtanh.f32 %v4914_v28 }
0x13a4   :  { %4313 = vtanh.f32 %v4918_v30 }
0x13a5   :  { %v1246_v43 = vpop.permute.xlu1 %1245 }
0x13a6   :  { %v4921_v44 = vadd.f32 %v1246_v43, %v1231_v62  ;;  %v1375_v62 = vrot.slane %v4918_v30, 7 }
0x13a8   :  { %4315 = vtanh.f32 %v4921_v44 }
0x13ad   :  { %v4312_v29 = vpop.eup %4311 }
0x13ae   :  { %1200 = vrot.lane.b32.xlu1 %v4312_v29, %s4496_s2  ;;  %v4314_v25 = vpop.eup %4313 }
0x13af   :  { %1259 = vrot.lane.b32.xlu0 %v4314_v25, %s4496_s2  ;;  %v1374_v25 = vrot.slane %v4921_v44, 7 }
0x13b2   :  { %v4316_v45 = vpop.eup %4315 }
0x13b3   :  { %1257 = vrot.lane.b32.xlu0 %v4316_v45, %s4496_s2 }
0x1420   :  { %v1201_v10 = vpop.permute.xlu1 %1200 }
0x1421   :  { %v1203_v47 = vmul.f32 %v4306_v11, %v1201_v10  ;;  %v1260_v48 = vpop.permute.xlu0 %1259 }
0x1422   :  { %v1264_v31 = vmul.f32 %v4308_v13, %v1260_v48 }
0x1423   :  { %v1274_v50 = vrot.slane %v1203_v47, 2  ;;  %v1623_v61 = vrot.slane %v1203_v47, %v4735_v4 }
0x1424   :  { %v1267_v38 = vrot.slane %v1264_v31, 7 }
0x1425   :  { %v1624_v41 = vcombine.high %v1623_v61, %v1623_v61  ;;  %v1631_v55 = vrot.slane %v1623_v61, %v4735_v4  ;;  %1275 = vrot.lane.b32.xlu0 %v1274_v50, %s4496_s2  ;;  %v1258_v32 = vpop.permute.xlu0 %1257 }
0x1426   :  { %v1263_v39 = vmul.f32 %v4310_v16, %v1258_v32 }
0x1427   :  { %v1638_v33 = vrot.slane %v1624_v41, %v4735_v4  ;;  %v1727_v35 = vrot.slane %v1631_v55, %v4740_v9 }
0x1428   :  { %v1269_v49 = vsel %vm1268_vm13, %v1267_v38, %v1263_v39 }
0x1429   :  { %v1731_v37 = vrot.slane %v1638_v33, %v4740_v9  ;;  %v4934_v40 = vsel %vm1766_vm14, %v4892_v58, %v1727_v35  ;;  %1270 = vrot.lane.b32.xlu1 %v1269_v49, %s4497_s21 }
0x142b   :  { %v4938_v51 = vsel %vm1766_vm14, %v4896_v42, %v1731_v37 }
0x1497   :  { %v1276_v54 = vpop.permute.xlu0 %1275 }
0x149b   :  { %v1271_v57 = vpop.permute.xlu1 %1270 }
0x149c   :  { %v1278_v60 = vsel %vm191_vm1, %v1271_v57, %v1276_v54 }
0x149d   :  { %v1279_v36 = vpack.c.bf16 %v1278_v60, %v1278_v60 }
0x149f   :  { %v1281_v46 = vrot.slane %v1279_v36, 3 }
0x14a1   :  { %3762 = vmatmul.mubr.msk.bf16.vlgmr.msra.gmra.mrb[16].mxu0 %vm379_vm3, %v1281_v46 }
0x1574   :  { %v1319_v0 = vpop.f32.mrb[16].mxu0 }
0x1575   :  { %v1352_v19 = vrot.slane %v1319_v0, 1  ;;  %v1353_v24 = vrot.slane %v1319_v0, 2  ;;  %v1321_v2 = vpop.f32.mrb[17].mxu0 }
0x1576   :  { %v1326_v58 = vadd.f32 %v4901_v52, %v1321_v2  ;;  %v1323_v5 = vpop.f32.mrb[18].mxu0 }
0x1577   :  { %v1357_v6 = vadd.f32 %v1353_v24, %v4598_v18  ;;  %v1324_v7 = vpop.f32.mrb[19].mxu0  ;;  %v1356_v42 = vadd.f32 %v1352_v19, %v4600_v20 }
0x1578   :  { %4317 = vtanh.f32 %v1326_v58  ;;  %v3763_v63 = vmul.f32 -1.442695, %v1326_v58 }
0x1579   :  { %4319 = vtanh.f32 %v1357_v6  ;;  %v3765_v11 = vmul.f32 -1.442695, %v1357_v6  ;;  %v3764_v1 = vmul.f32 -1.442695, %v1356_v42 }
0x157a   :  { %4321 = vtanh.f32 %v1356_v42 }
0x157b   :  { %4323 = vpow2.f32 %v3763_v63 }
0x157c   :  { %4325 = vpow2.f32 %v3765_v11 }
0x157d   :  { %4327 = vpow2.f32 %v3764_v1 }
0x1582   :  { %v4318_v27 = vpop.eup %4317 }
0x1583   :  { %1336 = vrot.lane.b32.xlu1 %v4318_v27, %s4496_s2  ;;  %v4320_v8 = vpop.eup %4319 }
0x1584   :  { %1384 = vrot.lane.b32.xlu0 %v4320_v8, %s4496_s2  ;;  %v4322_v56 = vpop.eup %4321 }
0x1585   :  { %v4324_v18 = vpop.eup %4323 }
0x1586   :  { %v4326_v20 = vpop.eup %4325  ;;  %v1330_v12 = vadd.f32 1.0, %v4324_v18 }
0x1587   :  { %1382 = vrot.lane.b32.xlu1 %v4322_v56, %s4496_s2  ;;  %v4328_v13 = vpop.eup %4327  ;;  %v1365_v14 = vadd.f32 1.0, %v4326_v20 }
0x1588   :  { %v1364_v15 = vadd.f32 1.0, %v4328_v13  ;;  %4329 = vrcp.f32 %v1330_v12 }
0x1589   :  { %4331 = vrcp.f32 %v1365_v14 }
0x158a   :  { %4333 = vrcp.f32 %v1364_v15 }
0x1592   :  { %v4330_v16 = vpop.eup %4329 }
0x1593   :  { %v4332_v22 = vpop.eup %4331  ;;  %v1334_v43 = vmul.f32 %v4330_v16, %v4914_v28 }
0x1594   :  { %v4334_v59 = vpop.eup %4333  ;;  %v1379_v10 = vmul.f32 %v4332_v22, %v1375_v62 }
0x1595   :  { %v1378_v50 = vmul.f32 %v4334_v59, %v1374_v25 }
0x15f5   :  { %v1337_v17 = vpop.permute.xlu1 %1336 }
0x15f6   :  { %v1339_v21 = vmul.f32 %v4330_v16, %v1337_v17  ;;  %v1385_v23 = vpop.permute.xlu0 %1384 }
0x15f7   :  { %v1389_v26 = vmul.f32 %v4332_v22, %v1385_v23 }
0x15f8   :  { %1341 = vrot.lane.b32.xlu0 %v1339_v21, %s4497_s21 }
0x15f9   :  { %v1383_v34 = vpop.permute.xlu1 %1382  ;;  %1394 = vrot.lane.b32.xlu1 %v1389_v26, %s4497_s21 }
0x15fa   :  { %v1388_v53 = vmul.f32 %v4334_v59, %v1383_v34  ;;  %v67_v34 = vld [vmem:[#allocation5 + $0x50] sm:$0xff] }
0x15fc   :  { %1392 = vrot.lane.b32.xlu0 %v1388_v53, %s4497_s21  ;;  %v68_v53 = vld [vmem:[#allocation5 + $0x58] sm:$0xff] }
0x166a   :  { %v1342_v29 = vpop.permute.xlu0 %1341 }
0x166b   :  { %v4954_v45 = vadd.f32 %v1342_v29, %v1334_v43  ;;  %v1395_v47 = vpop.permute.xlu1 %1394  ;;  %v69_v29 = vld [vmem:[#allocation5 + $0x60] sm:$0xff] }
0x166c   :  { %v1399_v48 = vadd.f32 %v1395_v47, %v1379_v10  ;;  %v4067_v25 = vpack.c.bf16 %v69_v29, %v68_v53 }
0x166d   :  { %4335 = vtanh.f32 %v4954_v45 }
0x166e   :  { %v1393_v61 = vpop.permute.xlu0 %1392  ;;  %4337 = vtanh.f32 %v1399_v48 }
0x166f   :  { %v1398_v31 = vadd.f32 %v1393_v61, %v1378_v50 }
0x1671   :  { %4339 = vtanh.f32 %v1398_v31 }
0x1677   :  { %v4336_v41 = vpop.eup %4335 }
0x1678   :  { %1347 = vrot.lane.b32.xlu1 %v4336_v41, %s4496_s2  ;;  %v4338_v30 = vpop.eup %4337 }
0x1679   :  { %1406 = vrot.lane.b32.xlu0 %v4338_v30, %s4496_s2 }
0x167b   :  { %v4340_v28 = vpop.eup %4339 }
0x167c   :  { %1404 = vrot.lane.b32.xlu1 %v4340_v28, %s4496_s2 }
0x16ea   :  { %v1348_v44 = vpop.permute.xlu1 %1347 }
0x16eb   :  { %v1350_v55 = vmul.f32 %v4330_v16, %v1348_v44  ;;  %v1407_v32 = vpop.permute.xlu0 %1406 }
0x16ec   :  { %v1411_v38 = vmul.f32 %v4332_v22, %v1407_v32  ;;  %v4500_v32 = vmov 0.0  }
0x16ed   :  { %v1422_v33 = vrot.slane %v1350_v55, 1  ;;  %v1645_v35 = vrot.slane %v1350_v55, %v4735_v4  ;;  %3916 = vmatprep.subr.mxu1 %v4500_v32 }
0x16ee   :  { %v1405_v39 = vpop.permute.xlu1 %1404  ;;  %v1414_v54 = vrot.slane %v1411_v38, 7 }
0x16ef   :  { %v1646_v37 = vcombine.high %v1645_v35, %v1645_v35  ;;  %v1653_v49 = vrot.slane %v1645_v35, %v4735_v4  ;;  %v1410_v57 = vmul.f32 %v4334_v59, %v1405_v39  ;;  %1423 = vrot.lane.b32.xlu1 %v1422_v33, %s4496_s2  ;;  %v66_v59 = vld [vmem:[#allocation5 + $0x48] sm:$0xff] }
0x16f0   :  { %v4063_v43 = vpack.c.bf16 %v67_v34, %v66_v59 }
0x16f1   :  { %v1660_v60 = vrot.slane %v1646_v37, %v4735_v4  ;;  %v1737_v36 = vrot.slane %v1653_v49, %v4740_v9  ;;  %v4140_v46 = vpack.i.bf16 %v1414_v54, %v1410_v57 }
0x16f2   :  { %4064 = vmatprep.subr.bf16.mxu0 %v4063_v43 }
0x16f3   :  { %4141 = vrot.lane.b32.xlu0 %v4140_v46, %s4497_s21  ;;  %v1770_v0 = vsel %vm1769_vm15, %v4934_v40, %v1737_v36  ;;  %v1741_v19 = vrot.slane %v1660_v60, %v4740_v9  ;;  %4066 = vmatpush3.bf16.msra.mxu0 %v4063_v43 }
0x16f4   :  { %4068 = vmatprep.subr.bf16.mxu0 %v4067_v25 }
0x16f5   :  { %v1771_v24 = vsel %vm1769_vm15, %v4938_v51, %v1741_v19 }
0x16f7   :  { %4070 = vmatpush3.bf16.msra.mxu0 %v4067_v25 }
0x16f8   :  { %3911 = vmatprep.subr.mxu0 %v4500_v32 }
0x1761   :  { %v1424_v6 = vpop.permute.xlu1 %1423 }
0x1765   :  { %v4142_v2 = vpop.permute.xlu0 %4141 }
0x1766   :  { %v4144_v58 = vunpack.i.h.bf16 %v4142_v2  ;;  %v4143_v5 = vunpack.i.l.bf16 %v4142_v2 }
0x1768   :  { %v1426_v7 = vsel %vm191_vm1, %v4143_v5, %v1424_v6  ;;  %v1427_v42 = vsel %vm191_vm1, %v4144_v58, %v1424_v6 }
0x1769   :  { %v1428_v27 = vpack.c.bf16 %v1427_v42, %v1426_v7 }
0x176b   :  { %v1430_v8 = vshrl.u32 %v1428_v27, 16  ;;  %v1433_v56 = vshll.u32 %v1428_v27, 16 }
0x176d   :  { %v1432_v63 = vrot.slane %v1430_v8, 3  ;;  %v1435_v11 = vrot.slane %v1433_v56, 4 }
0x176f   :  { %v1436_v1 = vor.u32 %v1435_v11, %v1432_v63 }
0x1771   :  { %3766 = vmatmul.mubr.msk.bf16.vlgmr.msra.gmra.mrb[16].mxu1 %vm379_vm3, %v1436_v1 }
0x1772   :  { %3918 = vmatprep.mubr.msk.f32.mxu1 %vm4501_vm5, %v4500_v32 }
0x1844   :  { %v1474_v40 = vpop.f32.mrb[16].mxu1 }
0x1845   :  { %v1475_v18 = vpop.f32.mrb[17].mxu1 }
0x1846   :  { %v1480_v51 = vadd.f32 %v4901_v52, %v1475_v18  ;;  %v1477_v20 = vpop.f32.mrb[18].mxu1 }
0x1847   :  { %v1478_v12 = vpop.f32.mrb[19].mxu1 }
0x1848   :  { %4341 = vtanh.f32 %v1480_v51  ;;  %v3767_v14 = vmul.f32 -1.442695, %v1480_v51 }
0x184a   :  { %4343 = vpow2.f32 %v3767_v14 }
0x1852   :  { %v4342_v13 = vpop.eup %4341 }
0x1853   :  { %1490 = vrot.lane.b32.xlu0 %v4342_v13, %s4496_s2 }
0x1854   :  { %v4344_v15 = vpop.eup %4343 }
0x1855   :  { %v1484_v16 = vadd.f32 1.0, %v4344_v15 }
0x1857   :  { %4345 = vrcp.f32 %v1484_v16 }
0x1861   :  { %v4346_v17 = vpop.eup %4345 }
0x1862   :  { %v1488_v23 = vmul.f32 %v4346_v17, %v4954_v45 }
0x18c5   :  { %v1491_v21 = vpop.permute.xlu0 %1490 }
0x18c6   :  { %v1493_v22 = vmul.f32 %v4346_v17, %v1491_v21 }
0x18c8   :  { %1495 = vrot.lane.b32.xlu1 %v1493_v22, %s4497_s21 }
0x193a   :  { %v1496_v26 = vpop.permute.xlu1 %1495 }
0x193b   :  { %v1498_v52 = vadd.f32 %v1496_v26, %v1488_v23 }
0x193d   :  { %4347 = vtanh.f32 %v1498_v52 }
0x1947   :  { %v4348_v62 = vpop.eup %4347 }
0x1948   :  { %1501 = vrot.lane.b32.xlu0 %v4348_v62, %s4496_s2 }
0x19ba   :  { %v1502_v10 = vpop.permute.xlu0 %1501 }
0x19bb   :  { %v4977_v47 = vmul.f32 %v4346_v17, %v1502_v10 }
0x19bd   :  { %v1668_v45 = vrot.slane %v4977_v47, %v4735_v4 }
0x19bf   :  { %v1669_v48 = vcombine.high %v1668_v45, %v1668_v45  ;;  %v1676_v50 = vrot.slane %v1668_v45, %v4735_v4 }
0x19c1   :  { %v1683_v61 = vrot.slane %v1669_v48, %v4735_v4  ;;  %v1747_v31 = vrot.slane %v1676_v50, %v4740_v9  ;;  %v3768_v4 = vld [vmem:[#allocation5 + $0x68] ss:$0 sm:$0xff] }
0x19c3   :  { %v1773_v41 = vsel %vm1772_vm4, %v1770_v0, %v1747_v31  ;;  %v1751_v30 = vrot.slane %v1683_v61, %v4740_v9 }
0x19c4   :  { %1781 = vrot.lane.b32.xlu1 %v1773_v41, %s4497_s21 }
0x19c5   :  { %v1774_v28 = vsel %vm1772_vm4, %v1771_v24, %v1751_v30 }
0x19c6   :  { %1783 = vrot.lane.b32.xlu0 %v1774_v28, %s4497_s21 }
0x1a36   :  { %v1782_v44 = vpop.permute.xlu1 %1781 }
0x1a37   :  { %3908 = vmatprep.mubr.msk.f32.mxu0 %vm191_vm1, %v1782_v44 }
0x1a38   :  { %v1784_v55 = vpop.permute.xlu0 %1783 }
0x1a39   :  { %3909 = vmatmul.mubr.msk.f32.vlgmr.msra.gmra.mrb[2].mxu0 %vm191_vm1, %v1784_v55 }
0x1a3a   :  { %3913 = vmatprep.mubr.msk.f32.mxu0 %vm4501_vm5, %v4500_v32 }
0x1b0c   :  { %v3910_v9 = vpop.f32.mrb[2].mxu0 }
0x1b0d   :  { %v4995_v33 = vadd.f32 %v3910_v9, %v3768_v4  ;;  %v1855_v35 = vpop.f32.mrb[3].mxu0 }
0x1b0e   :  { %v4997_v38 = vadd.f32 %v3768_v4, %v1855_v35 }
0x1b0f   :  { %1943 = vrot.lane.b32.xlu0 %v4995_v33, %s4502_s22 }
0x1b10   :  { %1865 = vrot.lane.b32.xlu1 %v4997_v38, %s4502_s22 }
0x1b81   :  { %v1944_v39 = vpop.permute.xlu0 %1943 }
0x1b82   :  { %3917 = vmatpush3.xpose.msk.msra.mxu1 %vm1867_vm6, %v1944_v39  ;;  %v1866_v37 = vpop.permute.xlu1 %1865 }
0x1b83   :  { %3912 = vmatpush3.xpose.msk.msra.mxu0 %vm1867_vm6, %v1866_v37  ;;  %3926 = vmatprep.subr.mxu1 %v4500_v32 }
0x1b84   :  { %3921 = vmatprep.subr.mxu0 %v4500_v32 }
0x1b85   :  { %3919 = vmatmul.mubr.msk.f32.vlgmr.msra.gmra.mrb[2].mxu1 %vm1867_vm6, %v4995_v33 }
0x1b86   :  { %3914 = vmatmul.mubr.msk.f32.vlgmr.msra.gmra.mrb[20].mxu0 %vm1867_vm6, %v4997_v38  ;;  %3928 = vmatprep.mubr.msk.f32.mxu1 %vm4501_vm5, %v4500_v32 }
0x1b87   :  { %3923 = vmatprep.mubr.msk.f32.mxu0 %vm4501_vm5, %v4500_v32 }
0x1c58   :  { %v2015_v49 = vpop.f32.mrb[2].mxu1 }
0x1c59   :  { %v1938_v54 = vpop.f32.mrb[20].mxu0  ;;  %v3920_v57 = vpop.f32.mrb[3].mxu1  ;;  %v2022_v60 = vsel %vm1867_vm6, %v2015_v49, -inf }
0x1c5a   :  { %2023 = vmax.xlane.f32.xlu0 %v2022_v60  ;;  %v3915_v36 = vpop.f32.mrb[21].mxu0  ;;  %v2019_v46 = vsel %vm1867_vm6, %v1938_v54, -inf }
0x1c5b   :  { %2020 = vmax.xlane.f32.xlu1 %v2019_v46 }
0x1c6c   :  { %2117 = vrot.lane.b32.xlu1 %v4995_v33, %s4496_s2 }
0x1c70   :  { %2041 = vrot.lane.b32.xlu0 %v4997_v38, %s4496_s2  ;;  %2195 = vrot.lane.b32.xlu1 %v4997_v38, %s4503_s23 }
0x1ce7   :  { %v2024_v0 = vpop.xlane.xlu0 %2023 }
0x1ce8   :  { %v2026_v19 = vsub.f32 %v2015_v49, %v2024_v0  ;;  %v2021_v24 = vpop.xlane.xlu1 %2020 }
0x1ce9   :  { %v2025_v2 = vsub.f32 %v1938_v54, %v2021_v24 }
0x1cea   :  { %v2029_v58 = vmul.f32 1.442695, %v2026_v19 }
0x1ceb   :  { %v2027_v5 = vmul.f32 1.442695, %v2025_v2  ;;  %v2042_v6 = vpop.permute.xlu0 %2041 }
0x1cec   :  { %4349 = vpow2.f32 %v2029_v58  ;;  %3922 = vmatpush3.msra.mxu0 %v2042_v6  ;;  %v2118_v7 = vpop.permute.xlu1 %2117 }
0x1ced   :  { %4351 = vpow2.f32 %v2027_v5  ;;  %3927 = vmatpush3.msra.mxu1 %v2118_v7  ;;  %3931 = vmatprep.subr.mxu0 %v4500_v32 }
0x1cee   :  { %3936 = vmatprep.subr.mxu1 %v4500_v32 }
0x1cf0   :  { %v2196_v63 = vpop.permute.xlu1 %2195 }
0x1cf6   :  { %v4350_v42 = vpop.eup %4349 }
0x1cf7   :  { %v4352_v27 = vpop.eup %4351  ;;  %v2034_v8 = vsel %vm1867_vm6, %v4350_v42, 0.0 }
0x1cf8   :  { %2035 = vadd.xlane.f32.xlu1 %v2034_v8  ;;  %v2031_v56 = vsel %vm1867_vm6, %v4352_v27, 0.0 }
0x1cf9   :  { %2032 = vadd.xlane.f32.xlu0 %v2031_v56 }
0x1d09   :  { %2193 = vrot.lane.b32.xlu1 %v4997_v38, %s4504_s24 }
0x1d0f   :  { %2273 = vrot.lane.b32.xlu0 %v4995_v33, %s4503_s23 }
0x1d13   :  { %2271 = vrot.lane.b32.xlu0 %v4995_v33, %s4504_s24 }
0x1d85   :  { %v2036_v11 = vpop.xlane.xlu1 %2035 }
0x1d86   :  { %4353 = vrcp.f32 %v2036_v11  ;;  %v2033_v1 = vpop.xlane.xlu0 %2032 }
0x1d87   :  { %4355 = vrcp.f32 %v2033_v1 }
0x1d89   :  { %v2194_v14 = vpop.permute.xlu1 %2193 }
0x1d8a   :  { %v2274_v18 = vpop.permute.xlu0 %2273 }
0x1d8e   :  { %v2272_v13 = vpop.permute.xlu0 %2271 }
0x1d90   :  { %v4354_v40 = vpop.eup %4353 }
0x1d91   :  { %v4356_v51 = vpop.eup %4355  ;;  %v5029_v20 = vmul.f32 %v4354_v40, %v4350_v42 }
0x1d92   :  { %v5031_v12 = vmul.f32 %v4356_v51, %v4352_v27 }
0x1d93   :  { %3929 = vmatmul.mubr.msk.f32.vlgmr.msra.gmra.mrb[20].mxu1 %vm1867_vm6, %v5029_v20 }
0x1d94   :  { %3937 = vmatpush3.xpose.msk.msra.mxu1 %vm1867_vm6, %v2274_v18  ;;  %3924 = vmatmul.mubr.msk.f32.vlgmr.msra.gmra.mrb[22].mxu0 %vm1867_vm6, %v5031_v12 }
0x1d95   :  { %3932 = vmatpush3.xpose.msk.msra.mxu0 %vm1867_vm6, %v2196_v63  ;;  %3938 = vmatprep.mubr.msk.f32.mxu1 %vm4501_vm5, %v4500_v32 }
0x1d96   :  { %3933 = vmatprep.mubr.msk.f32.mxu0 %vm4501_vm5, %v4500_v32  ;;  %3941 = vmatprep.subr.mxu0 %v4500_v32 }
0x1d97   :  { %3939 = vmatmul.mubr.msk.f32.vlgmr.msra.gmra.mrb[22].mxu1 %vm1867_vm6, %v2272_v13  ;;  %3946 = vmatprep.subr.mxu1 %v4500_v32 }
0x1d98   :  { %3934 = vmatmul.mubr.msk.f32.vlgmr.msra.gmra.mrb[24].mxu0 %vm1867_vm6, %v2194_v14  ;;  %3948 = vmatprep.mubr.msk.f32.mxu1 %vm4501_vm5, %v4500_v32 }
0x1d99   :  { %3943 = vmatprep.mubr.msk.f32.mxu0 %vm4501_vm5, %v4500_v32 }
0x1e66   :  { %v5051_v15 = vpop.f32.mrb[20].mxu1 }
0x1e67   :  { %v5053_v16 = vpop.f32.mrb[22].mxu0  ;;  %v3930_v17 = vpop.f32.mrb[21].mxu1 }
0x1e68   :  { %v3925_v21 = vpop.f32.mrb[23].mxu0 }
0x1e6a   :  { %v2345_v22 = vpop.f32.mrb[22].mxu1 }
0x1e6b   :  { %v2267_v23 = vpop.f32.mrb[24].mxu0  ;;  %v3940_v26 = vpop.f32.mrb[23].mxu1  ;;  %v2352_v52 = vsel %vm1867_vm6, %v2345_v22, -inf }
0x1e6c   :  { %2353 = vmax.xlane.f32.xlu0 %v2352_v52  ;;  %v3935_v59 = vpop.f32.mrb[25].mxu0  ;;  %v2349_v34 = vsel %vm1867_vm6, %v2267_v23, -inf }
0x1e6d   :  { %2350 = vmax.xlane.f32.xlu1 %v2349_v34 }
0x1e7e   :  { %2449 = vrot.lane.b32.xlu1 %v4995_v33, %s4505_s26 }
0x1e82   :  { %2373 = vrot.lane.b32.xlu0 %v4997_v38, %s4505_s26  ;;  %2527 = vrot.lane.b32.xlu1 %v4997_v38, %s4506_s27 }
0x1ef9   :  { %v2354_v53 = vpop.xlane.xlu0 %2353 }
0x1efa   :  { %v2356_v62 = vsub.f32 %v2345_v22, %v2354_v53  ;;  %v2351_v43 = vpop.xlane.xlu1 %2350 }
0x1efb   :  { %v2355_v29 = vsub.f32 %v2267_v23, %v2351_v43 }
0x1efc   :  { %v2359_v25 = vmul.f32 1.442695, %v2356_v62 }
0x1efd   :  { %v2357_v10 = vmul.f32 1.442695, %v2355_v29  ;;  %v2374_v45 = vpop.permute.xlu0 %2373 }
0x1efe   :  { %4357 = vpow2.f32 %v2359_v25  ;;  %3942 = vmatpush3.msra.mxu0 %v2374_v45  ;;  %v2450_v48 = vpop.permute.xlu1 %2449 }
0x1eff   :  { %4359 = vpow2.f32 %v2357_v10  ;;  %3947 = vmatpush3.msra.mxu1 %v2450_v48  ;;  %3951 = vmatprep.subr.mxu0 %v4500_v32 }
0x1f00   :  { %3956 = vmatprep.subr.mxu1 %v4500_v32 }
0x1f02   :  { %v2528_v30 = vpop.permute.xlu1 %2527 }
0x1f08   :  { %v4358_v50 = vpop.eup %4357 }
0x1f09   :  { %v4360_v61 = vpop.eup %4359  ;;  %v2364_v31 = vsel %vm1867_vm6, %v4358_v50, 0.0 }
0x1f0a   :  { %2365 = vadd.xlane.f32.xlu1 %v2364_v31  ;;  %v2361_v41 = vsel %vm1867_vm6, %v4360_v61, 0.0 }
0x1f0b   :  { %2362 = vadd.xlane.f32.xlu0 %v2361_v41 }
0x1f1b   :  { %2525 = vrot.lane.b32.xlu1 %v4997_v38, %s4507_s28 }
0x1f21   :  { %2605 = vrot.lane.b32.xlu0 %v4995_v33, %s4506_s27 }
0x1f25   :  { %2603 = vrot.lane.b32.xlu0 %v4995_v33, %s4507_s28 }
0x1f97   :  { %v2366_v28 = vpop.xlane.xlu1 %2365 }
0x1f98   :  { %4361 = vrcp.f32 %v2366_v28  ;;  %v2363_v44 = vpop.xlane.xlu0 %2362 }
0x1f99   :  { %4363 = vrcp.f32 %v2363_v44 }
0x1f9b   :  { %v2526_v49 = vpop.permute.xlu1 %2525 }
0x1f9c   :  { %v2606_v4 = vpop.permute.xlu0 %2605 }
0x1fa0   :  { %v2604_v37 = vpop.permute.xlu0 %2603 }
0x1fa2   :  { %v4362_v55 = vpop.eup %4361 }
0x1fa3   :  { %v4364_v9 = vpop.eup %4363  ;;  %v5069_v35 = vmul.f32 %v4362_v55, %v4358_v50 }
0x1fa4   :  { %v5071_v39 = vmul.f32 %v4364_v9, %v4360_v61 }
0x1fa5   :  { %3949 = vmatmul.mubr.msk.f32.vlgmr.msra.gmra.mrb[24].mxu1 %vm1867_vm6, %v5069_v35  ;;  %v2372_v23 = vadd.f32 %v5069_v35, %v5029_v20 }
0x1fa6   :  { %3957 = vmatpush3.xpose.msk.msra.mxu1 %vm1867_vm6, %v2606_v4  ;;  %3944 = vmatmul.mubr.msk.f32.vlgmr.msra.gmra.mrb[26].mxu0 %vm1867_vm6, %v5071_v39  ;;  %v2371_v52 = vadd.f32 %v5071_v39, %v5031_v12 }
0x1fa7   :  { %3952 = vmatpush3.xpose.msk.msra.mxu0 %vm1867_vm6, %v2528_v30  ;;  %3958 = vmatprep.mubr.msk.f32.mxu1 %vm4501_vm5, %v4500_v32 }
0x1fa8   :  { %3953 = vmatprep.mubr.msk.f32.mxu0 %vm4501_vm5, %v4500_v32  ;;  %3961 = vmatprep.subr.mxu0 %v4500_v32 }
0x1fa9   :  { %3959 = vmatmul.mubr.msk.f32.vlgmr.msra.gmra.mrb[26].mxu1 %vm1867_vm6, %v2604_v37  ;;  %3966 = vmatprep.subr.mxu1 %v4500_v32 }
0x1faa   :  { %3954 = vmatmul.mubr.msk.f32.vlgmr.msra.gmra.mrb[28].mxu0 %vm1867_vm6, %v2526_v49  ;;  %3968 = vmatprep.mubr.msk.f32.mxu1 %vm4501_vm5, %v4500_v32 }
0x1fab   :  { %3963 = vmatprep.mubr.msk.f32.mxu0 %vm4501_vm5, %v4500_v32 }
0x2078   :  { %v5091_v54 = vpop.f32.mrb[24].mxu1 }
0x2079   :  { %v5093_v57 = vpop.f32.mrb[26].mxu0  ;;  %v3950_v60 = vpop.f32.mrb[25].mxu1 }
0x207a   :  { %v3945_v36 = vpop.f32.mrb[27].mxu0 }
0x207c   :  { %v2677_v46 = vpop.f32.mrb[26].mxu1 }
0x207d   :  { %v2599_v0 = vpop.f32.mrb[28].mxu0  ;;  %v3960_v19 = vpop.f32.mrb[27].mxu1  ;;  %v2684_v24 = vsel %vm1867_vm6, %v2677_v46, -inf }
0x207e   :  { %2685 = vmax.xlane.f32.xlu0 %v2684_v24  ;;  %v3955_v2 = vpop.f32.mrb[29].mxu0  ;;  %v2681_v58 = vsel %vm1867_vm6, %v2599_v0, -inf }
0x207f   :  { %2682 = vmax.xlane.f32.xlu1 %v2681_v58 }
0x2090   :  { %2781 = vrot.lane.b32.xlu1 %v4995_v33, %s4508_s29 }
0x2094   :  { %2705 = vrot.lane.b32.xlu0 %v4997_v38, %s4508_s29  ;;  %2859 = vrot.lane.b32.xlu1 %v4997_v38, %s4509_s30 }
0x210b   :  { %v2686_v5 = vpop.xlane.xlu0 %2685 }
0x210c   :  { %v2688_v6 = vsub.f32 %v2677_v46, %v2686_v5  ;;  %v2683_v7 = vpop.xlane.xlu1 %2682 }
0x210d   :  { %v2687_v42 = vsub.f32 %v2599_v0, %v2683_v7 }
0x210e   :  { %v2691_v27 = vmul.f32 1.442695, %v2688_v6 }
0x210f   :  { %v2689_v8 = vmul.f32 1.442695, %v2687_v42  ;;  %v2706_v56 = vpop.permute.xlu0 %2705 }
0x2110   :  { %4365 = vpow2.f32 %v2691_v27  ;;  %3962 = vmatpush3.msra.mxu0 %v2706_v56  ;;  %v2782_v63 = vpop.permute.xlu1 %2781 }
0x2111   :  { %4367 = vpow2.f32 %v2689_v8  ;;  %3967 = vmatpush3.msra.mxu1 %v2782_v63  ;;  %3971 = vmatprep.subr.mxu0 %v4500_v32 }
0x2112   :  { %3976 = vmatprep.subr.mxu1 %v4500_v32 }
0x2114   :  { %v2860_v51 = vpop.permute.xlu1 %2859 }
0x211a   :  { %v4366_v11 = vpop.eup %4365 }
0x211b   :  { %v4368_v1 = vpop.eup %4367  ;;  %v2696_v40 = vsel %vm1867_vm6, %v4366_v11, 0.0 }
0x211c   :  { %2697 = vadd.xlane.f32.xlu1 %v2696_v40  ;;  %v2693_v18 = vsel %vm1867_vm6, %v4368_v1, 0.0 }
0x211d   :  { %2694 = vadd.xlane.f32.xlu0 %v2693_v18 }
0x212d   :  { %2857 = vrot.lane.b32.xlu1 %v4997_v38, %s4510_s4 }
0x2133   :  { %2937 = vrot.lane.b32.xlu0 %v4995_v33, %s4509_s30 }
0x2137   :  { %2935 = vrot.lane.b32.xlu0 %v4995_v33, %s4510_s4 }
0x21a9   :  { %v2698_v13 = vpop.xlane.xlu1 %2697 }
0x21aa   :  { %4369 = vrcp.f32 %v2698_v13  ;;  %v2695_v14 = vpop.xlane.xlu0 %2694  ;;  %v71_v13 = vld [vmem:[#allocation5 + $0x70] sm:$0xff] }
0x21ab   :  { %4371 = vrcp.f32 %v2695_v14  ;;  %v72_v14 = vld [vmem:[#allocation5 + $0x78] sm:$0xff] }
0x21ad   :  { %v2858_v12 = vpop.permute.xlu1 %2857 }
0x21ae   :  { %v2938_v21 = vpop.permute.xlu0 %2937 }
0x21b2   :  { %v2936_v20 = vpop.permute.xlu0 %2935 }
0x21b4   :  { %v4370_v17 = vpop.eup %4369 }
0x21b5   :  { %v4372_v22 = vpop.eup %4371  ;;  %v2702_v26 = vmul.f32 %v4370_v17, %v4366_v11  ;;  %v73_v17 = vld [vmem:[#allocation5 + $0x80] sm:$0xff] }
0x21b6   :  { %v2700_v59 = vmul.f32 %v4372_v22, %v4368_v1  ;;  %v74_v22 = vld [vmem:[#allocation5 + $0x88] sm:$0xff] }
0x21b7   :  { %v5113_v34 = vadd.f32 %v2702_v26, %v2372_v23  ;;  %3969 = vmatmul.mubr.msk.f32.vlgmr.msra.gmra.mrb[28].mxu1 %vm1867_vm6, %v2702_v26  ;;  %v4075_v23 = vpack.c.bf16 %v74_v22, %v73_v17 }
0x21b8   :  { %v5116_v53 = vadd.f32 %v2700_v59, %v2371_v52  ;;  %3977 = vmatpush3.xpose.msk.msra.mxu1 %vm1867_vm6, %v2938_v21  ;;  %3964 = vmatmul.mubr.msk.f32.vlgmr.msra.gmra.mrb[30].mxu0 %vm1867_vm6, %v2700_v59  ;;  %v4071_v21 = vpack.c.bf16 %v72_v14, %v71_v13 }
0x21b9   :  { %3972 = vmatpush3.xpose.msk.msra.mxu0 %vm1867_vm6, %v2860_v51  ;;  %3978 = vmatprep.mubr.msk.f32.mxu1 %vm4501_vm5, %v4500_v32 }
0x21ba   :  { %3973 = vmatprep.mubr.msk.f32.mxu0 %vm4501_vm5, %v4500_v32  ;;  %3986 = vmatprep.subr.mxu1 %v4500_v32 }
0x21bb   :  { %3979 = vmatmul.mubr.msk.f32.vlgmr.msra.gmra.mrb[30].mxu1 %vm1867_vm6, %v2936_v20  ;;  %3981 = vmatprep.subr.mxu0 %v4500_v32 }
0x21bc   :  { %3974 = vmatmul.mubr.msk.f32.vlgmr.msra.gmra.mrb[32].mxu0 %vm1867_vm6, %v2858_v12  ;;  %3988 = vmatprep.mubr.msk.f32.mxu1 %vm4501_vm5, %v4500_v32 }
0x21bd   :  { %3983 = vmatprep.mubr.msk.f32.mxu0 %vm4501_vm5, %v4500_v32 }
0x228a   :  { %v2853_v62 = vpop.f32.mrb[28].mxu1 }
0x228b   :  { %v2777_v43 = vpop.f32.mrb[30].mxu0  ;;  %v3970_v29 = vpop.f32.mrb[29].mxu1 }
0x228c   :  { %v3965_v25 = vpop.f32.mrb[31].mxu0 }
0x228e   :  { %v3009_v10 = vpop.f32.mrb[30].mxu1 }
0x228f   :  { %v2931_v45 = vpop.f32.mrb[32].mxu0  ;;  %v3980_v48 = vpop.f32.mrb[31].mxu1  ;;  %v3016_v50 = vsel %vm1867_vm6, %v3009_v10, -inf }
0x2290   :  { %3017 = vmax.xlane.f32.xlu0 %v3016_v50  ;;  %v3975_v61 = vpop.f32.mrb[33].mxu0  ;;  %v3013_v31 = vsel %vm1867_vm6, %v2931_v45, -inf }
0x2291   :  { %3014 = vmax.xlane.f32.xlu1 %v3013_v31  ;;  %v77_v61 = vld [vmem:[#allocation5 + $0xa0] sm:$0xff]  ;;  %v78_v31 = vld [vmem:[#allocation5 + $0xa8] sm:$0xff] }
0x231d   :  { %v3018_v41 = vpop.xlane.xlu0 %3017 }
0x231e   :  { %v3020_v30 = vsub.f32 %v3009_v10, %v3018_v41  ;;  %v3015_v28 = vpop.xlane.xlu1 %3014 }
0x231f   :  { %v3019_v44 = vsub.f32 %v2931_v45, %v3015_v28 }
0x2320   :  { %v3023_v55 = vmul.f32 1.442695, %v3020_v30  ;;  %v79_v30 = vld [vmem:[#allocation5 + $0xb0] sm:$0xff] }
0x2321   :  { %v3021_v4 = vmul.f32 1.442695, %v3019_v44  ;;  %v4083_v28 = vpack.c.bf16 %v79_v30, %v78_v31  ;;  %v80_v44 = vld [vmem:[#allocation5 + $0xb8] sm:$0xff] }
0x2322   :  { %4373 = vpow2.f32 %v3023_v55  ;;  %v81_v55 = vld [vmem:[#allocation5 + $0xc0] sm:$0xff] }
0x2323   :  { %4375 = vpow2.f32 %v3021_v4  ;;  %v4086_v4 = vpack.c.bf16 %v81_v55, %v80_v44 }
0x232c   :  { %v4374_v9 = vpop.eup %4373 }
0x232d   :  { %v4376_v35 = vpop.eup %4375  ;;  %v3028_v39 = vsel %vm1867_vm6, %v4374_v9, 0.0 }
0x232e   :  { %3029 = vadd.xlane.f32.xlu1 %v3028_v39  ;;  %v3025_v37 = vsel %vm1867_vm6, %v4376_v35, 0.0 }
0x232f   :  { %3026 = vadd.xlane.f32.xlu0 %v3025_v37  ;;  %v3795_v37 = vld [vmem:[#allocation5 + $0x90] ss:$0 sm:$0xff] }
0x233f   :  { %3113 = vrot.lane.b32.xlu1 %v4995_v33, %s4511_s5 }
0x2343   :  { %3193 = vrot.lane.b32.xlu1 %v5093_v57, %s4494_s25  ;;  %v4513_v57 = vmov 1983009808  }
0x2344   :  { %v3583_v46 = vunpack.c.l.s4 %v4513_v57 }
0x2345   :  { %3037 = vrot.lane.b32.xlu0 %v4997_v38, %s4511_s5 }
0x2346   :  { %v3584_v0 = vunpack.c.0.s8 %v3583_v46 }
0x2347   :  { %3201 = vrot.lane.b32.xlu1 %v2777_v43, %s4512_s6 }
0x2348   :  { %v3587_v58 = vsub.s32 %v3584_v0, %v4732_v3 }
0x2349   :  { %3195 = vrot.lane.b32.xlu0 %v5091_v54, %s4494_s25 }
0x234d   :  { %3203 = vrot.lane.b32.xlu0 %v2853_v62, %s4512_s6 }
0x23bb   :  { %v3030_v49 = vpop.xlane.xlu1 %3029 }
0x23bc   :  { %4377 = vrcp.f32 %v3030_v49  ;;  %v3027_v60 = vpop.xlane.xlu0 %3026 }
0x23bd   :  { %4379 = vrcp.f32 %v3027_v60 }
0x23bf   :  { %v3114_v36 = vpop.permute.xlu1 %3113 }
0x23c0   :  { %v3038_v33 = vpop.permute.xlu0 %3037  ;;  %3987 = vmatpush3.msra.mxu1 %v3114_v36 }
0x23c1   :  { %3982 = vmatpush3.msra.mxu0 %v3038_v33  ;;  %4072 = vmatprep.subr.bf16.mxu1 %v4071_v21 }
0x23c3   :  { %v3194_v20 = vpop.permute.xlu1 %3193 }
0x23c4   :  { %v3215_v43 = vsel %vm1867_vm6, %v5053_v16, %v3194_v20  ;;  %v76_v16 = vld [vmem:[#allocation5 + $0x98] sm:$0xff] }
0x23c5   :  { %v4080_v41 = vpack.c.bf16 %v77_v61, %v76_v16  ;;  %v3801_v16 = vld [vmem:[#allocation5 + $0x100] ss:$0 sm:$0xff] }
0x23c6   :  { %v4378_v38 = vpop.eup %4377 }
0x23c7   :  { %v4380_v19 = vpop.eup %4379  ;;  %v3034_v24 = vmul.f32 %v4378_v38, %v4374_v9  ;;  %v3202_v62 = vpop.permute.xlu1 %3201  ;;  %v82_v9 = vld [vmem:[#allocation5 + $0xc8] sm:$0xff] }
0x23c8   :  { %v3032_v2 = vmul.f32 %v4380_v19, %v4376_v35  ;;  %v3217_v10 = vsel %vm105_vm0, %v3215_v43, %v3202_v62  ;;  %v83_v35 = vld [vmem:[#allocation5 + $0xd0] sm:$0xff]  ;;  %v92_v62 = vld [vmem:[#allocation5 + $0x118] sm:$0xff]  ;;  %v93_v43 = vld [vmem:[#allocation5 + $0x120] sm:$0xff] }
0x23c9   :  { %3989 = vmatmul.mubr.msk.f32.vlgmr.msra.gmra.mrb[32].mxu1 %vm1867_vm6, %v3034_v24  ;;  %v3036_v54 = vadd.f32 %v3034_v24, %v5113_v34  ;;  %v4089_v39 = vpack.c.bf16 %v83_v35, %v82_v9  ;;  %v4516_v35 = vmov 1934713408  }
0x23ca   :  { %3984 = vmatmul.mubr.msk.f32.vlgmr.msra.gmra.mrb[34].mxu0 %vm1867_vm6, %v3032_v2  ;;  %v3035_v5 = vadd.f32 %v3032_v2, %v5116_v53  ;;  %4074 = vmatpush3.bf16.msra.mxu1 %v4071_v21  ;;  %v3196_v53 = vpop.permute.xlu0 %3195  ;;  %v85_v2 = vld [vmem:[#allocation5 + $0xe0] sm:$0xff] }
0x23cb   :  { %4029 = vmatprep.mubr.msk.f32.mxu0 %vm4501_vm5, %v4500_v32  ;;  %v3190_v6 = vmul.f32 0.25, %v3036_v54  ;;  %4076 = vmatprep.subr.bf16.mxu1 %v4075_v23  ;;  %v3216_v25 = vsel %vm1867_vm6, %v5051_v15, %v3196_v53  ;;  %v4515_v15 = vmov 0.0|0.0   ;;  %v86_v54 = vld [vmem:[#allocation5 + $0xe8] sm:$0xff] }
0x23cc   :  { %v3189_v7 = vmul.f32 0.25, %v3035_v5  ;;  %4091 = vmatprep.subr.bf16.mxu0 %v4515_v15  ;;  %v4092_v5 = vpack.c.bf16 %v86_v54, %v85_v2 }
0x23cd   :  { %v5154_v42 = vrot.slane %v3190_v6, %v3587_v58  ;;  %v3596_v27 = vcombine.high %v3190_v6, %v4500_v32  ;;  %v88_v6 = vld [vmem:[#allocation5 + $0xf8] sm:$0xff] }
0x23ce   :  { %v5157_v8 = vrot.slane %v3189_v7, %v3587_v58  ;;  %v3581_v56 = vcombine.high %v3189_v7, %v4500_v32  ;;  %4078 = vmatpush3.bf16.msra.mxu1 %v4075_v23  ;;  %v3204_v12 = vpop.permute.xlu0 %3203  ;;  %4093 = vmatpush3.bf16.msra.mxu0 %v4092_v5 }
0x23cf   :  { %v5160_v63 = vrot.slane %v3596_v27, %v3587_v58  ;;  %v3218_v48 = vsel %vm105_vm0, %v3216_v25, %v3204_v12  ;;  %4079 = vmatprep.subr.bf16.mxu1 %v4515_v15  ;;  %4094 = vmatprep.subr.bf16.mxu0 %v4515_v15  ;;  %v3798_v27 = vld [vmem:[#allocation5 + $0xd8] ss:$0 sm:$0xff]  ;;  %v94_v25 = vld [vmem:[#allocation5 + $0x128] sm:$0xff] }
0x23d0   :  { %v3611_v11 = vcombine.low %v5157_v8, %v5154_v42  ;;  %v3612_v1 = vcombine.high %v5157_v8, %v5154_v42  ;;  %v5166_v40 = vrot.slane %v3581_v56, %v3587_v58  ;;  %v87_v58 = vld [vmem:[#allocation5 + $0xf0] sm:$0xff] }
0x23d1   :  { %v4095_v7 = vpack.c.bf16 %v88_v6, %v87_v58 }
0x23d2   :  { %v3627_v18 = vcombine.low %v5166_v40, %v5160_v63  ;;  %v3628_v51 = vcombine.high %v5166_v40, %v5160_v63 }
0x23d3   :  { %4096 = vmatpush3.bf16.msra.mxu0 %v4095_v7 }
0x23d4   :  { %4097 = vmatprep.subr.bf16.mxu0 %v4515_v15 }
0x249c   :  { %v3185_v26 = vpop.f32.mrb[32].mxu1 }
0x249d   :  { %3211 = vrot.lane.b32.xlu0 %v3185_v26, %s4514_s7  ;;  %v3109_v52 = vpop.f32.mrb[34].mxu0  ;;  %v3990_v59 = vpop.f32.mrb[33].mxu1 }
0x249e   :  { %3209 = vrot.lane.b32.xlu1 %v3109_v52, %s4514_s7  ;;  %v3985_v34 = vpop.f32.mrb[35].mxu0  ;;  %v90_v52 = vld [vmem:[#allocation5 + $0x108] sm:$0xff]  ;;  %v91_v59 = vld [vmem:[#allocation5 + $0x110] sm:$0xff] }
0x249f   :  { %v4098_v20 = vpack.c.bf16 %v91_v59, %v90_v52 }
0x24a2   :  { %3307 = vrot.lane.b32.xlu1 %v4977_v47, %s4497_s21 }
0x250f   :  { %v3212_v29 = vpop.permute.xlu0 %3211 }
0x2510   :  { %v3210_v45 = vpop.permute.xlu1 %3209  ;;  %v3221_v47 = vsel %vm3219_vm7, %v3218_v48, %v3212_v29  ;;  %v4101_v29 = vpack.c.bf16 %v93_v43, %v92_v62  ;;  %v96_v48 = vld [vmem:[#allocation5 + $0x138] sm:$0xff] }
0x2511   :  { %v3220_v50 = vsel %vm3219_vm7, %v3217_v10, %v3210_v45  ;;  %v95_v10 = vld [vmem:[#allocation5 + $0x130] sm:$0xff] }
0x2512   :  { %3999 = vmatprep.mubr.msk.f32.mxu1 %vm191_vm1, %v3220_v50  ;;  %v4104_v45 = vpack.c.bf16 %v95_v10, %v94_v25  ;;  %v97_v50 = vld [vmem:[#allocation5 + $0x140] sm:$0xff] }
0x2513   :  { %4000 = vmatmul.mubr.msk.f32.vlgmr.msra.gmra.mrb[34].mxu1 %vm191_vm1, %v3221_v47  ;;  %v4107_v47 = vpack.c.bf16 %v97_v50, %v96_v48 }
0x2514   :  { %4018 = vmatprep.mubr.msk.f32.mxu1 %vm4501_vm5, %v4500_v32  ;;  %4081 = vmatpush3.bf16.msra.mxu1 %v4080_v41  ;;  %v3308_v38 = vpop.permute.xlu1 %3307 }
0x2515   :  { %4082 = vmatprep.subr.bf16.mxu1 %v4515_v15 }
0x2518   :  { %4084 = vmatpush3.bf16.msra.mxu1 %v4083_v28  ;;  %v3803_v28 = vld [vmem:[#allocation5 + $0x148] ss:$0 sm:$0xff] }
0x2519   :  { %4085 = vmatprep.subr.bf16.mxu1 %v4515_v15 }
0x251c   :  { %4087 = vmatpush3.bf16.msra.mxu1 %v4086_v4 }
0x251d   :  { %4088 = vmatprep.subr.bf16.mxu1 %v4515_v15 }
0x2520   :  { %4090 = vmatpush3.bf16.msra.mxu1 %v4089_v39 }
0x25e6   :  { %v4001_v49 = vpop.f32.mrb[34].mxu1 }
0x25e7   :  { %v3304_v60 = vadd.f32 %v4001_v49, %v3795_v37  ;;  %v3298_v36 = vpop.f32.mrb[35].mxu1 }
0x25e8   :  { %v3299_v33 = vadd.f32 %v3795_v37, %v3298_v36 }
0x25e9   :  { %v3313_v57 = vrot.slane %v3304_v60, 6 }
0x25ea   :  { %v3312_v46 = vrot.slane %v3299_v33, 7 }
0x25ec   :  { %v3314_v0 = vsel %vm332_vm2, %v3313_v57, %v3312_v46  ;;  %vm3564_vm2 = vcmask 42008  }
0x25ed   :  { %3315 = vrot.lane.b32.xlu0 %v3314_v0, %s4497_s21 }
0x265f   :  { %v3316_v19 = vpop.permute.xlu0 %3315 }
0x2660   :  { %v3318_v24 = vsel %vm191_vm1, %v3308_v38, %v3316_v19 }
0x2661   :  { %4019 = vmatmul.mubr.msk.f32.vlgmr.msra.gmra.mrb[36].mxu1 %vm379_vm3, %v3318_v24 }
0x2734   :  { %v3392_v56 = vpop.f32.mrb[36].mxu1 }
0x2735   :  { %v3393_v13 = vadd.f32 %v3798_v27, %v3392_v56  ;;  %v4020_v14 = vpop.f32.mrb[37].mxu1 }
0x2737   :  { %v3800_v17 = vmul.f32 -1.442695, %v3393_v13 }
0x2739   :  { %4381 = vpow2.f32 %v3800_v17 }
0x2743   :  { %v4382_v21 = vpop.eup %4381 }
0x2744   :  { %v3399_v22 = vadd.f32 1.0, %v4382_v21 }
0x2746   :  { %4383 = vrcp.f32 %v3399_v22 }
0x2750   :  { %v4384_v23 = vpop.eup %4383 }
0x2751   :  { %v3403_v26 = vmul.f32 %v4384_v23, %v3316_v19  ;;  %v3402_v34 = vmul.f32 %v4384_v23, %v3308_v38 }
0x2753   :  { %3405 = vrot.lane.b32.xlu1 %v3403_v26, %s4502_s22 }
0x27c5   :  { %v3406_v53 = vpop.permute.xlu1 %3405 }
0x27c6   :  { %v5200_v12 = vadd.f32 %v3406_v53, %v3402_v34 }
0x27c8   :  { %4030 = vmatmul.mubr.msk.f32.vlgmr.msra.gmra.mrb[36].mxu0 %vm191_vm1, %v5200_v12 }
0x27c9   :  { %4099 = vmatpush3.bf16.msra.mxu0 %v4098_v20  ;;  %4048 = vmatprep.mubr.msk.f32.mxu0 %vm4501_vm5, %v4500_v32 }
0x27ca   :  { %4100 = vmatprep.subr.bf16.mxu0 %v4515_v15 }
0x27cd   :  { %4102 = vmatpush3.bf16.msra.mxu0 %v4101_v29 }
0x27ce   :  { %4103 = vmatprep.subr.bf16.mxu0 %v4515_v15 }
0x27d1   :  { %4105 = vmatpush3.bf16.msra.mxu0 %v4104_v45 }
0x27d2   :  { %4106 = vmatprep.subr.bf16.mxu0 %v4515_v15  ;;  %v3614_v15 = vunpack.c.l.s4 %v4516_v35 }
0x27d4   :  { %v3615_v39 = vunpack.c.0.s8 %v3614_v15 }
0x27d5   :  { %4108 = vmatpush3.bf16.msra.mxu0 %v4107_v47 }
0x27d6   :  { %v3618_v37 = vsub.s32 %v3615_v39, %v4732_v3 }
0x27d8   :  { %v3619_v49 = vrot.slane %v3611_v11, %v3618_v37  ;;  %v3626_v36 = vrot.slane %v3612_v1, %v3618_v37  ;;  %v3635_v3 = vrot.slane %v3627_v18, %v3618_v37  ;;  %v3642_v11 = vrot.slane %v3628_v51, %v3618_v37 }
0x27da   :  { %v3643_v60 = vcombine.high %v3619_v49, %v4500_v32  ;;  %v3644_v33 = vcombine.high %v3626_v36, %v4500_v32  ;;  %v3645_v46 = vcombine.high %v3635_v3, %v4500_v32  ;;  %v3646_v63 = vcombine.high %v3642_v11, %v4500_v32 }
0x289b   :  { %v3482_v61 = vpop.f32.mrb[36].mxu0 }
0x289c   :  { %v3483_v31 = vadd.f32 %v3801_v16, %v3482_v61  ;;  %v4031_v41 = vpop.f32.mrb[37].mxu0 }
0x289e   :  { %v3486_v30 = vmax.f32 %v3483_v31, 0.0 }
0x28a0   :  { %4049 = vmatmul.mubr.msk.f32.vlgmr.msra.gmra.mrb[38].mxu0 %vm379_vm3, %v3486_v30  ;;  %vm3575_vm3 = vcmask 17408  }
0x2973   :  { %v3560_v44 = vpop.f32.mrb[38].mxu0 }
0x2974   :  { %v3561_v55 = vadd.f32 %v3803_v28, %v3560_v44  ;;  %v4050_v4 = vpop.f32.mrb[39].mxu0 }
0x2976   :  { %v3565_v9 = vsel %vm3564_vm2, %v3561_v55, -inf }
0x2977   :  { %3566 = vmax.xlane.f32.xlu0 %v3565_v9 }
0x298d   :  { %3648 = vrot.lane.b32.xlu0 %v3643_v60, %s4494_s25  ;;  %s4517_s25 = smov 125  }
0x2991   :  { %3656 = vrot.lane.b32.xlu0 %v3644_v33, %s4514_s7 }
0x2995   :  { %3660 = vrot.lane.b32.xlu0 %v3635_v3, %s4497_s21 }
0x2999   :  { %3668 = vrot.lane.b32.xlu0 %v3642_v11, %s4508_s29 }
0x2a04   :  { %v3567_v42 = vpop.xlane.xlu0 %3566 }
0x2a05   :  { %v3568_v8 = vsub.f32 %v3561_v55, %v3567_v42 }
0x2a07   :  { %v3569_v1 = vmul.f32 1.442695, %v3568_v8 }
0x2a08   :  { %v3649_v38 = vpop.permute.xlu0 %3648 }
0x2a09   :  { %4385 = vpow2.f32 %v3569_v1  ;;  %v3675_v24 = vsel %vm1867_vm6, %v3619_v49, %v3649_v38 }
0x2a0c   :  { %v3657_v2 = vpop.permute.xlu0 %3656 }
0x2a10   :  { %v3661_v5 = vpop.permute.xlu0 %3660 }
0x2a13   :  { %v4386_v57 = vpop.eup %4385 }
0x2a14   :  { %3572 = vrot.lane.b32.xlu1 %v4386_v57, %s4517_s25  ;;  %v3669_v13 = vpop.permute.xlu0 %3668 }
0x2a18   :  { %3652 = vrot.lane.b32.xlu1 %v3626_v36, %s4512_s6 }
0x2a1c   :  { %3664 = vrot.lane.b32.xlu1 %v3645_v46, %s4511_s5 }
0x2a86   :  { %v3573_v18 = vpop.permute.xlu1 %3572 }
0x2a87   :  { %v3576_v0 = vsel %vm3575_vm3, %v3573_v18, 0.0 }
0x2a88   :  { %3577 = vadd.xlane.f32.xlu1 %v3576_v0 }
0x2a8a   :  { %v3653_v40 = vpop.permute.xlu1 %3652 }
0x2a8b   :  { %v3676_v54 = vsel %vm105_vm0, %v3675_v24, %v3653_v40  ;;  %vm3698_vm0 = vcmask 285696  }
0x2a8c   :  { %v3677_v58 = vsel %vm3219_vm7, %v3676_v54, %v3657_v2 }
0x2a8d   :  { %v3678_v32 = vsel %vm191_vm1, %v3677_v58, %v3661_v5 }
0x2a8e   :  { %v3665_v51 = vpop.permute.xlu1 %3664 }
0x2a8f   :  { %v3680_v27 = vsel %vm3679_vm8, %v3678_v32, %v3665_v51 }
0x2a90   :  { %v3682_v14 = vsel %vm3681_vm9, %v3680_v27, %v3669_v13 }
0x2a99   :  { %3672 = vrot.lane.b32.xlu1 %v3646_v63, %s4505_s26 }
0x2a9d   :  { %3690 = vrot.lane.b32.xlu1 %v3561_v55, %s4518_s8 }
0x2b15   :  { %v3578_v19 = vpop.xlane.xlu1 %3577 }
0x2b16   :  { %4387 = vrcp.f32 %v3578_v19 }
0x2b19   :  { %v3673_v56 = vpop.permute.xlu1 %3672 }
0x2b1a   :  { %v3684_v17 = vsel %vm3683_vm10, %v3682_v14, %v3673_v56 }
0x2b1d   :  { %v3691_v23 = vpop.permute.xlu1 %3690 }
0x2b20   :  { %v4388_v6 = vpop.eup %4387 }
0x2b21   :  { %v3580_v7 = vmul.f32 %v4388_v6, %v4386_v57 }
0x2b23   :  { %3686 = vrot.lane.b32.xlu0 %v3580_v7, %s4519_s1 }
0x2b27   :  { %3694 = vrot.lane.b32.xlu0 %v3684_v17, %s4520_s9 }
0x2b95   :  { %v3687_v21 = vpop.permute.xlu0 %3686 }
0x2b96   :  { %v3697_v22 = vsel %vm191_vm1, %v5200_v12, %v3687_v21 }
0x2b97   :  { %v3699_v26 = vsel %vm3698_vm0, %v3697_v22, %v3691_v23 }
0x2b99   :  { %v3695_v52 = vpop.permute.xlu0 %3694 }
0x2b9a   :  { %v3701_v59 = vsel %vm3700_vm11, %v3699_v26, %v3695_v52 }
0x2b9b   :  { %v3703_v34 = vsel %vm3702_vm12, %v3701_v59, 0.0 }
0x2b9c   :  { %3704 = vst [vmem:[#allocation8] sm:$0x3] %v3703_v34 }
0x2b9d   :  { %4474 = shalt.err (!%p4471_p0)
}
0x2b9e   :  { %s4475_s16 = scalar_lea.hbm %s5255_s3, 32 }
0x2b9f   :  { %p4476_p1 = scmp.ne.s32.totalorder %s5255_s3, %s4475_s16  ;;  %p4479_p2 = scmp.lt.u32.totalorder %s4475_s16, %s5255_s3 }
0x2ba1   :  { %p4481_p3 = pnand %p4479_p2, %p4476_p1 }
0x2ba3   :  { %4484 = shalt.err (!%p4481_p3)
}
0x2ba4   :  { %3714 = dma.vmem_to_hbm [thread:$0]  %s3712_s11, 32, %s5255_s3, [#allocation4]  }
0x2ba5   :  { %4489 = dma.done.wait [#allocation4], 32  }
0x2ba6   :  { %4490 = vsyncadd [#allocation4], 4294967264 }
0x2ba7   :  { %3718 = vsyncpa [#allocation3], 1 }
0x2ba8   :  { %3719 = vsyncpa [#allocation6], 1 }
0x2ba9   :  { %3720 = vsyncpa [#allocation4], 1 }

</bundles_post_ra>
